<compile_context>
chip_gen: v5e
topology: v5e:2x2
jax: 0.10.0
libtpu: 0.0.40
codegen_flags: <defaults>
</compile_context>

<pallas_src>
import functools

import jax
import jax.numpy as jnp
from jax.experimental import pallas as pl
from jax.experimental.pallas import tpu as pltpu

EPS = 1e-6  # matches `eps` in the PyTorch source


# -----------------------------------------------------------------------------
# Fused kernel: ext_merge + rsample + 1x1 ResBlocks + (ResBlock3x3 x2 + final conv)
# -----------------------------------------------------------------------------
def _fused_kernel(img_ref, noise_ref, wls_ref, bls_ref, wdep_ref, bdep_ref,
                  mask_ref, wtail_ref, btail_ref, wfin_ref, bfin_ref, o_ref,
                  *, n_ch, n_dep_block, shifts):
    # img_ref  : (1, C_pad, HW)        image, channels-first, channel dim zero-padded
    # noise_ref: (1, n_ch, HW)         standard-normal draws for rsample()
    # wls_ref  : (2*n_ch, C_pad)       ext_merge weight (image columns only)
    # bls_ref  : (1, 2*n_ch, 1)        per-batch bias = b_merge + W_rand @ rand_vec
    # wdep_ref : (2*n_dep_block, n_ch, n_ch)   1x1 ResBlock weights
    # bdep_ref : (2*n_dep_block, n_ch, 1)
    # mask_ref : (9, HW)               {0,1} zero-padding boundary masks per 3x3 tap
    # wtail_ref: (4, n_ch, 9*n_ch)     tail ResBlock conv weights (tap-concat layout)
    # btail_ref: (4, n_ch, 1)
    # wfin_ref : (Cout_pad, 9*n_ch)    final conv weight (rows zero-padded)
    # bfin_ref : (Cout_pad, 1)
    # o_ref    : (1, Cout_pad, HW)
    hw = img_ref.shape[-1]

    # ---- ext_merge (one merged loc/scale matmul) + reparameterized sample ----
    x = img_ref[0]                                                    # (C_pad, HW)
    feat = jnp.dot(wls_ref[...], x, preferred_element_type=jnp.float32) + bls_ref[0]
    loc = feat[:n_ch]
    scl = jnp.maximum(feat[n_ch:], EPS)                               # torch.clip(scale, eps)
    z = loc + scl * noise_ref[0]                                      # Normal(...).rsample()

    # ---- pipe_dep: 1x1 ResBlocks (x + conv(relu(conv(x)))) ----
    for i in range(n_dep_block):
        t = jnp.dot(wdep_ref[2 * i], z,
                    preferred_element_type=jnp.float32) + bdep_ref[2 * i]
        t = jnp.maximum(t, 0.0)
        t = jnp.dot(wdep_ref[2 * i + 1], t,
                    preferred_element_type=jnp.float32) + bdep_ref[2 * i + 1]
        z = z + t

    # ---- tail: each 3x3 conv = one K = 9*Cin contraction ----
    masks = mask_ref[...]                                             # (9, HW)

    def taps(a):
        # (Cin, HW) -> (9*Cin, HW): tap k holds a[c, h+dh, w+dw] (zero outside).
        parts = []
        for k, s in enumerate(shifts):
            shifted = a if s == 0 else pltpu.roll(a, (-s) % hw, 1)    # XLU lane rotate
            parts.append(shifted * masks[k:k + 1])                    # zero-pad boundary
        return jnp.concatenate(parts, axis=0)

    def conv3x3(a, w, b, relu):
        r = jnp.dot(w, taps(a), preferred_element_type=jnp.float32) + b
        return jnp.maximum(r, 0.0) if relu else r

    n_tail_blocks = wtail_ref.shape[0] // 2
    for j in range(n_tail_blocks):                                    # ResBlock(k=3) x2
        t = conv3x3(z, wtail_ref[2 * j], btail_ref[2 * j], True)
        t = conv3x3(t, wtail_ref[2 * j + 1], btail_ref[2 * j + 1], False)
        z = z + t

    out = conv3x3(z, wfin_ref[...], bfin_ref[...], False)             # (Cout_pad, HW)
    o_ref[0] = out.astype(o_ref.dtype)


# -----------------------------------------------------------------------------
# Host-side helpers
# -----------------------------------------------------------------------------
def _conv_w_to_mat(w):
    """(..., Cout, Cin, 3, 3) conv weight -> (..., Cout, 9*Cin) tap-concat matrix.

    Column block k = kh*3 + kw holds weight[..., :, :, kh, kw], matching the order
    in which the kernel concatenates its shifted taps.
    """
    *lead, c_out, c_in, kh, kw = w.shape
    wt = jnp.moveaxis(w, -3, -1)              # (..., Cout, 3, 3, Cin)
    return wt.reshape(*lead, c_out, kh * kw * c_in)


# -----------------------------------------------------------------------------
# Parameters (deterministic synthetic init; shapes follow the module __init__,
# PyTorch Conv2d layout: weight (Cout, Cin[, kh, kw]), bias (Cout,))
# -----------------------------------------------------------------------------
def init_params(key, n_ch_in=3, n_ch_out=3, n_ch=32, n_rand=16, n_dep_block=2):
    keys = jax.random.split(key, 8)

    def w(k, shape, scale=0.1):
        return (scale * jax.random.normal(k, shape)).astype(jnp.float32)

    p = {
        # ext_merge: Conv2d(n_ch_in + n_rand, 2*n_ch, k=1, bias=True)
        "w_merge": w(keys[0], (2 * n_ch, n_ch_in + n_rand)),
        "b_merge": jnp.concatenate([
            0.01 * jnp.ones((n_ch,), jnp.float32),      # loc bias
            0.5 * jnp.ones((n_ch,), jnp.float32),       # scale bias
        ]),
        # pipe_dep: n_dep_block ResBlocks with 1x1 convs (2 convs each)
        "w_dep": w(keys[1], (2 * n_dep_block, n_ch, n_ch)),
        "b_dep": w(keys[2], (2 * n_dep_block, n_ch), 0.01),
        # tail_conv: 2 ResBlocks (3x3, 2 convs each) + final Conv2d(n_ch, n_ch_out, 3)
        "w_tail": w(keys[3], (4, n_ch, n_ch, 3, 3)),
        "b_tail": w(keys[4], (4, n_ch), 0.01),
        "w_final": w(keys[5], (n_ch_out, n_ch, 3, 3)),
        "b_final": w(keys[6], (n_ch_out,), 0.01),
    }
    return p


# -----------------------------------------------------------------------------
# Forward pass (pipe_dep=True, pipe_indep=False, matching the module defaults)
# -----------------------------------------------------------------------------
def clton_g_forward(img_CL_nchw, rand_vec, eps_noise, params,
                    n_ch=32, n_rand=16, n_dep_block=2):
    """img_CL_nchw: (N,C,H,W); rand_vec: (N,n_rand); eps_noise: (N,n_ch,H*W)."""
    N, C, H, W = img_CL_nchw.shape
    HW = H * W                                  # must be a multiple of 128 here
    C_pad = ((C + 7) // 8) * 8
    n_out = params["b_final"].shape[0]
    Cout_pad = ((n_out + 7) // 8) * 8

    # NCHW -> (N, C_pad, HW): a reshape + tiny channel pad, no transpose.
    img = img_CL_nchw.reshape(N, C, HW)
    img = jnp.pad(img, ((0, 0), (0, C_pad - C), (0, 0)))

    # ext_merge: fold the spatially-constant rand_vec term into a per-batch bias.
    w_merge = params["w_merge"]                                   # (2*n_ch, C + n_rand)
    w_ls = jnp.pad(w_merge[:, :C], ((0, 0), (0, C_pad - C)))      # (2*n_ch, C_pad)
    bls = (params["b_merge"][None, :] + rand_vec @ w_merge[:, C:].T)[:, :, None]

    b_dep = params["b_dep"][:, :, None]                           # (2*n_dep_block, n_ch, 1)
    w_tail = _conv_w_to_mat(params["w_tail"])                     # (4, n_ch, 9*n_ch)
    b_tail = params["b_tail"][:, :, None]                         # (4, n_ch, 1)
    w_fin = jnp.pad(_conv_w_to_mat(params["w_final"]),
                    ((0, Cout_pad - n_out), (0, 0)))              # (Cout_pad, 9*n_ch)
    b_fin = jnp.pad(params["b_final"], (0, Cout_pad - n_out))[:, None]

    # 3x3 tap shifts (in flattened HW) + zero-padding boundary masks (batch-invariant).
    hh = jnp.arange(HW, dtype=jnp.int32) // W
    ww = jnp.arange(HW, dtype=jnp.int32) % W
    shifts, masks = [], []
    for kh in range(3):
        for kw in range(3):
            dh, dw = kh - 1, kw - 1
            shifts.append(dh * W + dw)
            valid = (hh + dh >= 0) & (hh + dh < H) & (ww + dw >= 0) & (ww + dw < W)
            masks.append(valid.astype(jnp.float32))
    masks = jnp.stack(masks, axis=0)                              # (9, HW)

    kernel = functools.partial(_fused_kernel, n_ch=n_ch,
                               n_dep_block=n_dep_block, shifts=tuple(shifts))

    out = pl.pallas_call(
        kernel,
        out_shape=jax.ShapeDtypeStruct((N, Cout_pad, HW), jnp.float32),
        grid=(N,),
        in_specs=[
            pl.BlockSpec((1, C_pad, HW), lambda n: (n, 0, 0)),        # img
            pl.BlockSpec((1, n_ch, HW), lambda n: (n, 0, 0)),         # rsample noise
            pl.BlockSpec(w_ls.shape, lambda n: (0, 0)),               # ext_merge weight
            pl.BlockSpec((1, 2 * n_ch, 1), lambda n: (n, 0, 0)),      # per-batch fused bias
            pl.BlockSpec(params["w_dep"].shape, lambda n: (0, 0, 0)),
            pl.BlockSpec(b_dep.shape, lambda n: (0, 0, 0)),
            pl.BlockSpec(masks.shape, lambda n: (0, 0)),
            pl.BlockSpec(w_tail.shape, lambda n: (0, 0, 0)),
            pl.BlockSpec(b_tail.shape, lambda n: (0, 0, 0)),
            pl.BlockSpec(w_fin.shape, lambda n: (0, 0)),
            pl.BlockSpec(b_fin.shape, lambda n: (0, 0)),
        ],
        out_specs=pl.BlockSpec((1, Cout_pad, HW), lambda n: (n, 0, 0)),
        compiler_params=pltpu.CompilerParams(
            dimension_semantics=("parallel",)),   # batch images independent -> v7x 2-TC
    )(img, eps_noise, w_ls, bls, params["w_dep"], b_dep,
      masks, w_tail, b_tail, w_fin, b_fin)

    # (N, Cout_pad, HW) -> NCHW (drop the channel padding; reshape only, no transpose).
    return out[:, :n_out, :].reshape(N, n_out, H, W)


# -----------------------------------------------------------------------------
if __name__ == "__main__":
    key = jax.random.PRNGKey(0)
    k_img, k_rand, k_eps, k_par = jax.random.split(key, 4)

    N, C, H, W = 2, 3, 16, 16          # n_ch_in = 3
    n_ch, n_rand, n_ch_out, n_dep_block = 32, 16, 3, 2

    img_CL = jax.random.normal(k_img, (N, C, H, W), jnp.float32)
    rand_vec = jax.random.normal(k_rand, (N, n_rand), jnp.float32)
    # standard-normal draws consumed by Normal(loc, scale).rsample(), channels-first
    eps_noise = jax.random.normal(k_eps, (N, n_ch, H * W), jnp.float32)

    params = init_params(k_par, n_ch_in=C, n_ch_out=n_ch_out, n_ch=n_ch,
                         n_rand=n_rand, n_dep_block=n_dep_block)

    out = clton_g_forward(img_CL, rand_vec, eps_noise, params,
                          n_ch=n_ch, n_rand=n_rand, n_dep_block=n_dep_block)
    out = jax.block_until_ready(out)

    assert out.shape == (N, n_ch_out, H, W), out.shape
    assert bool(jnp.all(jnp.isfinite(out)))
    print("KERNEL_OK")
</pallas_src>

<mosaic_0001>
module attributes {stable_mosaic.version = 11 : i64} {
  func.func @_fused_kernel(%arg0: i32, %arg1: memref<1x8x256xf32, #tpu.memory_space<vmem>>, %arg2: memref<1x32x256xf32, #tpu.memory_space<vmem>>, %arg3: memref<64x8xf32, #tpu.memory_space<vmem>>, %arg4: memref<1x64x1xf32, #tpu.memory_space<vmem>>, %arg5: memref<4x32x32xf32, #tpu.memory_space<vmem>>, %arg6: memref<4x32x1xf32, #tpu.memory_space<vmem>>, %arg7: memref<9x256xf32, #tpu.memory_space<vmem>>, %arg8: memref<4x32x288xf32, #tpu.memory_space<vmem>>, %arg9: memref<4x32x1xf32, #tpu.memory_space<vmem>>, %arg10: memref<8x288xf32, #tpu.memory_space<vmem>>, %arg11: memref<8x1xf32, #tpu.memory_space<vmem>>, %arg12: memref<1x8x256xf32, #tpu.memory_space<vmem>>) attributes {dimension_semantics = [#tpu.dimension_semantics<parallel>], iteration_bounds = array<i64: 2>, scalar_prefetch = 0 : i64, scratch_operands = 0 : i64, tpu.core_type = #tpu.core_type<tc>, window_params = [{transform_indices = @transform_0, window_bounds = array<i64: 1, 8, 256>}, {transform_indices = @transform_1, window_bounds = array<i64: 1, 32, 256>}, {pipeline_mode = #tpu.pipeline_mode<synchronous>, transform_indices = @transform_2, window_bounds = array<i64: 64, 8>}, {transform_indices = @transform_3, window_bounds = array<i64: 1, 64, 1>}, {pipeline_mode = #tpu.pipeline_mode<synchronous>, transform_indices = @transform_4, window_bounds = array<i64: 4, 32, 32>}, {pipeline_mode = #tpu.pipeline_mode<synchronous>, transform_indices = @transform_5, window_bounds = array<i64: 4, 32, 1>}, {pipeline_mode = #tpu.pipeline_mode<synchronous>, transform_indices = @transform_6, window_bounds = array<i64: 9, 256>}, {pipeline_mode = #tpu.pipeline_mode<synchronous>, transform_indices = @transform_7, window_bounds = array<i64: 4, 32, 288>}, {pipeline_mode = #tpu.pipeline_mode<synchronous>, transform_indices = @transform_8, window_bounds = array<i64: 4, 32, 1>}, {pipeline_mode = #tpu.pipeline_mode<synchronous>, transform_indices = @transform_9, window_bounds = array<i64: 8, 288>}, {pipeline_mode = #tpu.pipeline_mode<synchronous>, transform_indices = @transform_10, window_bounds = array<i64: 8, 1>}, {transform_indices = @transform_11, window_bounds = array<i64: 1, 8, 256>}]} {
    %c0 = arith.constant 0 : index
    %c0_0 = arith.constant 0 : index
    %c0_1 = arith.constant 0 : index
    %0 = vector.load %arg1[%c0, %c0_0, %c0_1] : memref<1x8x256xf32, #tpu.memory_space<vmem>>, vector<1x8x256xf32>
    %1 = vector.shape_cast %0 : vector<1x8x256xf32> to vector<8x256xf32>
    %c0_2 = arith.constant 0 : index
    %c0_3 = arith.constant 0 : index
    %2 = vector.load %arg3[%c0_2, %c0_3] : memref<64x8xf32, #tpu.memory_space<vmem>>, vector<64x8xf32>
    %cst = arith.constant dense<0.000000e+00> : vector<64x256xf32>
    %3 = tpu.matmul %2, %1, %cst {dimension_numbers = #tpu.dot_dimension_numbers<[1], [0], [0], [1], [0, 0, 1, 1], [], []>} : vector<64x8xf32>, vector<8x256xf32>, vector<64x256xf32> -> vector<64x256xf32>
    %c0_4 = arith.constant 0 : index
    %c0_5 = arith.constant 0 : index
    %c0_6 = arith.constant 0 : index
    %4 = vector.load %arg4[%c0_4, %c0_5, %c0_6] : memref<1x64x1xf32, #tpu.memory_space<vmem>>, vector<1x64x1xf32>
    %5 = vector.shape_cast %4 : vector<1x64x1xf32> to vector<64x1xf32>
    %6 = vector.broadcast %5 : vector<64x1xf32> to vector<64x256xf32>
    %7 = arith.addf %3, %6 : vector<64x256xf32>
    %8 = vector.extract_strided_slice %7 {offsets = [0, 0], sizes = [32, 256], strides = [1, 1]} : vector<64x256xf32> to vector<32x256xf32>
    %9 = vector.extract_strided_slice %7 {offsets = [32, 0], sizes = [32, 256], strides = [1, 1]} : vector<64x256xf32> to vector<32x256xf32>
    %cst_7 = arith.constant 9.99999997E-7 : f32
    %10 = vector.broadcast %cst_7 : f32 to vector<32x256xf32>
    %11 = arith.maximumf %9, %10 : vector<32x256xf32>
    %c0_8 = arith.constant 0 : index
    %c0_9 = arith.constant 0 : index
    %c0_10 = arith.constant 0 : index
    %12 = vector.load %arg2[%c0_8, %c0_9, %c0_10] : memref<1x32x256xf32, #tpu.memory_space<vmem>>, vector<1x32x256xf32>
    %13 = vector.shape_cast %12 : vector<1x32x256xf32> to vector<32x256xf32>
    %14 = arith.mulf %11, %13 : vector<32x256xf32>
    %15 = arith.addf %8, %14 : vector<32x256xf32>
    %c0_11 = arith.constant 0 : index
    %c0_12 = arith.constant 0 : index
    %c0_13 = arith.constant 0 : index
    %16 = vector.load %arg5[%c0_11, %c0_12, %c0_13] : memref<4x32x32xf32, #tpu.memory_space<vmem>>, vector<1x32x32xf32>
    %17 = vector.shape_cast %16 : vector<1x32x32xf32> to vector<32x32xf32>
    %cst_14 = arith.constant dense<0.000000e+00> : vector<32x256xf32>
    %18 = tpu.matmul %17, %15, %cst_14 {dimension_numbers = #tpu.dot_dimension_numbers<[1], [0], [0], [1], [0, 0, 1, 1], [], []>} : vector<32x32xf32>, vector<32x256xf32>, vector<32x256xf32> -> vector<32x256xf32>
    %c0_15 = arith.constant 0 : index
    %c0_16 = arith.constant 0 : index
    %c0_17 = arith.constant 0 : index
    %19 = vector.load %arg6[%c0_15, %c0_16, %c0_17] : memref<4x32x1xf32, #tpu.memory_space<vmem>>, vector<1x32x1xf32>
    %20 = vector.shape_cast %19 : vector<1x32x1xf32> to vector<32x1xf32>
    %21 = vector.broadcast %20 : vector<32x1xf32> to vector<32x256xf32>
    %22 = arith.addf %18, %21 : vector<32x256xf32>
    %cst_18 = arith.constant 0.000000e+00 : f32
    %23 = vector.broadcast %cst_18 : f32 to vector<32x256xf32>
    %24 = arith.maximumf %22, %23 : vector<32x256xf32>
    %c1 = arith.constant 1 : index
    %c0_19 = arith.constant 0 : index
    %c0_20 = arith.constant 0 : index
    %25 = vector.load %arg5[%c1, %c0_19, %c0_20] : memref<4x32x32xf32, #tpu.memory_space<vmem>>, vector<1x32x32xf32>
    %26 = vector.shape_cast %25 : vector<1x32x32xf32> to vector<32x32xf32>
    %cst_21 = arith.constant dense<0.000000e+00> : vector<32x256xf32>
    %27 = tpu.matmul %26, %24, %cst_21 {dimension_numbers = #tpu.dot_dimension_numbers<[1], [0], [0], [1], [0, 0, 1, 1], [], []>} : vector<32x32xf32>, vector<32x256xf32>, vector<32x256xf32> -> vector<32x256xf32>
    %c1_22 = arith.constant 1 : index
    %c0_23 = arith.constant 0 : index
    %c0_24 = arith.constant 0 : index
    %28 = vector.load %arg6[%c1_22, %c0_23, %c0_24] : memref<4x32x1xf32, #tpu.memory_space<vmem>>, vector<1x32x1xf32>
    %29 = vector.shape_cast %28 : vector<1x32x1xf32> to vector<32x1xf32>
    %30 = vector.broadcast %29 : vector<32x1xf32> to vector<32x256xf32>
    %31 = arith.addf %27, %30 : vector<32x256xf32>
    %32 = arith.addf %15, %31 : vector<32x256xf32>
    %c2 = arith.constant 2 : index
    %c0_25 = arith.constant 0 : index
    %c0_26 = arith.constant 0 : index
    %33 = vector.load %arg5[%c2, %c0_25, %c0_26] : memref<4x32x32xf32, #tpu.memory_space<vmem>>, vector<1x32x32xf32>
    %34 = vector.shape_cast %33 : vector<1x32x32xf32> to vector<32x32xf32>
    %cst_27 = arith.constant dense<0.000000e+00> : vector<32x256xf32>
    %35 = tpu.matmul %34, %32, %cst_27 {dimension_numbers = #tpu.dot_dimension_numbers<[1], [0], [0], [1], [0, 0, 1, 1], [], []>} : vector<32x32xf32>, vector<32x256xf32>, vector<32x256xf32> -> vector<32x256xf32>
    %c2_28 = arith.constant 2 : index
    %c0_29 = arith.constant 0 : index
    %c0_30 = arith.constant 0 : index
    %36 = vector.load %arg6[%c2_28, %c0_29, %c0_30] : memref<4x32x1xf32, #tpu.memory_space<vmem>>, vector<1x32x1xf32>
    %37 = vector.shape_cast %36 : vector<1x32x1xf32> to vector<32x1xf32>
    %38 = vector.broadcast %37 : vector<32x1xf32> to vector<32x256xf32>
    %39 = arith.addf %35, %38 : vector<32x256xf32>
    %cst_31 = arith.constant 0.000000e+00 : f32
    %40 = vector.broadcast %cst_31 : f32 to vector<32x256xf32>
    %41 = arith.maximumf %39, %40 : vector<32x256xf32>
    %c3 = arith.constant 3 : index
    %c0_32 = arith.constant 0 : index
    %c0_33 = arith.constant 0 : index
    %42 = vector.load %arg5[%c3, %c0_32, %c0_33] : memref<4x32x32xf32, #tpu.memory_space<vmem>>, vector<1x32x32xf32>
    %43 = vector.shape_cast %42 : vector<1x32x32xf32> to vector<32x32xf32>
    %cst_34 = arith.constant dense<0.000000e+00> : vector<32x256xf32>
    %44 = tpu.matmul %43, %41, %cst_34 {dimension_numbers = #tpu.dot_dimension_numbers<[1], [0], [0], [1], [0, 0, 1, 1], [], []>} : vector<32x32xf32>, vector<32x256xf32>, vector<32x256xf32> -> vector<32x256xf32>
    %c3_35 = arith.constant 3 : index
    %c0_36 = arith.constant 0 : index
    %c0_37 = arith.constant 0 : index
    %45 = vector.load %arg6[%c3_35, %c0_36, %c0_37] : memref<4x32x1xf32, #tpu.memory_space<vmem>>, vector<1x32x1xf32>
    %46 = vector.shape_cast %45 : vector<1x32x1xf32> to vector<32x1xf32>
    %47 = vector.broadcast %46 : vector<32x1xf32> to vector<32x256xf32>
    %48 = arith.addf %44, %47 : vector<32x256xf32>
    %49 = arith.addf %32, %48 : vector<32x256xf32>
    %c0_38 = arith.constant 0 : index
    %c0_39 = arith.constant 0 : index
    %50 = vector.load %arg7[%c0_38, %c0_39] : memref<9x256xf32, #tpu.memory_space<vmem>>, vector<9x256xf32>
    %c0_40 = arith.constant 0 : index
    %c0_41 = arith.constant 0 : index
    %c0_42 = arith.constant 0 : index
    %51 = vector.load %arg8[%c0_40, %c0_41, %c0_42] : memref<4x32x288xf32, #tpu.memory_space<vmem>>, vector<1x32x288xf32>
    %52 = vector.shape_cast %51 : vector<1x32x288xf32> to vector<32x288xf32>
    %c0_43 = arith.constant 0 : index
    %c0_44 = arith.constant 0 : index
    %c0_45 = arith.constant 0 : index
    %53 = vector.load %arg9[%c0_43, %c0_44, %c0_45] : memref<4x32x1xf32, #tpu.memory_space<vmem>>, vector<1x32x1xf32>
    %54 = vector.shape_cast %53 : vector<1x32x1xf32> to vector<32x1xf32>
    %c17_i32 = arith.constant 17 : i32
    %55 = tpu.dynamic_rotate %49 by %c17_i32 dim 1 : vector<32x256xf32>, i32 -> vector<32x256xf32>
    %56 = vector.extract_strided_slice %50 {offsets = [0, 0], sizes = [1, 256], strides = [1, 1]} : vector<9x256xf32> to vector<1x256xf32>
    %57 = vector.broadcast %56 : vector<1x256xf32> to vector<32x256xf32>
    %58 = arith.mulf %55, %57 : vector<32x256xf32>
    %c16_i32 = arith.constant 16 : i32
    %59 = tpu.dynamic_rotate %49 by %c16_i32 dim 1 : vector<32x256xf32>, i32 -> vector<32x256xf32>
    %60 = vector.extract_strided_slice %50 {offsets = [1, 0], sizes = [1, 256], strides = [1, 1]} : vector<9x256xf32> to vector<1x256xf32>
    %61 = vector.broadcast %60 : vector<1x256xf32> to vector<32x256xf32>
    %62 = arith.mulf %59, %61 : vector<32x256xf32>
    %c15_i32 = arith.constant 15 : i32
    %63 = tpu.dynamic_rotate %49 by %c15_i32 dim 1 : vector<32x256xf32>, i32 -> vector<32x256xf32>
    %64 = vector.extract_strided_slice %50 {offsets = [2, 0], sizes = [1, 256], strides = [1, 1]} : vector<9x256xf32> to vector<1x256xf32>
    %65 = vector.broadcast %64 : vector<1x256xf32> to vector<32x256xf32>
    %66 = arith.mulf %63, %65 : vector<32x256xf32>
    %c1_i32 = arith.constant 1 : i32
    %67 = tpu.dynamic_rotate %49 by %c1_i32 dim 1 : vector<32x256xf32>, i32 -> vector<32x256xf32>
    %68 = vector.extract_strided_slice %50 {offsets = [3, 0], sizes = [1, 256], strides = [1, 1]} : vector<9x256xf32> to vector<1x256xf32>
    %69 = vector.broadcast %68 : vector<1x256xf32> to vector<32x256xf32>
    %70 = arith.mulf %67, %69 : vector<32x256xf32>
    %71 = vector.extract_strided_slice %50 {offsets = [4, 0], sizes = [1, 256], strides = [1, 1]} : vector<9x256xf32> to vector<1x256xf32>
    %72 = vector.broadcast %71 : vector<1x256xf32> to vector<32x256xf32>
    %73 = arith.mulf %49, %72 : vector<32x256xf32>
    %c255_i32 = arith.constant 255 : i32
    %74 = tpu.dynamic_rotate %49 by %c255_i32 dim 1 : vector<32x256xf32>, i32 -> vector<32x256xf32>
    %75 = vector.extract_strided_slice %50 {offsets = [5, 0], sizes = [1, 256], strides = [1, 1]} : vector<9x256xf32> to vector<1x256xf32>
    %76 = vector.broadcast %75 : vector<1x256xf32> to vector<32x256xf32>
    %77 = arith.mulf %74, %76 : vector<32x256xf32>
    %c241_i32 = arith.constant 241 : i32
    %78 = tpu.dynamic_rotate %49 by %c241_i32 dim 1 : vector<32x256xf32>, i32 -> vector<32x256xf32>
    %79 = vector.extract_strided_slice %50 {offsets = [6, 0], sizes = [1, 256], strides = [1, 1]} : vector<9x256xf32> to vector<1x256xf32>
    %80 = vector.broadcast %79 : vector<1x256xf32> to vector<32x256xf32>
    %81 = arith.mulf %78, %80 : vector<32x256xf32>
    %c240_i32 = arith.constant 240 : i32
    %82 = tpu.dynamic_rotate %49 by %c240_i32 dim 1 : vector<32x256xf32>, i32 -> vector<32x256xf32>
    %83 = vector.extract_strided_slice %50 {offsets = [7, 0], sizes = [1, 256], strides = [1, 1]} : vector<9x256xf32> to vector<1x256xf32>
    %84 = vector.broadcast %83 : vector<1x256xf32> to vector<32x256xf32>
    %85 = arith.mulf %82, %84 : vector<32x256xf32>
    %c239_i32 = arith.constant 239 : i32
    %86 = tpu.dynamic_rotate %49 by %c239_i32 dim 1 : vector<32x256xf32>, i32 -> vector<32x256xf32>
    %87 = vector.extract_strided_slice %50 {offsets = [8, 0], sizes = [1, 256], strides = [1, 1]} : vector<9x256xf32> to vector<1x256xf32>
    %88 = vector.broadcast %87 : vector<1x256xf32> to vector<32x256xf32>
    %89 = arith.mulf %86, %88 : vector<32x256xf32>
    %90 = tpu.concatenate %58, %62, %66, %70, %73, %77, %81, %85, %89 in 0 : vector<32x256xf32>, vector<32x256xf32>, vector<32x256xf32>, vector<32x256xf32>, vector<32x256xf32>, vector<32x256xf32>, vector<32x256xf32>, vector<32x256xf32>, vector<32x256xf32> -> vector<288x256xf32>
    %cst_46 = arith.constant dense<0.000000e+00> : vector<32x256xf32>
    %91 = tpu.matmul %52, %90, %cst_46 {dimension_numbers = #tpu.dot_dimension_numbers<[1], [0], [0], [1], [0, 0, 1, 1], [], []>} : vector<32x288xf32>, vector<288x256xf32>, vector<32x256xf32> -> vector<32x256xf32>
    %92 = vector.broadcast %54 : vector<32x1xf32> to vector<32x256xf32>
    %93 = arith.addf %91, %92 : vector<32x256xf32>
    %cst_47 = arith.constant 0.000000e+00 : f32
    %94 = vector.broadcast %cst_47 : f32 to vector<32x256xf32>
    %95 = arith.maximumf %93, %94 : vector<32x256xf32>
    %c1_48 = arith.constant 1 : index
    %c0_49 = arith.constant 0 : index
    %c0_50 = arith.constant 0 : index
    %96 = vector.load %arg8[%c1_48, %c0_49, %c0_50] : memref<4x32x288xf32, #tpu.memory_space<vmem>>, vector<1x32x288xf32>
    %97 = vector.shape_cast %96 : vector<1x32x288xf32> to vector<32x288xf32>
    %c1_51 = arith.constant 1 : index
    %c0_52 = arith.constant 0 : index
    %c0_53 = arith.constant 0 : index
    %98 = vector.load %arg9[%c1_51, %c0_52, %c0_53] : memref<4x32x1xf32, #tpu.memory_space<vmem>>, vector<1x32x1xf32>
    %99 = vector.shape_cast %98 : vector<1x32x1xf32> to vector<32x1xf32>
    %c17_i32_54 = arith.constant 17 : i32
    %100 = tpu.dynamic_rotate %95 by %c17_i32_54 dim 1 : vector<32x256xf32>, i32 -> vector<32x256xf32>
    %101 = vector.extract_strided_slice %50 {offsets = [0, 0], sizes = [1, 256], strides = [1, 1]} : vector<9x256xf32> to vector<1x256xf32>
    %102 = vector.broadcast %101 : vector<1x256xf32> to vector<32x256xf32>
    %103 = arith.mulf %100, %102 : vector<32x256xf32>
    %c16_i32_55 = arith.constant 16 : i32
    %104 = tpu.dynamic_rotate %95 by %c16_i32_55 dim 1 : vector<32x256xf32>, i32 -> vector<32x256xf32>
    %105 = vector.extract_strided_slice %50 {offsets = [1, 0], sizes = [1, 256], strides = [1, 1]} : vector<9x256xf32> to vector<1x256xf32>
    %106 = vector.broadcast %105 : vector<1x256xf32> to vector<32x256xf32>
    %107 = arith.mulf %104, %106 : vector<32x256xf32>
    %c15_i32_56 = arith.constant 15 : i32
    %108 = tpu.dynamic_rotate %95 by %c15_i32_56 dim 1 : vector<32x256xf32>, i32 -> vector<32x256xf32>
    %109 = vector.extract_strided_slice %50 {offsets = [2, 0], sizes = [1, 256], strides = [1, 1]} : vector<9x256xf32> to vector<1x256xf32>
    %110 = vector.broadcast %109 : vector<1x256xf32> to vector<32x256xf32>
    %111 = arith.mulf %108, %110 : vector<32x256xf32>
    %c1_i32_57 = arith.constant 1 : i32
    %112 = tpu.dynamic_rotate %95 by %c1_i32_57 dim 1 : vector<32x256xf32>, i32 -> vector<32x256xf32>
    %113 = vector.extract_strided_slice %50 {offsets = [3, 0], sizes = [1, 256], strides = [1, 1]} : vector<9x256xf32> to vector<1x256xf32>
    %114 = vector.broadcast %113 : vector<1x256xf32> to vector<32x256xf32>
    %115 = arith.mulf %112, %114 : vector<32x256xf32>
    %116 = vector.extract_strided_slice %50 {offsets = [4, 0], sizes = [1, 256], strides = [1, 1]} : vector<9x256xf32> to vector<1x256xf32>
    %117 = vector.broadcast %116 : vector<1x256xf32> to vector<32x256xf32>
    %118 = arith.mulf %95, %117 : vector<32x256xf32>
    %c255_i32_58 = arith.constant 255 : i32
    %119 = tpu.dynamic_rotate %95 by %c255_i32_58 dim 1 : vector<32x256xf32>, i32 -> vector<32x256xf32>
    %120 = vector.extract_strided_slice %50 {offsets = [5, 0], sizes = [1, 256], strides = [1, 1]} : vector<9x256xf32> to vector<1x256xf32>
    %121 = vector.broadcast %120 : vector<1x256xf32> to vector<32x256xf32>
    %122 = arith.mulf %119, %121 : vector<32x256xf32>
    %c241_i32_59 = arith.constant 241 : i32
    %123 = tpu.dynamic_rotate %95 by %c241_i32_59 dim 1 : vector<32x256xf32>, i32 -> vector<32x256xf32>
    %124 = vector.extract_strided_slice %50 {offsets = [6, 0], sizes = [1, 256], strides = [1, 1]} : vector<9x256xf32> to vector<1x256xf32>
    %125 = vector.broadcast %124 : vector<1x256xf32> to vector<32x256xf32>
    %126 = arith.mulf %123, %125 : vector<32x256xf32>
    %c240_i32_60 = arith.constant 240 : i32
    %127 = tpu.dynamic_rotate %95 by %c240_i32_60 dim 1 : vector<32x256xf32>, i32 -> vector<32x256xf32>
    %128 = vector.extract_strided_slice %50 {offsets = [7, 0], sizes = [1, 256], strides = [1, 1]} : vector<9x256xf32> to vector<1x256xf32>
    %129 = vector.broadcast %128 : vector<1x256xf32> to vector<32x256xf32>
    %130 = arith.mulf %127, %129 : vector<32x256xf32>
    %c239_i32_61 = arith.constant 239 : i32
    %131 = tpu.dynamic_rotate %95 by %c239_i32_61 dim 1 : vector<32x256xf32>, i32 -> vector<32x256xf32>
    %132 = vector.extract_strided_slice %50 {offsets = [8, 0], sizes = [1, 256], strides = [1, 1]} : vector<9x256xf32> to vector<1x256xf32>
    %133 = vector.broadcast %132 : vector<1x256xf32> to vector<32x256xf32>
    %134 = arith.mulf %131, %133 : vector<32x256xf32>
    %135 = tpu.concatenate %103, %107, %111, %115, %118, %122, %126, %130, %134 in 0 : vector<32x256xf32>, vector<32x256xf32>, vector<32x256xf32>, vector<32x256xf32>, vector<32x256xf32>, vector<32x256xf32>, vector<32x256xf32>, vector<32x256xf32>, vector<32x256xf32> -> vector<288x256xf32>
    %cst_62 = arith.constant dense<0.000000e+00> : vector<32x256xf32>
    %136 = tpu.matmul %97, %135, %cst_62 {dimension_numbers = #tpu.dot_dimension_numbers<[1], [0], [0], [1], [0, 0, 1, 1], [], []>} : vector<32x288xf32>, vector<288x256xf32>, vector<32x256xf32> -> vector<32x256xf32>
    %137 = vector.broadcast %99 : vector<32x1xf32> to vector<32x256xf32>
    %138 = arith.addf %136, %137 : vector<32x256xf32>
    %139 = arith.addf %49, %138 : vector<32x256xf32>
    %c2_63 = arith.constant 2 : index
    %c0_64 = arith.constant 0 : index
    %c0_65 = arith.constant 0 : index
    %140 = vector.load %arg8[%c2_63, %c0_64, %c0_65] : memref<4x32x288xf32, #tpu.memory_space<vmem>>, vector<1x32x288xf32>
    %141 = vector.shape_cast %140 : vector<1x32x288xf32> to vector<32x288xf32>
    %c2_66 = arith.constant 2 : index
    %c0_67 = arith.constant 0 : index
    %c0_68 = arith.constant 0 : index
    %142 = vector.load %arg9[%c2_66, %c0_67, %c0_68] : memref<4x32x1xf32, #tpu.memory_space<vmem>>, vector<1x32x1xf32>
    %143 = vector.shape_cast %142 : vector<1x32x1xf32> to vector<32x1xf32>
    %c17_i32_69 = arith.constant 17 : i32
    %144 = tpu.dynamic_rotate %139 by %c17_i32_69 dim 1 : vector<32x256xf32>, i32 -> vector<32x256xf32>
    %145 = vector.extract_strided_slice %50 {offsets = [0, 0], sizes = [1, 256], strides = [1, 1]} : vector<9x256xf32> to vector<1x256xf32>
    %146 = vector.broadcast %145 : vector<1x256xf32> to vector<32x256xf32>
    %147 = arith.mulf %144, %146 : vector<32x256xf32>
    %c16_i32_70 = arith.constant 16 : i32
    %148 = tpu.dynamic_rotate %139 by %c16_i32_70 dim 1 : vector<32x256xf32>, i32 -> vector<32x256xf32>
    %149 = vector.extract_strided_slice %50 {offsets = [1, 0], sizes = [1, 256], strides = [1, 1]} : vector<9x256xf32> to vector<1x256xf32>
    %150 = vector.broadcast %149 : vector<1x256xf32> to vector<32x256xf32>
    %151 = arith.mulf %148, %150 : vector<32x256xf32>
    %c15_i32_71 = arith.constant 15 : i32
    %152 = tpu.dynamic_rotate %139 by %c15_i32_71 dim 1 : vector<32x256xf32>, i32 -> vector<32x256xf32>
    %153 = vector.extract_strided_slice %50 {offsets = [2, 0], sizes = [1, 256], strides = [1, 1]} : vector<9x256xf32> to vector<1x256xf32>
    %154 = vector.broadcast %153 : vector<1x256xf32> to vector<32x256xf32>
    %155 = arith.mulf %152, %154 : vector<32x256xf32>
    %c1_i32_72 = arith.constant 1 : i32
    %156 = tpu.dynamic_rotate %139 by %c1_i32_72 dim 1 : vector<32x256xf32>, i32 -> vector<32x256xf32>
    %157 = vector.extract_strided_slice %50 {offsets = [3, 0], sizes = [1, 256], strides = [1, 1]} : vector<9x256xf32> to vector<1x256xf32>
    %158 = vector.broadcast %157 : vector<1x256xf32> to vector<32x256xf32>
    %159 = arith.mulf %156, %158 : vector<32x256xf32>
    %160 = vector.extract_strided_slice %50 {offsets = [4, 0], sizes = [1, 256], strides = [1, 1]} : vector<9x256xf32> to vector<1x256xf32>
    %161 = vector.broadcast %160 : vector<1x256xf32> to vector<32x256xf32>
    %162 = arith.mulf %139, %161 : vector<32x256xf32>
    %c255_i32_73 = arith.constant 255 : i32
    %163 = tpu.dynamic_rotate %139 by %c255_i32_73 dim 1 : vector<32x256xf32>, i32 -> vector<32x256xf32>
    %164 = vector.extract_strided_slice %50 {offsets = [5, 0], sizes = [1, 256], strides = [1, 1]} : vector<9x256xf32> to vector<1x256xf32>
    %165 = vector.broadcast %164 : vector<1x256xf32> to vector<32x256xf32>
    %166 = arith.mulf %163, %165 : vector<32x256xf32>
    %c241_i32_74 = arith.constant 241 : i32
    %167 = tpu.dynamic_rotate %139 by %c241_i32_74 dim 1 : vector<32x256xf32>, i32 -> vector<32x256xf32>
    %168 = vector.extract_strided_slice %50 {offsets = [6, 0], sizes = [1, 256], strides = [1, 1]} : vector<9x256xf32> to vector<1x256xf32>
    %169 = vector.broadcast %168 : vector<1x256xf32> to vector<32x256xf32>
    %170 = arith.mulf %167, %169 : vector<32x256xf32>
    %c240_i32_75 = arith.constant 240 : i32
    %171 = tpu.dynamic_rotate %139 by %c240_i32_75 dim 1 : vector<32x256xf32>, i32 -> vector<32x256xf32>
    %172 = vector.extract_strided_slice %50 {offsets = [7, 0], sizes = [1, 256], strides = [1, 1]} : vector<9x256xf32> to vector<1x256xf32>
    %173 = vector.broadcast %172 : vector<1x256xf32> to vector<32x256xf32>
    %174 = arith.mulf %171, %173 : vector<32x256xf32>
    %c239_i32_76 = arith.constant 239 : i32
    %175 = tpu.dynamic_rotate %139 by %c239_i32_76 dim 1 : vector<32x256xf32>, i32 -> vector<32x256xf32>
    %176 = vector.extract_strided_slice %50 {offsets = [8, 0], sizes = [1, 256], strides = [1, 1]} : vector<9x256xf32> to vector<1x256xf32>
    %177 = vector.broadcast %176 : vector<1x256xf32> to vector<32x256xf32>
    %178 = arith.mulf %175, %177 : vector<32x256xf32>
    %179 = tpu.concatenate %147, %151, %155, %159, %162, %166, %170, %174, %178 in 0 : vector<32x256xf32>, vector<32x256xf32>, vector<32x256xf32>, vector<32x256xf32>, vector<32x256xf32>, vector<32x256xf32>, vector<32x256xf32>, vector<32x256xf32>, vector<32x256xf32> -> vector<288x256xf32>
    %cst_77 = arith.constant dense<0.000000e+00> : vector<32x256xf32>
    %180 = tpu.matmul %141, %179, %cst_77 {dimension_numbers = #tpu.dot_dimension_numbers<[1], [0], [0], [1], [0, 0, 1, 1], [], []>} : vector<32x288xf32>, vector<288x256xf32>, vector<32x256xf32> -> vector<32x256xf32>
    %181 = vector.broadcast %143 : vector<32x1xf32> to vector<32x256xf32>
    %182 = arith.addf %180, %181 : vector<32x256xf32>
    %cst_78 = arith.constant 0.000000e+00 : f32
    %183 = vector.broadcast %cst_78 : f32 to vector<32x256xf32>
    %184 = arith.maximumf %182, %183 : vector<32x256xf32>
    %c3_79 = arith.constant 3 : index
    %c0_80 = arith.constant 0 : index
    %c0_81 = arith.constant 0 : index
    %185 = vector.load %arg8[%c3_79, %c0_80, %c0_81] : memref<4x32x288xf32, #tpu.memory_space<vmem>>, vector<1x32x288xf32>
    %186 = vector.shape_cast %185 : vector<1x32x288xf32> to vector<32x288xf32>
    %c3_82 = arith.constant 3 : index
    %c0_83 = arith.constant 0 : index
    %c0_84 = arith.constant 0 : index
    %187 = vector.load %arg9[%c3_82, %c0_83, %c0_84] : memref<4x32x1xf32, #tpu.memory_space<vmem>>, vector<1x32x1xf32>
    %188 = vector.shape_cast %187 : vector<1x32x1xf32> to vector<32x1xf32>
    %c17_i32_85 = arith.constant 17 : i32
    %189 = tpu.dynamic_rotate %184 by %c17_i32_85 dim 1 : vector<32x256xf32>, i32 -> vector<32x256xf32>
    %190 = vector.extract_strided_slice %50 {offsets = [0, 0], sizes = [1, 256], strides = [1, 1]} : vector<9x256xf32> to vector<1x256xf32>
    %191 = vector.broadcast %190 : vector<1x256xf32> to vector<32x256xf32>
    %192 = arith.mulf %189, %191 : vector<32x256xf32>
    %c16_i32_86 = arith.constant 16 : i32
    %193 = tpu.dynamic_rotate %184 by %c16_i32_86 dim 1 : vector<32x256xf32>, i32 -> vector<32x256xf32>
    %194 = vector.extract_strided_slice %50 {offsets = [1, 0], sizes = [1, 256], strides = [1, 1]} : vector<9x256xf32> to vector<1x256xf32>
    %195 = vector.broadcast %194 : vector<1x256xf32> to vector<32x256xf32>
    %196 = arith.mulf %193, %195 : vector<32x256xf32>
    %c15_i32_87 = arith.constant 15 : i32
    %197 = tpu.dynamic_rotate %184 by %c15_i32_87 dim 1 : vector<32x256xf32>, i32 -> vector<32x256xf32>
    %198 = vector.extract_strided_slice %50 {offsets = [2, 0], sizes = [1, 256], strides = [1, 1]} : vector<9x256xf32> to vector<1x256xf32>
    %199 = vector.broadcast %198 : vector<1x256xf32> to vector<32x256xf32>
    %200 = arith.mulf %197, %199 : vector<32x256xf32>
    %c1_i32_88 = arith.constant 1 : i32
    %201 = tpu.dynamic_rotate %184 by %c1_i32_88 dim 1 : vector<32x256xf32>, i32 -> vector<32x256xf32>
    %202 = vector.extract_strided_slice %50 {offsets = [3, 0], sizes = [1, 256], strides = [1, 1]} : vector<9x256xf32> to vector<1x256xf32>
    %203 = vector.broadcast %202 : vector<1x256xf32> to vector<32x256xf32>
    %204 = arith.mulf %201, %203 : vector<32x256xf32>
    %205 = vector.extract_strided_slice %50 {offsets = [4, 0], sizes = [1, 256], strides = [1, 1]} : vector<9x256xf32> to vector<1x256xf32>
    %206 = vector.broadcast %205 : vector<1x256xf32> to vector<32x256xf32>
    %207 = arith.mulf %184, %206 : vector<32x256xf32>
    %c255_i32_89 = arith.constant 255 : i32
    %208 = tpu.dynamic_rotate %184 by %c255_i32_89 dim 1 : vector<32x256xf32>, i32 -> vector<32x256xf32>
    %209 = vector.extract_strided_slice %50 {offsets = [5, 0], sizes = [1, 256], strides = [1, 1]} : vector<9x256xf32> to vector<1x256xf32>
    %210 = vector.broadcast %209 : vector<1x256xf32> to vector<32x256xf32>
    %211 = arith.mulf %208, %210 : vector<32x256xf32>
    %c241_i32_90 = arith.constant 241 : i32
    %212 = tpu.dynamic_rotate %184 by %c241_i32_90 dim 1 : vector<32x256xf32>, i32 -> vector<32x256xf32>
    %213 = vector.extract_strided_slice %50 {offsets = [6, 0], sizes = [1, 256], strides = [1, 1]} : vector<9x256xf32> to vector<1x256xf32>
    %214 = vector.broadcast %213 : vector<1x256xf32> to vector<32x256xf32>
    %215 = arith.mulf %212, %214 : vector<32x256xf32>
    %c240_i32_91 = arith.constant 240 : i32
    %216 = tpu.dynamic_rotate %184 by %c240_i32_91 dim 1 : vector<32x256xf32>, i32 -> vector<32x256xf32>
    %217 = vector.extract_strided_slice %50 {offsets = [7, 0], sizes = [1, 256], strides = [1, 1]} : vector<9x256xf32> to vector<1x256xf32>
    %218 = vector.broadcast %217 : vector<1x256xf32> to vector<32x256xf32>
    %219 = arith.mulf %216, %218 : vector<32x256xf32>
    %c239_i32_92 = arith.constant 239 : i32
    %220 = tpu.dynamic_rotate %184 by %c239_i32_92 dim 1 : vector<32x256xf32>, i32 -> vector<32x256xf32>
    %221 = vector.extract_strided_slice %50 {offsets = [8, 0], sizes = [1, 256], strides = [1, 1]} : vector<9x256xf32> to vector<1x256xf32>
    %222 = vector.broadcast %221 : vector<1x256xf32> to vector<32x256xf32>
    %223 = arith.mulf %220, %222 : vector<32x256xf32>
    %224 = tpu.concatenate %192, %196, %200, %204, %207, %211, %215, %219, %223 in 0 : vector<32x256xf32>, vector<32x256xf32>, vector<32x256xf32>, vector<32x256xf32>, vector<32x256xf32>, vector<32x256xf32>, vector<32x256xf32>, vector<32x256xf32>, vector<32x256xf32> -> vector<288x256xf32>
    %cst_93 = arith.constant dense<0.000000e+00> : vector<32x256xf32>
    %225 = tpu.matmul %186, %224, %cst_93 {dimension_numbers = #tpu.dot_dimension_numbers<[1], [0], [0], [1], [0, 0, 1, 1], [], []>} : vector<32x288xf32>, vector<288x256xf32>, vector<32x256xf32> -> vector<32x256xf32>
    %226 = vector.broadcast %188 : vector<32x1xf32> to vector<32x256xf32>
    %227 = arith.addf %225, %226 : vector<32x256xf32>
    %228 = arith.addf %139, %227 : vector<32x256xf32>
    %c0_94 = arith.constant 0 : index
    %c0_95 = arith.constant 0 : index
    %229 = vector.load %arg10[%c0_94, %c0_95] : memref<8x288xf32, #tpu.memory_space<vmem>>, vector<8x288xf32>
    %c0_96 = arith.constant 0 : index
    %c0_97 = arith.constant 0 : index
    %230 = vector.load %arg11[%c0_96, %c0_97] : memref<8x1xf32, #tpu.memory_space<vmem>>, vector<8x1xf32>
    %c17_i32_98 = arith.constant 17 : i32
    %231 = tpu.dynamic_rotate %228 by %c17_i32_98 dim 1 : vector<32x256xf32>, i32 -> vector<32x256xf32>
    %232 = vector.extract_strided_slice %50 {offsets = [0, 0], sizes = [1, 256], strides = [1, 1]} : vector<9x256xf32> to vector<1x256xf32>
    %233 = vector.broadcast %232 : vector<1x256xf32> to vector<32x256xf32>
    %234 = arith.mulf %231, %233 : vector<32x256xf32>
    %c16_i32_99 = arith.constant 16 : i32
    %235 = tpu.dynamic_rotate %228 by %c16_i32_99 dim 1 : vector<32x256xf32>, i32 -> vector<32x256xf32>
    %236 = vector.extract_strided_slice %50 {offsets = [1, 0], sizes = [1, 256], strides = [1, 1]} : vector<9x256xf32> to vector<1x256xf32>
    %237 = vector.broadcast %236 : vector<1x256xf32> to vector<32x256xf32>
    %238 = arith.mulf %235, %237 : vector<32x256xf32>
    %c15_i32_100 = arith.constant 15 : i32
    %239 = tpu.dynamic_rotate %228 by %c15_i32_100 dim 1 : vector<32x256xf32>, i32 -> vector<32x256xf32>
    %240 = vector.extract_strided_slice %50 {offsets = [2, 0], sizes = [1, 256], strides = [1, 1]} : vector<9x256xf32> to vector<1x256xf32>
    %241 = vector.broadcast %240 : vector<1x256xf32> to vector<32x256xf32>
    %242 = arith.mulf %239, %241 : vector<32x256xf32>
    %c1_i32_101 = arith.constant 1 : i32
    %243 = tpu.dynamic_rotate %228 by %c1_i32_101 dim 1 : vector<32x256xf32>, i32 -> vector<32x256xf32>
    %244 = vector.extract_strided_slice %50 {offsets = [3, 0], sizes = [1, 256], strides = [1, 1]} : vector<9x256xf32> to vector<1x256xf32>
    %245 = vector.broadcast %244 : vector<1x256xf32> to vector<32x256xf32>
    %246 = arith.mulf %243, %245 : vector<32x256xf32>
    %247 = vector.extract_strided_slice %50 {offsets = [4, 0], sizes = [1, 256], strides = [1, 1]} : vector<9x256xf32> to vector<1x256xf32>
    %248 = vector.broadcast %247 : vector<1x256xf32> to vector<32x256xf32>
    %249 = arith.mulf %228, %248 : vector<32x256xf32>
    %c255_i32_102 = arith.constant 255 : i32
    %250 = tpu.dynamic_rotate %228 by %c255_i32_102 dim 1 : vector<32x256xf32>, i32 -> vector<32x256xf32>
    %251 = vector.extract_strided_slice %50 {offsets = [5, 0], sizes = [1, 256], strides = [1, 1]} : vector<9x256xf32> to vector<1x256xf32>
    %252 = vector.broadcast %251 : vector<1x256xf32> to vector<32x256xf32>
    %253 = arith.mulf %250, %252 : vector<32x256xf32>
    %c241_i32_103 = arith.constant 241 : i32
    %254 = tpu.dynamic_rotate %228 by %c241_i32_103 dim 1 : vector<32x256xf32>, i32 -> vector<32x256xf32>
    %255 = vector.extract_strided_slice %50 {offsets = [6, 0], sizes = [1, 256], strides = [1, 1]} : vector<9x256xf32> to vector<1x256xf32>
    %256 = vector.broadcast %255 : vector<1x256xf32> to vector<32x256xf32>
    %257 = arith.mulf %254, %256 : vector<32x256xf32>
    %c240_i32_104 = arith.constant 240 : i32
    %258 = tpu.dynamic_rotate %228 by %c240_i32_104 dim 1 : vector<32x256xf32>, i32 -> vector<32x256xf32>
    %259 = vector.extract_strided_slice %50 {offsets = [7, 0], sizes = [1, 256], strides = [1, 1]} : vector<9x256xf32> to vector<1x256xf32>
    %260 = vector.broadcast %259 : vector<1x256xf32> to vector<32x256xf32>
    %261 = arith.mulf %258, %260 : vector<32x256xf32>
    %c239_i32_105 = arith.constant 239 : i32
    %262 = tpu.dynamic_rotate %228 by %c239_i32_105 dim 1 : vector<32x256xf32>, i32 -> vector<32x256xf32>
    %263 = vector.extract_strided_slice %50 {offsets = [8, 0], sizes = [1, 256], strides = [1, 1]} : vector<9x256xf32> to vector<1x256xf32>
    %264 = vector.broadcast %263 : vector<1x256xf32> to vector<32x256xf32>
    %265 = arith.mulf %262, %264 : vector<32x256xf32>
    %266 = tpu.concatenate %234, %238, %242, %246, %249, %253, %257, %261, %265 in 0 : vector<32x256xf32>, vector<32x256xf32>, vector<32x256xf32>, vector<32x256xf32>, vector<32x256xf32>, vector<32x256xf32>, vector<32x256xf32>, vector<32x256xf32>, vector<32x256xf32> -> vector<288x256xf32>
    %cst_106 = arith.constant dense<0.000000e+00> : vector<8x256xf32>
    %267 = tpu.matmul %229, %266, %cst_106 {dimension_numbers = #tpu.dot_dimension_numbers<[1], [0], [0], [1], [0, 0, 1, 1], [], []>} : vector<8x288xf32>, vector<288x256xf32>, vector<8x256xf32> -> vector<8x256xf32>
    %268 = vector.broadcast %230 : vector<8x1xf32> to vector<8x256xf32>
    %269 = arith.addf %267, %268 : vector<8x256xf32>
    %c0_107 = arith.constant 0 : index
    %c0_108 = arith.constant 0 : index
    %c0_109 = arith.constant 0 : index
    %270 = vector.load %arg12[%c0_107, %c0_108, %c0_109] : memref<1x8x256xf32, #tpu.memory_space<vmem>>, vector<1x8x256xf32>
    %271 = vector.shape_cast %270 : vector<1x8x256xf32> to vector<8x256xf32>
    %272 = vector.shape_cast %269 : vector<8x256xf32> to vector<1x8x256xf32>
    tpu.vector_store %arg12[%c0_107, %c0_108, %c0_109], %272 {strides = array<i32>} : memref<1x8x256xf32, #tpu.memory_space<vmem>>, vector<1x8x256xf32>,
    return
  }
  func.func @transform_0(%arg0: i32) -> (i32, i32, i32) {
    %c0_i32 = arith.constant 0 : i32
    %c0_i32_0 = arith.constant 0 : i32
    %c0_i32_1 = arith.constant 0 : i32
    return %arg0, %c0_i32, %c0_i32_0 : i32, i32, i32
  }
  func.func @transform_1(%arg0: i32) -> (i32, i32, i32) {
    %c0_i32 = arith.constant 0 : i32
    %c0_i32_0 = arith.constant 0 : i32
    %c0_i32_1 = arith.constant 0 : i32
    return %arg0, %c0_i32, %c0_i32_0 : i32, i32, i32
  }
  func.func @transform_2(%arg0: i32) -> (i32, i32) {
    %c0_i32 = arith.constant 0 : i32
    %c0_i32_0 = arith.constant 0 : i32
    %c0_i32_1 = arith.constant 0 : i32
    return %c0_i32, %c0_i32_0 : i32, i32
  }
  func.func @transform_3(%arg0: i32) -> (i32, i32, i32) {
    %c0_i32 = arith.constant 0 : i32
    %c0_i32_0 = arith.constant 0 : i32
    %c0_i32_1 = arith.constant 0 : i32
    return %arg0, %c0_i32, %c0_i32_0 : i32, i32, i32
  }
  func.func @transform_4(%arg0: i32) -> (i32, i32, i32) {
    %c0_i32 = arith.constant 0 : i32
    %c0_i32_0 = arith.constant 0 : i32
    %c0_i32_1 = arith.constant 0 : i32
    %c0_i32_2 = arith.constant 0 : i32
    return %c0_i32, %c0_i32_0, %c0_i32_1 : i32, i32, i32
  }
  func.func @transform_5(%arg0: i32) -> (i32, i32, i32) {
    %c0_i32 = arith.constant 0 : i32
    %c0_i32_0 = arith.constant 0 : i32
    %c0_i32_1 = arith.constant 0 : i32
    %c0_i32_2 = arith.constant 0 : i32
    return %c0_i32, %c0_i32_0, %c0_i32_1 : i32, i32, i32
  }
  func.func @transform_6(%arg0: i32) -> (i32, i32) {
    %c0_i32 = arith.constant 0 : i32
    %c0_i32_0 = arith.constant 0 : i32
    %c0_i32_1 = arith.constant 0 : i32
    return %c0_i32, %c0_i32_0 : i32, i32
  }
  func.func @transform_7(%arg0: i32) -> (i32, i32, i32) {
    %c0_i32 = arith.constant 0 : i32
    %c0_i32_0 = arith.constant 0 : i32
    %c0_i32_1 = arith.constant 0 : i32
    %c0_i32_2 = arith.constant 0 : i32
    return %c0_i32, %c0_i32_0, %c0_i32_1 : i32, i32, i32
  }
  func.func @transform_8(%arg0: i32) -> (i32, i32, i32) {
    %c0_i32 = arith.constant 0 : i32
    %c0_i32_0 = arith.constant 0 : i32
    %c0_i32_1 = arith.constant 0 : i32
    %c0_i32_2 = arith.constant 0 : i32
    return %c0_i32, %c0_i32_0, %c0_i32_1 : i32, i32, i32
  }
  func.func @transform_9(%arg0: i32) -> (i32, i32) {
    %c0_i32 = arith.constant 0 : i32
    %c0_i32_0 = arith.constant 0 : i32
    %c0_i32_1 = arith.constant 0 : i32
    return %c0_i32, %c0_i32_0 : i32, i32
  }
  func.func @transform_10(%arg0: i32) -> (i32, i32) {
    %c0_i32 = arith.constant 0 : i32
    %c0_i32_0 = arith.constant 0 : i32
    %c0_i32_1 = arith.constant 0 : i32
    return %c0_i32, %c0_i32_0 : i32, i32
  }
  func.func @transform_11(%arg0: i32) -> (i32, i32, i32) {
    %c0_i32 = arith.constant 0 : i32
    %c0_i32_0 = arith.constant 0 : i32
    %c0_i32_1 = arith.constant 0 : i32
    return %arg0, %c0_i32, %c0_i32_0 : i32, i32, i32
  }
}

</mosaic_0001>

<bundles_post_ra>
// kernel: tpu_custom_call.1
= control target key start
LH: loop header
LB: loop body
LE: loop exit
PB: predicated region body
PF: predicated region fallthrough
CT: control target
= control target key end

     0   :  { %s7136_s0 = inlined_call_operand.vmem [shape: f32[2,8,256], index: 0, kind: input, shape index: {}]   ;;  %s7137_s1 = inlined_call_operand.vmem [shape: f32[2,32,256], index: 1, kind: input, shape index: {}]   ;;  %s7138_s2 = inlined_call_operand.vmem [shape: f32[64,8], index: 2, kind: input, shape index: {}]   ;;  %s7139_s3 = inlined_call_operand.vmem [shape: f32[2,64,1], index: 3, kind: input, shape index: {}]   ;;  %s7140_s4 = inlined_call_operand.vmem [shape: f32[4,32,32], index: 4, kind: input, shape index: {}]   ;;  %s7141_s5 = inlined_call_operand.vmem [shape: f32[4,32,1], index: 5, kind: input, shape index: {}]   ;;  %s7142_s6 = inlined_call_operand.vmem [shape: f32[9,256], index: 6, kind: input, shape index: {}]   ;;  %s7143_s7 = inlined_call_operand.hbm [shape: f32[4,32,288], index: 7, kind: input, shape index: {}]   ;;  %s7144_s8 = inlined_call_operand.vmem [shape: f32[4,32,1], index: 8, kind: input, shape index: {}]   ;;  %s7145_s9 = inlined_call_operand.vmem [shape: f32[8,288], index: 9, kind: input, shape index: {}]   ;;  %s7146_s10 = inlined_call_operand.vmem [shape: f32[8,1], index: 10, kind: input, shape index: {}]   ;;  %s7147_s11 = inlined_call_operand.hbm [shape: f32[2,8,256], index: 11, kind: output, shape index: {}]  }
   0x1   :  { %7236 = sst [smem:[#allocation33_spill]] %s7136_s0 }
   0x2   :  { %7237 = sst [smem:[#allocation34_spill]] %s7137_s1 }
   0x3   :  { %7238 = sst [smem:[#allocation35_spill]] %s7138_s2 }
   0x4   :  { %7239 = sst [smem:[#allocation36_spill]] %s7143_s7 }
   0x5   :  { %16 = vsyncpa [#allocation3], 0 }
   0x6   :  { %17 = vsyncpa [#allocation4], 0 }
   0x7   :  { %19 = vsyncpa [#allocation4 + $0x1], 0  ;;  %s3974_s17 = smov 0   ;;  %s3976_s18 = smov 0  }
   0x8   :  { %s3978_s19 = smov 0   ;;  %s3980_s20 = smov 0  }
   0x9 LB: > { %s3995_s21 = sadd.s32 4294967295, %s3900_s20   ;;  %s3594_s22 = sadd.s32 4294967294, %s3900_s20   ;;  %s3900_s20 = sphi %s3980_s20, %s7384_s20   ;;  %s3896_s19 = sphi %s3978_s19, %s7383_s19   ;;  %s3892_s18 = sphi %s3976_s18, %s7382_s18   ;;  %s3888_s17 = sphi %s3974_s17, %s7381_s17  }
   0xa   : > { %s3999_s23 = sadd.s32 1, %s3900_s20   ;;  %s278_s24 = sadd.s32 1, %s3896_s19 }
   0xb   : > { %s275_s25 = ssub.s32 %s3900_s20, %s3999_s23  ;;  %p288_p0 = scmp.ne.s32.totalorder %s3896_s19, %s3892_s18 }
   0xc   : > { %p276_p1 = scmp.eq.s32.totalorder %s275_s25, 0  ;;  %p289_p2 = scmp.eq.s32.totalorder %s3995_s21, 1 }
   0xd   : > { %p294_p3 = scmp.ne.s32.totalorder %s3892_s18, %s3888_s17  ;;  %p295_p4 = scmp.eq.s32.totalorder %s3594_s22, 1 }
   0xe   : > { %s4010_s26 = scalar_select %p276_p1, %s3896_s19, %s278_s24  }
   0xf   : > { %p4012_p5 = por %p289_p2, %p288_p0  ;;  %p4016_p6 = por %p295_p4, %p294_p3 }
  0x10   : > { %p3595_p7 = scmp.ge.s32.totalorder %s3900_s20, 1  ;;  %p302_p8 = scmp.lt.s32.totalorder %s3900_s20, 3 }
  0x11   : > { %p3748_p9 = scmp.eq.s32.totalorder %s3995_s21, 0  ;;  %s7242_s7 = sld [smem:[#allocation36_spill]] }
  0x12   : > { %p303_p10 = pnand %p3595_p7, %p302_p8  ;;  %s3902_s13 = smov [#allocation2]  }
  0x13   : > { %s327_s14 = sshll.u32 %s3902_s13, 4  ;;  %s3903_s15 = smov 384   ;;  %s328_s14 = int_to_ptr.vmem [resolvable:$true] %s327_s14 }
  0x14   : > { %p3740_p11 = pneg %p303_p10  ;;  %s3904_s16 = smov 24  }
  0x15   : > { %376 = sbr.rel (%p303_p10) target bundleno = 2961 (0xb91), region = 64 }
  0x16   : > { %p3741_p12 = pnand %p3748_p9, %p3740_p11 }
  0x17   : > { %s325_s12 = sshll.u32 %s7242_s7, 4  ;;  %s326_s12 = int_to_ptr.hbm [resolvable:$true] %s325_s12 }
  0x18   : > { %3743 = dma.hbm_to_vmem [thread:$0]  (!%p3741_p12), %s326_s12, 6144, %s328_s14, [#allocation3], %s3903_s15, %s3903_s15, %s3904_s16  }
  0x1a   : > { %3879 = dma.done.wait (%p3748_p9), [#allocation3], 6144  }
  0x1b   : > { %3881 = vsyncadd (%p3748_p9), [#allocation3], 4294961152  ;;  %p427_p13 = scmp.lt.s32.totalorder %s3995_s21, 1  ;;  %v3905_v0 = vmov 0   ;;  %s7243_s0 = sld [smem:[#allocation33_spill]]  ;;  %vm500_vm0 = vcmask 64512  }
  0x1c   : > { %3796 = vset.pattern.permute.xlu1 %v3905_v0  ;;  %3795 = vset.pattern.permute.xlu0 %v3905_v0  ;;  %s7244_s2 = sld [smem:[#allocation35_spill]]  ;;  %v646_v14 = vld [vmem:[%s7141_s5 + $0x18] sm:$0xff]  ;;  %v644_v15 = vld [vmem:[%s7141_s5 + $0x8] sm:$0xff]  ;;  %v645_v17 = vld [vmem:[%s7141_s5 + $0x10] sm:$0xff]  ;;  %vm667_vm1 = vcmask 261120   ;;  %s7154_s13 = smov 113  }
  0x1d   : > { %s4034_s22 = scalar_select %p427_p13, %s3995_s21, 1  ;;  %3797 = vset.pattern.permute.xlu2 %v3905_v0  ;;  %v643_v18 = vld [vmem:[%s7141_s5] sm:$0xff]  ;;  %v3637_v19 = vld [vmem:[%s7141_s5 + $0x30] sm:$0xff]  ;;  %v3638_v21 = vld [vmem:[%s7141_s5 + $0x38] sm:$0xff] }
  0x1e   : > { %v3636_v22 = vld [vmem:[%s7141_s5 + $0x28] sm:$0xff]  ;;  %v3654_v23 = vld [vmem:[%s7141_s5 + $0x58] sm:$0xff]  ;;  %v3635_v25 = vld [vmem:[%s7141_s5 + $0x20] sm:$0xff]  ;;  %s7245_s1 = sld [smem:[#allocation34_spill]]  ;;  %s7187_s14 = smov 16  }
  0x1f   : > { %s3731_s24 = sshll.u32 %s4034_s22, 6  ;;  %s3730_s25 = sshll.u32 %s4034_s22, 4  ;;  %v3653_v26 = vld [vmem:[%s7141_s5 + $0x50] sm:$0xff]  ;;  %v3651_v27 = vld [vmem:[%s7141_s5 + $0x40] sm:$0xff]  ;;  %v3652_v29 = vld [vmem:[%s7141_s5 + $0x48] sm:$0xff] }
  0x20   : > { %s441_s12 = scalar_lea.vmem %s7139_s3, %s3731_s24  ;;  %v3670_v30 = vld [vmem:[%s7141_s5 + $0x78] sm:$0xff]  ;;  %v3668_v31 = vld [vmem:[%s7141_s5 + $0x68] sm:$0xff]  ;;  %v3669_v33 = vld [vmem:[%s7141_s5 + $0x70] sm:$0xff]  ;;  %s7158_s22 = smov 15  }
  0x21   : > { %s431_s15 = scalar_lea.vmem %s7243_s0, %s3730_s25  ;;  %v455_v1 = vld [vmem:[%s441_s12 + $0x18] sm:$0xff]  ;;  %v454_v6 = vld [vmem:[%s441_s12 + $0x10] sm:$0xff]  ;;  %v457_v7 = vld [vmem:[%s441_s12 + $0x28] sm:$0xff]  ;;  %s7148_s16 = smov 17  }
  0x22   : > { %v442_v2 = vld [vmem:[%s431_s15] sm:$0xff]  ;;  %v443_v3 = vld [vmem:[%s431_s15 + $0x8] sm:$0xff]  ;;  %477 = vperm.xlu1 %3796, %v455_v1   ;;  %v459_v5 = vld [vmem:[%s441_s12 + $0x38] sm:$0xff]  ;;  %472 = vperm.xlu2 %3797, %v454_v6   ;;  %s7150_s15 = smov 127   ;;  %s3913_s25 = smov 111  }
  0x23   : > { %540 = vmatpush.msra.mxu0 %v442_v2  ;;  %v444_v4 = vld [vmem:[%s7244_s2] sm:$0xff]  ;;  %581 = vmatpush.msra.mxu1 %v443_v3  ;;  %v445_v8 = vld [vmem:[%s7244_s2 + $0x8] sm:$0xff]  ;;  %v458_v9 = vld [vmem:[%s441_s12 + $0x30] sm:$0xff]  ;;  %s7268_s7 = smov 127   ;;  %s7273_s29 = smov 17  }
  0x24   : > { %3607 = vmatmul.msk.f32.vlgmr.msra.gmra.mxu0 %vm500_vm0, %v444_v4  ;;  %3615 = vmatmul.msk.f32.vlgmr.msra.gmra.mxu1 %vm500_vm0, %v444_v4  ;;  %v456_v10 = vld [vmem:[%s441_s12 + $0x20] sm:$0xff]  ;;  %v446_v12 = vld [vmem:[%s7244_s2 + $0x10] sm:$0xff]  ;;  %v453_v13 = vld [vmem:[%s441_s12 + $0x8] sm:$0xff]  ;;  %s4143_s30 = scalar_lea.vmem %s7245_s1, %s3731_s24  ;;  %s7152_s24 = smov 112  }
  0x25   : > { %497 = vperm.xlu0 %3795, %v459_v5   ;;  %v452_v11 = vld [vmem:[%s441_s12] sm:$0xff]  ;;  %v447_v16 = vld [vmem:[%s7244_s2 + $0x18] sm:$0xff]  ;;  %v449_v24 = vld [vmem:[%s7244_s2 + $0x28] sm:$0xff]  ;;  %s7313_s12 = smov 16  }
  0x26   : > { %v448_v20 = vld [vmem:[%s7244_s2 + $0x20] sm:$0xff]  ;;  %v450_v28 = vld [vmem:[%s7244_s2 + $0x30] sm:$0xff]  ;;  %v451_v32 = vld [vmem:[%s7244_s2 + $0x38] sm:$0xff] }
  0x27   : > { %v3667_v34 = vld [vmem:[%s7141_s5 + $0x60] sm:$0xff]  ;;  %v621_v3 = vld [vmem:[%s4143_s30 + $0x30] sm:$0xff] }
  0x28   : > { %v619_v4 = vld [vmem:[%s4143_s30 + $0x20] sm:$0xff] }
  0x2a   : > { %487 = vperm.xlu1 %3796, %v457_v7   ;;  %482 = vperm.xlu2 %3797, %v456_v10   ;;  %v622_v7 = vld [vmem:[%s4143_s30 + $0x38] sm:$0xff] }
  0x2c   : > { %3608 = vmatmul.msk.f32.gmra.mxu0 %vm500_vm0, %v445_v8  ;;  %3616 = vmatmul.msk.f32.gmra.mxu1 %vm500_vm0, %v445_v8  ;;  %v620_v8 = vld [vmem:[%s4143_s30 + $0x28] sm:$0xff] }
  0x2d   : > { %492 = vperm.xlu0 %3795, %v458_v9  }
  0x32   : > { %462 = vperm.xlu1 %3796, %v452_v11   ;;  %664 = vperm.xlu2 %3797, %v646_v14   ;;  %v617_v11 = vld [vmem:[%s4143_s30 + $0x10] sm:$0xff] }
  0x34   : > { %3609 = vmatmul.msk.f32.gmra.mxu0 %vm500_vm0, %v446_v12  ;;  %3617 = vmatmul.msk.f32.gmra.mxu1 %vm500_vm0, %v446_v12 }
  0x35   : > { %467 = vperm.xlu0 %3795, %v453_v13  }
  0x3a   : > { %654 = vperm.xlu1 %3796, %v644_v15   ;;  %649 = vperm.xlu2 %3797, %v643_v18  }
  0x3c   : > { %3610 = vmatmul.msk.f32.gmra.mxu0 %vm500_vm0, %v447_v16  ;;  %3618 = vmatmul.msk.f32.gmra.mxu1 %vm500_vm0, %v447_v16  ;;  %v618_v16 = vld [vmem:[%s4143_s30 + $0x18] sm:$0xff] }
  0x3d   : > { %659 = vperm.xlu0 %3795, %v645_v17  }
  0x42   : > { %768 = vperm.xlu1 %3796, %v3637_v19   ;;  %763 = vperm.xlu2 %3797, %v3636_v22  }
  0x44   : > { %3611 = vmatmul.msk.f32.gmra.mxu0 %vm500_vm0, %v448_v20  ;;  %3619 = vmatmul.msk.f32.gmra.mxu1 %vm500_vm0, %v448_v20 }
  0x45   : > { %773 = vperm.xlu0 %3795, %v3638_v21   ;;  %v615_v21 = vld [vmem:[%s4143_s30] sm:$0xff] }
  0x4a   : > { %881 = vperm.xlu1 %3796, %v3654_v23   ;;  %876 = vperm.xlu2 %3797, %v3653_v26   ;;  %v616_v26 = vld [vmem:[%s4143_s30 + $0x8] sm:$0xff]  ;;  %s7156_s30 = smov 1  }
  0x4c   : > { %3612 = vmatmul.msk.f32.gmra.mxu0 %vm500_vm0, %v449_v24  ;;  %3620 = vmatmul.msk.f32.gmra.mxu1 %vm500_vm0, %v449_v24 }
  0x4d   : > { %758 = vperm.xlu0 %3795, %v3635_v25  }
  0x52   : > { %866 = vperm.xlu1 %3796, %v3651_v27   ;;  %989 = vperm.xlu2 %3797, %v3670_v30  }
  0x54   : > { %3613 = vmatmul.msk.f32.gmra.mxu0 %vm500_vm0, %v450_v28  ;;  %3621 = vmatmul.msk.f32.gmra.mxu1 %vm500_vm0, %v450_v28 }
  0x55   : > { %871 = vperm.xlu0 %3795, %v3652_v29  }
  0x5a   : > { %979 = vperm.xlu1 %3796, %v3668_v31   ;;  %974 = vperm.xlu2 %3797, %v3667_v34  }
  0x5c   : > { %3614 = vmatmul.msk.f32.gmra.mxu0 %vm500_vm0, %v451_v32  ;;  %3622 = vmatmul.msk.f32.gmra.mxu1 %vm500_vm0, %v451_v32 }
  0x5d   : > { %984 = vperm.xlu0 %3795, %v3669_v33  }
  0x7c   : > { %v473_v49 = vpop.permute.xlu2 %472 }
  0x84   : > { %v483_v57 = vpop.permute.xlu2 %482 }
  0x94   : > { %v478_v48 = vpop.permute.xlu1 %477 }
  0x97   : > { %v498_v47 = vpop.permute.xlu0 %497 }
  0x9c   : > { %v488_v54 = vpop.permute.xlu1 %487 }
  0x9f   : > { %v493_v52 = vpop.permute.xlu0 %492 }
  0xa1   : > { %v4134_v35 = vpop.f32.mrf.mxu0  ;;  %v4136_v36 = vpop.f32.mrf.mxu1 }
  0xa4   : > { %v463_v30 = vpop.permute.xlu1 %462 }
  0xa7   : > { %v468_v22 = vpop.permute.xlu0 %467 }
  0xa9   : > { %v545_v37 = vpop.f32.mrf.mxu0  ;;  %v586_v38 = vpop.f32.mrf.mxu1 }
  0xaa   : > { %v546_v31 = vadd.f32 %v545_v37, %v468_v22  ;;  %v587_v34 = vadd.f32 %v586_v38, %v468_v22 }
  0xb1   : > { %v548_v39 = vpop.f32.mrf.mxu0  ;;  %v589_v40 = vpop.f32.mrf.mxu1 }
  0xb2   : > { %v549_v23 = vadd.f32 %v548_v39, %v473_v49  ;;  %v590_v27 = vadd.f32 %v589_v40, %v473_v49  ;;  %v543_v40 = vadd.f32 %v4134_v35, %v463_v30  ;;  %v640_v35 = vld [vmem:[%s7140_s4 + $0x8] sm:$0xff] }
  0xb9   : > { %v551_v41 = vpop.f32.mrf.mxu0  ;;  %v592_v42 = vpop.f32.mrf.mxu1 }
  0xba   : > { %v552_v12 = vadd.f32 %v551_v41, %v478_v48  ;;  %v593_v17 = vadd.f32 %v592_v42, %v478_v48 }
  0xc1   : > { %v554_v43 = vpop.f32.mrf.mxu0  ;;  %v595_v44 = vpop.f32.mrf.mxu1 }
  0xc2   : > { %v555_v60 = vadd.f32 %v554_v43, %v483_v57  ;;  %v596_v0 = vadd.f32 %v595_v44, %v483_v57  ;;  %v584_v43 = vadd.f32 %v4136_v36, %v463_v30  ;;  %v639_v44 = vld [vmem:[%s7140_s4] sm:$0xff]  ;;  %v641_v36 = vld [vmem:[%s7140_s4 + $0x10] sm:$0xff] }
  0xc4   : > { %v607_v13 = vmax.f32 %v555_v60, 1e-06  ;;  %v608_v18 = vmax.f32 %v596_v0, 1e-06 }
  0xc6   : > { %v623_v33 = vmul.f32 %v615_v21, %v607_v13  ;;  %v624_v39 = vmul.f32 %v616_v26, %v608_v18  ;;  %v3633_v13 = vld [vmem:[%s7140_s4 + $0x30] sm:$0xff] }
  0xc8   : > { %v4172_v38 = vadd.f32 %v623_v33, %v543_v40 }
  0xc9   : > { %v557_v45 = vpop.f32.mrf.mxu0  ;;  %v598_v46 = vpop.f32.mrf.mxu1 }
  0xca   : > { %v558_v56 = vadd.f32 %v557_v45, %v488_v54  ;;  %v599_v58 = vadd.f32 %v598_v46, %v488_v54  ;;  %v4178_v45 = vadd.f32 %v624_v39, %v584_v43  ;;  %v642_v46 = vld [vmem:[%s7140_s4 + $0x18] sm:$0xff]  ;;  %v660_v54 = vpop.permute.xlu0 %659 }
  0xcc   : > { %v609_v5 = vmax.f32 %v558_v56, 1e-06  ;;  %v610_v9 = vmax.f32 %v599_v58, 1e-06 }
  0xce   : > { %v625_v25 = vmul.f32 %v617_v11, %v609_v5  ;;  %v626_v29 = vmul.f32 %v618_v16, %v610_v9 }
  0xd0   : > { %v4164_v42 = vadd.f32 %v625_v25, %v546_v31  ;;  %v4168_v37 = vadd.f32 %v626_v29, %v587_v34 }
  0xd1   : > { %v560_v50 = vpop.f32.mrf.mxu0  ;;  %v601_v51 = vpop.f32.mrf.mxu1 }
  0xd2   : > { %v561_v53 = vadd.f32 %v560_v50, %v493_v52  ;;  %v602_v55 = vadd.f32 %v601_v51, %v493_v52  ;;  %v774_v21 = vpop.permute.xlu0 %773 }
  0xd4   : > { %v611_v61 = vmax.f32 %v561_v53, 1e-06  ;;  %v612_v1 = vmax.f32 %v602_v55, 1e-06  ;;  %v665_v53 = vpop.permute.xlu2 %664 }
  0xd6   : > { %v627_v15 = vmul.f32 %v619_v4, %v611_v61  ;;  %v628_v20 = vmul.f32 %v620_v8, %v612_v1 }
  0xd8   : > { %v4158_v32 = vadd.f32 %v627_v15, %v549_v23  ;;  %v4161_v41 = vadd.f32 %v628_v20, %v590_v27 }
  0xd9   : > { %v563_v59 = vpop.f32.mrf.mxu0  ;;  %v604_v63 = vpop.f32.mrf.mxu1 }
  0xda   : > { %v564_v62 = vadd.f32 %v563_v59, %v498_v47  ;;  %v605_v2 = vadd.f32 %v604_v63, %v498_v47  ;;  %v655_v59 = vpop.permute.xlu1 %654  ;;  %v759_v39 = vpop.permute.xlu0 %758 }
  0xdc   : > { %v613_v6 = vmax.f32 %v564_v62, 1e-06  ;;  %v614_v10 = vmax.f32 %v605_v2, 1e-06  ;;  %v650_v0 = vpop.permute.xlu2 %649 }
  0xde   : > { %v629_v14 = vmul.f32 %v621_v3, %v613_v6  ;;  %v630_v19 = vmul.f32 %v622_v7, %v614_v10  ;;  %v3631_v10 = vld [vmem:[%s7140_s4 + $0x20] sm:$0xff] }
  0xe0   : > { %v4152_v24 = vadd.f32 %v629_v14, %v552_v12  ;;  %v4155_v28 = vadd.f32 %v630_v19, %v593_v17  ;;  %v3632_v12 = vld [vmem:[%s7140_s4 + $0x28] sm:$0xff]  ;;  %v3634_v14 = vld [vmem:[%s7140_s4 + $0x38] sm:$0xff] }
  0xe2   : > { %692 = vmatpush.msra.mxu2 %v4152_v24  ;;  %721 = vmatpush.msra.mxu3 %v4155_v28  ;;  %v769_v22 = vpop.permute.xlu1 %768 }
  0xe4   : > { %693 = vmatpush.msra.mxu2 %v4158_v32  ;;  %722 = vmatpush.msra.mxu3 %v4161_v41  ;;  %v764_v29 = vpop.permute.xlu2 %763 }
  0xe6   : > { %694 = vmatpush.msra.mxu2 %v4164_v42  ;;  %723 = vmatpush.msra.mxu3 %v4168_v37 }
  0xe8   : > { %695 = vmatpush.msra.mxu2 %v4172_v38  ;;  %724 = vmatpush.msra.mxu3 %v4178_v45 }
  0xe9   : > { %3623 = vmatmul.msk.f32.vlgmr.msra.gmra.mxu2 %vm667_vm1, %v639_v44  ;;  %3627 = vmatmul.msk.f32.vlgmr.msra.gmra.mxu3 %vm667_vm1, %v639_v44 }
  0xf1   : > { %3624 = vmatmul.msk.f32.gmra.mxu2 %vm667_vm1, %v640_v35  ;;  %3628 = vmatmul.msk.f32.gmra.mxu3 %vm667_vm1, %v640_v35 }
  0xf9   : > { %3625 = vmatmul.msk.f32.gmra.mxu2 %vm667_vm1, %v641_v36  ;;  %3629 = vmatmul.msk.f32.gmra.mxu3 %vm667_vm1, %v641_v36 }
 0x101   : > { %3626 = vmatmul.msk.f32.gmra.mxu2 %vm667_vm1, %v642_v46  ;;  %3630 = vmatmul.msk.f32.gmra.mxu3 %vm667_vm1, %v642_v46 }
 0x16c   : > { %v697_v47 = vpop.f32.mrf.mxu2  ;;  %v726_v48 = vpop.f32.mrf.mxu3 }
 0x16d   : > { %v698_v3 = vadd.f32 %v697_v47, %v650_v0  ;;  %v727_v5 = vadd.f32 %v726_v48, %v650_v0 }
 0x16f   : > { %v738_v9 = vmax.f32 %v698_v3, 0.0  ;;  %v739_v11 = vmax.f32 %v727_v5, 0.0 }
 0x174   : > { %v700_v49 = vpop.f32.mrf.mxu2  ;;  %v729_v50 = vpop.f32.mrf.mxu3 }
 0x175   : > { %v701_v62 = vadd.f32 %v700_v49, %v655_v59  ;;  %v730_v1 = vadd.f32 %v729_v50, %v655_v59  ;;  %v872_v59 = vpop.permute.xlu0 %871 }
 0x177   : > { %v740_v7 = vmax.f32 %v701_v62, 0.0  ;;  %v741_v8 = vmax.f32 %v730_v1, 0.0 }
 0x17c   : > { %v703_v51 = vpop.f32.mrf.mxu2  ;;  %v732_v52 = vpop.f32.mrf.mxu3 }
 0x17d   : > { %v704_v56 = vadd.f32 %v703_v51, %v660_v54  ;;  %v733_v60 = vadd.f32 %v732_v52, %v660_v54  ;;  %v877_v54 = vpop.permute.xlu2 %876 }
 0x17f   : > { %v742_v4 = vmax.f32 %v704_v56, 0.0  ;;  %v743_v6 = vmax.f32 %v733_v60, 0.0 }
 0x184   : > { %v706_v55 = vpop.f32.mrf.mxu2  ;;  %v735_v58 = vpop.f32.mrf.mxu3 }
 0x185   : > { %v707_v57 = vadd.f32 %v706_v55, %v665_v53  ;;  %v736_v61 = vadd.f32 %v735_v58, %v665_v53  ;;  %v882_v53 = vpop.permute.xlu1 %881 }
 0x187   : > { %v744_v63 = vmax.f32 %v707_v57, 0.0  ;;  %v745_v2 = vmax.f32 %v736_v61, 0.0 }
 0x189   : > { %800 = vmatpush.msrb.mxu2 %v744_v63  ;;  %829 = vmatpush.msrb.mxu3 %v745_v2 }
 0x18b   : > { %801 = vmatpush.msrb.mxu2 %v742_v4  ;;  %830 = vmatpush.msrb.mxu3 %v743_v6 }
 0x18d   : > { %802 = vmatpush.msrb.mxu2 %v740_v7  ;;  %831 = vmatpush.msrb.mxu3 %v741_v8  ;;  %v867_v0 = vpop.permute.xlu1 %866 }
 0x18f   : > { %803 = vmatpush.msrb.mxu2 %v738_v9  ;;  %832 = vmatpush.msrb.mxu3 %v739_v11 }
 0x190   : > { %3639 = vmatmul.msk.f32.vlgmr.msrb.gmra.mxu2 %vm667_vm1, %v3631_v10  ;;  %3643 = vmatmul.msk.f32.vlgmr.msrb.gmra.mxu3 %vm667_vm1, %v3631_v10  ;;  %v3663_v10 = vld [vmem:[%s7140_s4 + $0x60] sm:$0xff] }
 0x198   : > { %3640 = vmatmul.msk.f32.gmra.mxu2 %vm667_vm1, %v3632_v12  ;;  %3644 = vmatmul.msk.f32.gmra.mxu3 %vm667_vm1, %v3632_v12  ;;  %v3664_v12 = vld [vmem:[%s7140_s4 + $0x68] sm:$0xff] }
 0x1a0   : > { %3641 = vmatmul.msk.f32.gmra.mxu2 %vm667_vm1, %v3633_v13  ;;  %3645 = vmatmul.msk.f32.gmra.mxu3 %vm667_vm1, %v3633_v13  ;;  %v3665_v13 = vld [vmem:[%s7140_s4 + $0x70] sm:$0xff] }
 0x1a8   : > { %3642 = vmatmul.msk.f32.gmra.mxu2 %vm667_vm1, %v3634_v14  ;;  %3646 = vmatmul.msk.f32.gmra.mxu3 %vm667_vm1, %v3634_v14  ;;  %v3666_v14 = vld [vmem:[%s7140_s4 + $0x78] sm:$0xff] }
 0x213   : > { %v805_v15 = vpop.f32.mrf.mxu2  ;;  %v834_v16 = vpop.f32.mrf.mxu3 }
 0x214   : > { %v806_v44 = vadd.f32 %v805_v15, %v759_v39  ;;  %v835_v36 = vadd.f32 %v834_v16, %v759_v39  ;;  %v4291_v15 = vpop.permute.xlu2 %989 }
 0x216   : > { %v4250_v47 = vadd.f32 %v835_v36, %v4178_v45 }
 0x21b   : > { %v808_v17 = vpop.f32.mrf.mxu2  ;;  %v837_v18 = vpop.f32.mrf.mxu3 }
 0x21c   : > { %v809_v33 = vadd.f32 %v808_v17, %v764_v29  ;;  %v838_v40 = vadd.f32 %v837_v18, %v764_v29  ;;  %v975_v16 = vpop.permute.xlu2 %974 }
 0x223   : > { %v811_v19 = vpop.f32.mrf.mxu2  ;;  %v840_v20 = vpop.f32.mrf.mxu3 }
 0x224   : > { %v812_v25 = vadd.f32 %v811_v19, %v769_v22  ;;  %v841_v30 = vadd.f32 %v840_v20, %v769_v22 }
 0x226   : > { %v4227_v35 = vadd.f32 %v812_v25, %v4158_v32  ;;  %v4231_v46 = vadd.f32 %v841_v30, %v4161_v41  ;;  %v4243_v32 = vadd.f32 %v806_v44, %v4172_v38  ;;  %v3647_v41 = vld [vmem:[%s7140_s4 + $0x40] sm:$0xff]  ;;  %v3650_v38 = vld [vmem:[%s7140_s4 + $0x58] sm:$0xff] }
 0x22b   : > { %v814_v23 = vpop.f32.mrf.mxu2  ;;  %v843_v27 = vpop.f32.mrf.mxu3 }
 0x22c   : > { %v815_v26 = vadd.f32 %v814_v23, %v774_v21  ;;  %v844_v31 = vadd.f32 %v843_v27, %v774_v21 }
 0x22e   : > { %v4220_v34 = vadd.f32 %v815_v26, %v4152_v24  ;;  %v4223_v43 = vadd.f32 %v844_v31, %v4155_v28  ;;  %v4235_v24 = vadd.f32 %v809_v33, %v4164_v42  ;;  %v4239_v28 = vadd.f32 %v838_v40, %v4168_v37  ;;  %v3648_v42 = vld [vmem:[%s7140_s4 + $0x48] sm:$0xff]  ;;  %v3649_v37 = vld [vmem:[%s7140_s4 + $0x50] sm:$0xff]  ;;  %v980_v26 = vpop.permute.xlu1 %979  ;;  %v985_v40 = vpop.permute.xlu0 %984 }
 0x230   : > { %908 = vmatpush.msrb.mxu0 %v4220_v34  ;;  %937 = vmatpush.msrb.mxu1 %v4223_v43 }
 0x232   : > { %909 = vmatpush.msrb.mxu0 %v4227_v35  ;;  %938 = vmatpush.msrb.mxu1 %v4231_v46 }
 0x234   : > { %910 = vmatpush.msrb.mxu0 %v4235_v24  ;;  %939 = vmatpush.msrb.mxu1 %v4239_v28 }
 0x236   : > { %911 = vmatpush.msrb.mxu0 %v4243_v32  ;;  %940 = vmatpush.msrb.mxu1 %v4250_v47 }
 0x237   : > { %3655 = vmatmul.msk.f32.vlgmr.msrb.gmra.mxu0 %vm667_vm1, %v3647_v41  ;;  %3659 = vmatmul.msk.f32.vlgmr.msrb.gmra.mxu1 %vm667_vm1, %v3647_v41 }
 0x23f   : > { %3656 = vmatmul.msk.f32.gmra.mxu0 %vm667_vm1, %v3648_v42  ;;  %3660 = vmatmul.msk.f32.gmra.mxu1 %vm667_vm1, %v3648_v42 }
 0x247   : > { %3657 = vmatmul.msk.f32.gmra.mxu0 %vm667_vm1, %v3649_v37  ;;  %3661 = vmatmul.msk.f32.gmra.mxu1 %vm667_vm1, %v3649_v37 }
 0x24f   : > { %3658 = vmatmul.msk.f32.gmra.mxu0 %vm667_vm1, %v3650_v38  ;;  %3662 = vmatmul.msk.f32.gmra.mxu1 %vm667_vm1, %v3650_v38 }
 0x2b4   : > { %v913_v45 = vpop.f32.mrf.mxu0  ;;  %v942_v48 = vpop.f32.mrf.mxu1 }
 0x2b5   : > { %v914_v3 = vadd.f32 %v913_v45, %v867_v0  ;;  %v943_v5 = vadd.f32 %v942_v48, %v867_v0 }
 0x2b7   : > { %v954_v9 = vmax.f32 %v914_v3, 0.0  ;;  %v955_v11 = vmax.f32 %v943_v5, 0.0  ;;  %v1088_v3 = vld [vmem:[%s7144_s8 + $0x10] sm:$0xff] }
 0x2bc   : > { %v916_v49 = vpop.f32.mrf.mxu0  ;;  %v945_v50 = vpop.f32.mrf.mxu1 }
 0x2bd   : > { %v917_v62 = vadd.f32 %v916_v49, %v872_v59  ;;  %v946_v1 = vadd.f32 %v945_v50, %v872_v59 }
 0x2bf   : > { %v956_v7 = vmax.f32 %v917_v62, 0.0  ;;  %v957_v8 = vmax.f32 %v946_v1, 0.0 }
 0x2c4   : > { %v919_v51 = vpop.f32.mrf.mxu0  ;;  %v948_v52 = vpop.f32.mrf.mxu1 }
 0x2c5   : > { %v920_v56 = vadd.f32 %v919_v51, %v877_v54  ;;  %v949_v60 = vadd.f32 %v948_v52, %v877_v54 }
 0x2c7   : > { %v958_v4 = vmax.f32 %v920_v56, 0.0  ;;  %v959_v6 = vmax.f32 %v949_v60, 0.0 }
 0x2cc   : > { %v922_v55 = vpop.f32.mrf.mxu0  ;;  %v951_v58 = vpop.f32.mrf.mxu1 }
 0x2cd   : > { %v923_v57 = vadd.f32 %v922_v55, %v882_v53  ;;  %v952_v61 = vadd.f32 %v951_v58, %v882_v53 }
 0x2cf   : > { %v960_v63 = vmax.f32 %v923_v57, 0.0  ;;  %v961_v2 = vmax.f32 %v952_v61, 0.0 }
 0x2d1   : > { %1016 = vmatpush.msra.mxu2 %v960_v63  ;;  %1045 = vmatpush.msra.mxu3 %v961_v2  ;;  %v1089_v2 = vld [vmem:[%s7144_s8 + $0x18] sm:$0xff] }
 0x2d3   : > { %1017 = vmatpush.msra.mxu2 %v958_v4  ;;  %1046 = vmatpush.msra.mxu3 %v959_v6 }
 0x2d5   : > { %1018 = vmatpush.msra.mxu2 %v956_v7  ;;  %1047 = vmatpush.msra.mxu3 %v957_v8  ;;  %v1086_v7 = vld [vmem:[%s7144_s8] sm:$0xff]  ;;  %v1087_v8 = vld [vmem:[%s7144_s8 + $0x8] sm:$0xff] }
 0x2d7   : > { %1019 = vmatpush.msra.mxu2 %v954_v9  ;;  %1048 = vmatpush.msra.mxu3 %v955_v11 }
 0x2d8   : > { %3671 = vmatmul.msk.f32.vlgmr.msra.gmra.mxu2 %vm667_vm1, %v3663_v10  ;;  %3675 = vmatmul.msk.f32.vlgmr.msra.gmra.mxu3 %vm667_vm1, %v3663_v10 }
 0x2e0   : > { %3672 = vmatmul.msk.f32.gmra.mxu2 %vm667_vm1, %v3664_v12  ;;  %3676 = vmatmul.msk.f32.gmra.mxu3 %vm667_vm1, %v3664_v12 }
 0x2e8   : > { %3673 = vmatmul.msk.f32.gmra.mxu2 %vm667_vm1, %v3665_v13  ;;  %3677 = vmatmul.msk.f32.gmra.mxu3 %vm667_vm1, %v3665_v13 }
 0x2f0   : > { %3674 = vmatmul.msk.f32.gmra.mxu2 %vm667_vm1, %v3666_v14  ;;  %3678 = vmatmul.msk.f32.gmra.mxu3 %vm667_vm1, %v3666_v14 }
 0x35b   : > { %v1021_v17 = vpop.f32.mrf.mxu2  ;;  %v1050_v19 = vpop.f32.mrf.mxu3 }
 0x35c   : > { %v1022_v18 = vadd.f32 %v1021_v17, %v975_v16  ;;  %v1051_v20 = vadd.f32 %v1050_v19, %v975_v16  ;;  %v1106_v19 = vlaneseq }
 0x35e   : > { %v4294_v21 = vadd.f32 %v1022_v18, %v4243_v32  ;;  %v4297_v22 = vadd.f32 %v1051_v20, %v4250_v47 }
 0x360   : > { %7246 = vst [vmem:[#allocation8_spill] sm:$0xff] %v4294_v21  ;;  %1197 = vrot.lane.b32.xlu1 %v4294_v21, %s7156_s30  ;;  %1170 = vrot.lane.b32.xlu0 %v4297_v22, %s7158_s22 }
 0x361   : > { %7247 = vst [vmem:[#allocation9_spill] sm:$0xff] %v4297_v22  ;;  %1205 = vrot.lane.b32.xlu2 %v4297_v22, %s7156_s30 }
 0x363   : > { %v1053_v23 = vpop.f32.mrf.mxu3  ;;  %v1024_v25 = vpop.f32.mrf.mxu2 }
 0x364   : > { %v1054_v27 = vadd.f32 %v1053_v23, %v980_v26  ;;  %v1025_v29 = vadd.f32 %v1024_v25, %v980_v26  ;;  %v4521_v23 = vand.u32 127, %v1106_v19  ;;  %v4526_v25 = vld [vmem:[%s7142_s6] sm:$0xff]  ;;  %v4531_v26 = vld [vmem:[%s7142_s6 + $0x8] sm:$0xff] }
 0x366   : > { %v4324_v30 = vadd.f32 %v1054_v27, %v4239_v28  ;;  %v4327_v31 = vadd.f32 %v1025_v29, %v4235_v24  ;;  %vm1213_vm2 = vcmp.lt.s32.totalorder %v4521_v23, 1  ;;  %vm1178_vm3 = vcmp.lt.s32.totalorder %v4521_v23, 15 }
 0x367   : > { %vm1328_vm4 = vcmp.lt.s32.totalorder %v4521_v23, 112  ;;  %vm1293_vm5 = vcmp.lt.s32.totalorder %v4521_v23, 113  ;;  %vm1143_vm6 = vcmp.lt.s32.totalorder %v4521_v23, 16  ;;  %vm1258_vm7 = vcmp.lt.s32.totalorder %v4521_v23, 127 }
 0x368   : > { %1312 = vrot.lane.b32.xlu1 %v4294_v21, %s7152_s24  ;;  %1285 = vrot.lane.b32.xlu0 %v4297_v22, %s7154_s13  ;;  %7248 = vst [vmem:[#allocation10_spill] sm:$0xff] %v4324_v30  ;;  %vm1108_vm8 = vcmp.lt.s32.totalorder %v4521_v23, 17  ;;  %vm1363_vm9 = vcmp.lt.s32.totalorder %v4521_v23, 111 }
 0x369   : > { %1320 = vrot.lane.b32.xlu2 %v4297_v22, %s7152_s24  ;;  %7249 = vst [vmem:[#allocation11_spill] sm:$0xff] %v4327_v31 }
 0x36b   : > { %v1056_v33 = vpop.f32.mrf.mxu3  ;;  %v1027_v39 = vpop.f32.mrf.mxu2 }
 0x36c   : > { %v1057_v44 = vadd.f32 %v1056_v33, %v985_v40  ;;  %v1028_v36 = vadd.f32 %v1027_v39, %v985_v40  ;;  %v4535_v33 = vperm.slane %v4526_v25, 3  ;;  %v4538_v39 = vperm.slane %v4531_v26, 3 }
 0x36e   : > { %v4354_v24 = vadd.f32 %v1057_v44, %v4231_v46  ;;  %v4357_v28 = vadd.f32 %v1028_v36, %v4227_v35  ;;  %7254 = vst [vmem:[#allocation16_spill] sm:$0xff] %v4535_v33 }
 0x36f   : > { %7255 = vst [vmem:[#allocation17_spill] sm:$0xff] %v4538_v39 }
 0x370   : > { %1135 = vrot.lane.b32.xlu1 %v4297_v22, %s7187_s14  ;;  %1127 = vrot.lane.b32.xlu0 %v4294_v21, %s7187_s14  ;;  %7250 = vst [vmem:[#allocation12_spill] sm:$0xff] %v4354_v24 }
 0x371   : > { %1162 = vrot.lane.b32.xlu2 %v4294_v21, %s7158_s22  ;;  %7251 = vst [vmem:[#allocation13_spill] sm:$0xff] %v4357_v28 }
 0x373   : > { %v1059_v35 = vpop.f32.mrf.mxu3  ;;  %v1030_v46 = vpop.f32.mrf.mxu2 }
 0x374   : > { %v1060_v32 = vadd.f32 %v1059_v35, %v4291_v15  ;;  %v1031_v41 = vadd.f32 %v1030_v46, %v4291_v15 }
 0x376   : > { %v4388_v42 = vadd.f32 %v1060_v32, %v4223_v43  ;;  %v4391_v37 = vadd.f32 %v1031_v41, %v4220_v34 }
 0x378   : > { %1250 = vrot.lane.b32.xlu1 %v4297_v22, %s7150_s15  ;;  %1242 = vrot.lane.b32.xlu0 %v4294_v21, %s7150_s15  ;;  %7252 = vst [vmem:[#allocation14_spill] sm:$0xff] %v4388_v42 }
 0x379   : > { %1277 = vrot.lane.b32.xlu2 %v4294_v21, %s7154_s13  ;;  %7253 = vst [vmem:[#allocation15_spill] sm:$0xff] %v4391_v37 }
 0x380   : > { %1207 = vrot.lane.b32.xlu1 %v4324_v30, %s7156_s30  ;;  %1199 = vrot.lane.b32.xlu0 %v4327_v31, %s7156_s30 }
 0x381   : > { %1172 = vrot.lane.b32.xlu2 %v4324_v30, %s7158_s22 }
 0x388   : > { %1322 = vrot.lane.b32.xlu1 %v4324_v30, %s7152_s24  ;;  %1314 = vrot.lane.b32.xlu0 %v4327_v31, %s7152_s24 }
 0x389   : > { %1287 = vrot.lane.b32.xlu2 %v4324_v30, %s7154_s13 }
 0x390   : > { %1164 = vrot.lane.b32.xlu1 %v4327_v31, %s7158_s22  ;;  %1137 = vrot.lane.b32.xlu0 %v4324_v30, %s7187_s14 }
 0x391   : > { %1129 = vrot.lane.b32.xlu2 %v4327_v31, %s7187_s14 }
 0x398   : > { %1279 = vrot.lane.b32.xlu1 %v4327_v31, %s7154_s13  ;;  %1252 = vrot.lane.b32.xlu0 %v4324_v30, %s7150_s15 }
 0x399   : > { %1244 = vrot.lane.b32.xlu2 %v4327_v31, %s7150_s15 }
 0x3a0   : > { %1174 = vrot.lane.b32.xlu1 %v4354_v24, %s7158_s22  ;;  %1209 = vrot.lane.b32.xlu0 %v4354_v24, %s7156_s30 }
 0x3a1   : > { %1201 = vrot.lane.b32.xlu2 %v4357_v28, %s7156_s30 }
 0x3a8   : > { %1289 = vrot.lane.b32.xlu1 %v4354_v24, %s7154_s13  ;;  %1324 = vrot.lane.b32.xlu0 %v4354_v24, %s7152_s24 }
 0x3a9   : > { %1316 = vrot.lane.b32.xlu2 %v4357_v28, %s7152_s24 }
 0x3b0   : > { %1131 = vrot.lane.b32.xlu1 %v4357_v28, %s7187_s14  ;;  %1166 = vrot.lane.b32.xlu0 %v4357_v28, %s7158_s22 }
 0x3b1   : > { %1139 = vrot.lane.b32.xlu2 %v4354_v24, %s7187_s14 }
 0x3b8   : > { %1246 = vrot.lane.b32.xlu1 %v4357_v28, %s7150_s15  ;;  %1281 = vrot.lane.b32.xlu0 %v4357_v28, %s7154_s13 }
 0x3b9   : > { %1254 = vrot.lane.b32.xlu2 %v4354_v24, %s7150_s15 }
 0x3bb   : > { %v4385_v47 = vpop.permute.xlu2 %1205 }
 0x3c0   : > { %1211 = vrot.lane.b32.xlu1 %v4388_v42, %s7156_s30  ;;  %1203 = vrot.lane.b32.xlu0 %v4391_v37, %s7156_s30 }
 0x3c1   : > { %1326 = vrot.lane.b32.xlu2 %v4388_v42, %s7152_s24 }
 0x3c3   : > { %v4399_v38 = vpop.permute.xlu2 %1320 }
 0x3c8   : > { %1318 = vrot.lane.b32.xlu1 %v4391_v37, %s7152_s24  ;;  %1176 = vrot.lane.b32.xlu0 %v4388_v42, %s7158_s22  ;;  %s424_s24 = sand.u32 1, %s3892_s18  }
 0x3c9   : > { %1168 = vrot.lane.b32.xlu2 %v4391_v37, %s7158_s22 }
 0x3cb   : > { %v4407_v34 = vpop.permute.xlu2 %1162 }
 0x3d0   : > { %1141 = vrot.lane.b32.xlu1 %v4388_v42, %s7187_s14  ;;  %1291 = vrot.lane.b32.xlu0 %v4388_v42, %s7154_s13 }
 0x3d1   : > { %1283 = vrot.lane.b32.xlu2 %v4391_v37, %s7154_s13 }
 0x3d2   : > { %v4415_v43 = vpop.permute.xlu1 %1197  ;;  %v4417_v45 = vpop.permute.xlu0 %1170 }
 0x3d3   : > { %v4419_v48 = vpop.permute.xlu2 %1277 }
 0x3d8   : > { %1092 = vrot.lane.b32.xlu1 %v4327_v31, %s7148_s16  ;;  %1133 = vrot.lane.b32.xlu0 %v4391_v37, %s7187_s14 }
 0x3d9   : > { %1094 = vrot.lane.b32.xlu2 %v4357_v28, %s7148_s16 }
 0x3da   : > { %v4427_v49 = vpop.permute.xlu1 %1312  ;;  %v4429_v50 = vpop.permute.xlu0 %1285 }
 0x3db   : > { %v4431_v51 = vpop.permute.xlu2 %1172 }
 0x3e0   : > { %1256 = vrot.lane.b32.xlu1 %v4388_v42, %s7150_s15  ;;  %1248 = vrot.lane.b32.xlu0 %v4391_v37, %s7150_s15  ;;  %s3600_s15 = sshll.u32 %s424_s24, 4 }
 0x3e1   : > { %1104 = vrot.lane.b32.xlu2 %v4388_v42, %s7148_s16 }
 0x3e2   : > { %v4439_v52 = vpop.permute.xlu1 %1135  ;;  %v4441_v53 = vpop.permute.xlu0 %1127 }
 0x3e3   : > { %v4443_v54 = vpop.permute.xlu2 %1287 }
 0x3e8   : > { %1096 = vrot.lane.b32.xlu1 %v4391_v37, %s7148_s16  ;;  %1102 = vrot.lane.b32.xlu0 %v4354_v24, %s7148_s16 }
 0x3e9   : > { %1100 = vrot.lane.b32.xlu2 %v4324_v30, %s7148_s16 }
 0x3ea   : > { %v4451_v55 = vpop.permute.xlu1 %1250  ;;  %v4453_v56 = vpop.permute.xlu0 %1242 }
 0x3eb   : > { %v4455_v57 = vpop.permute.xlu2 %1129 }
 0x3f0   : > { %1098 = vrot.lane.b32.xlu1 %v4297_v22, %s7148_s16  ;;  %1090 = vrot.lane.b32.xlu0 %v4294_v21, %s7148_s16  ;;  %s7266_s16 = smov 112  }
 0x3f1   : > { %1359 = vrot.lane.b32.xlu2 %v4354_v24, %s3913_s25 }
 0x3f2   : > { %v1208_v58 = vpop.permute.xlu1 %1207  ;;  %v1200_v59 = vpop.permute.xlu0 %1199 }
 0x3f3   : > { %v4463_v60 = vpop.permute.xlu2 %1244 }
 0x3f8   : > { %1351 = vrot.lane.b32.xlu1 %v4357_v28, %s3913_s25  ;;  %1349 = vrot.lane.b32.xlu0 %v4327_v31, %s3913_s25 }
 0x3f9   : > { %1353 = vrot.lane.b32.xlu2 %v4391_v37, %s3913_s25 }
 0x3fa   : > { %v4471_v61 = vpop.permute.xlu1 %1322  ;;  %v4473_v62 = vpop.permute.xlu0 %1314 }
 0x3fb   : > { %v1202_v63 = vpop.permute.xlu2 %1201 }
 0x400   : > { %1357 = vrot.lane.b32.xlu1 %v4324_v30, %s3913_s25  ;;  %1361 = vrot.lane.b32.xlu0 %v4388_v42, %s3913_s25 }
 0x401   : > { %1347 = vrot.lane.b32.xlu2 %v4294_v21, %s3913_s25 }
 0x402   : > { %v4481_v0 = vpop.permute.xlu1 %1164  ;;  %v4483_v1 = vpop.permute.xlu0 %1137 }
 0x403   : > { %v4497_v6 = vpop.permute.xlu2 %1316 }
 0x408   : > { %1399 = vperm.xlu1 %3796, %v1089_v2   ;;  %1355 = vrot.lane.b32.xlu0 %v4297_v22, %s3913_s25  ;;  %v1214_v2 = vsel %vm1213_vm2, %v4415_v43, %v4385_v47 }
 0x409   : > { %1394 = vperm.xlu2 %3797, %v1088_v3   ;;  %v1215_v3 = vsel %vm1213_vm2, %v1200_v59, %v1208_v58 }
 0x40a   : > { %v4493_v4 = vpop.permute.xlu1 %1279  ;;  %v4495_v5 = vpop.permute.xlu0 %1252 }
 0x40b   : > { %v4505_v11 = vpop.permute.xlu2 %1139 }
 0x410   : > { %1384 = vperm.xlu1 %3796, %v1086_v7   ;;  %1389 = vperm.xlu0 %3795, %v1087_v8   ;;  %v1218_v7 = vsel %vm1213_vm2, %v4385_v47, %v4415_v43  ;;  %v4572_v47 = vperm.slane %v4526_v25, 7 }
 0x412   : > { %v1175_v9 = vpop.permute.xlu1 %1174  ;;  %v1210_v10 = vpop.permute.xlu0 %1209  ;;  %7256 = vst [vmem:[#allocation18_spill] sm:$0xff] %v4572_v47 }
 0x413   : > { %v4511_v14 = vpop.permute.xlu2 %1254  ;;  %v1216_v40 = vsel %vm1213_vm2, %v1202_v63, %v1210_v10  ;;  %v1220_v44 = vsel %vm1213_vm2, %v1210_v10, %v1202_v63  ;;  %v1219_v63 = vsel %vm1213_vm2, %v1208_v58, %v1200_v59  ;;  %v4568_v58 = vperm.slane %v4526_v25, 2 }
 0x414   : > { %v1228_v8 = vmul.f32 %v4535_v33, %v1220_v44  ;;  %v1229_v10 = vmul.f32 %v4538_v39, %v1216_v40  ;;  %v1226_v19 = vmul.f32 %v4535_v33, %v1219_v63  ;;  %v1224_v59 = vmul.f32 %v4535_v33, %v1218_v7 }
 0x415   : > { %v1330_v7 = vsel %vm1328_vm4, %v4473_v62, %v4471_v61 }
 0x41a   : > { %v4507_v12 = vpop.permute.xlu1 %1289  ;;  %v4509_v13 = vpop.permute.xlu0 %1324 }
 0x41b   : > { %v4515_v17 = vpop.permute.xlu2 %1326  ;;  %v1331_v40 = vsel %vm1328_vm4, %v4497_v6, %v4509_v13 }
 0x422   : > { %v4513_v15 = vpop.permute.xlu1 %1131  ;;  %v1167_v16 = vpop.permute.xlu0 %1166 }
 0x423   : > { %v1169_v36 = vpop.permute.xlu2 %1168  ;;  %v1181_v44 = vsel %vm1178_vm3, %v1167_v16, %v1175_v9 }
 0x42a   : > { %v4517_v18 = vpop.permute.xlu1 %1246  ;;  %v4519_v20 = vpop.permute.xlu0 %1281 }
 0x432   : > { %v1212_v27 = vpop.permute.xlu1 %1211  ;;  %v1204_v29 = vpop.permute.xlu0 %1203 }
 0x433   : > { %v1217_v35 = vsel %vm1213_vm2, %v1204_v29, %v1212_v27  ;;  %v1221_v46 = vsel %vm1213_vm2, %v1212_v27, %v1204_v29  ;;  %v1227_v27 = vmul.f32 %v4538_v39, %v1215_v3  ;;  %v1225_v29 = vmul.f32 %v4538_v39, %v1214_v2 }
 0x434   : > { %v1230_v32 = vmul.f32 %v4535_v33, %v1221_v46  ;;  %v1231_v41 = vmul.f32 %v4538_v39, %v1217_v35 }
 0x436   : > { %1414 = vmatpush.msra.mxu0 %v1230_v32  ;;  %1501 = vmatpush.msrb.mxu3 %v1231_v41  ;;  %v4589_v32 = vperm.slane %v4531_v26, 2  ;;  %v1185_v41 = vsel %vm1178_vm3, %v1175_v9, %v1167_v16  ;;  %v1180_v9 = vsel %vm1178_vm3, %v4481_v0, %v4431_v51  ;;  %v1184_v16 = vsel %vm1178_vm3, %v4431_v51, %v4481_v0 }
 0x437   : > { %v1179_v51 = vsel %vm1178_vm3, %v4407_v34, %v4417_v45  ;;  %v1183_v0 = vsel %vm1178_vm3, %v4417_v45, %v4407_v34 }
 0x438   : > { %1415 = vmatpush.msra.mxu0 %v1228_v8  ;;  %1502 = vmatpush.msrb.mxu3 %v1229_v10  ;;  %v1189_v34 = vmul.f32 %v4568_v58, %v1183_v0  ;;  %v1190_v45 = vmul.f32 %v4589_v32, %v1179_v51  ;;  %v4665_v0 = vperm.slane %v4526_v25, 1 }
 0x43a   : > { %v4574_v43 = vpop.permute.xlu1 %1318  ;;  %v1177_v35 = vpop.permute.xlu0 %1176  ;;  %1416 = vmatpush.msra.mxu0 %v1226_v19  ;;  %1503 = vmatpush.msrb.mxu3 %v1227_v27  ;;  %v1343_v19 = vmul.f32 %v4572_v47, %v1331_v40  ;;  %v1329_v27 = vsel %vm1328_vm4, %v4427_v49, %v4399_v38  ;;  %v1341_v40 = vmul.f32 %v4572_v47, %v1330_v7 }
 0x43b   : > { %v1332_v46 = vsel %vm1328_vm4, %v4574_v43, %v4515_v17  ;;  %v1182_v2 = vsel %vm1178_vm3, %v1169_v36, %v1177_v35  ;;  %v1186_v3 = vsel %vm1178_vm3, %v1177_v35, %v1169_v36  ;;  %v4612_v36 = vpop.permute.xlu2 %1283  ;;  %v1191_v35 = vmul.f32 %v4568_v58, %v1184_v16 }
 0x43c   : > { %v1345_v63 = vmul.f32 %v4572_v47, %v1332_v46  ;;  %1417 = vmatpush.msra.mxu0 %v1224_v59  ;;  %1504 = vmatpush.msrb.mxu3 %v1225_v29  ;;  %v1195_v8 = vmul.f32 %v4568_v58, %v1186_v3  ;;  %v1196_v10 = vmul.f32 %v4589_v32, %v1182_v2  ;;  %v4639_v3 = vperm.slane %v4526_v25, 6 }
 0x43d   : > { %v1193_v59 = vmul.f32 %v4568_v58, %v1185_v41  ;;  %v1194_v29 = vmul.f32 %v4589_v32, %v1181_v44  ;;  %v1192_v46 = vmul.f32 %v4589_v32, %v1180_v9  ;;  %v1339_v41 = vmul.f32 %v4572_v47, %v1329_v27 }
 0x43e   : > { %1443 = vmatpush.msra.mxu1 %v1345_v63  ;;  %1418 = vmatpush.msra.mxu0 %v1195_v8  ;;  %v1296_v63 = vsel %vm1293_vm5, %v4519_v20, %v4507_v12  ;;  %v1294_v16 = vsel %vm1293_vm5, %v4419_v48, %v4429_v50 }
 0x43f   : > { %1505 = vmatpush.msrb.mxu3 %v1196_v10  ;;  %v1295_v10 = vsel %vm1293_vm5, %v4493_v4, %v4443_v54  ;;  %v1308_v9 = vmul.f32 %v4639_v3, %v1296_v63  ;;  %v1304_v51 = vmul.f32 %v4639_v3, %v1294_v16 }
 0x440   : > { %1444 = vmatpush.msra.mxu1 %v1343_v19  ;;  %1419 = vmatpush.msra.mxu0 %v1193_v59  ;;  %v1306_v27 = vmul.f32 %v4639_v3, %v1295_v10  ;;  %v1148_v10 = vsel %vm1143_vm6, %v4439_v52, %v4441_v53 }
 0x441   : > { %1506 = vmatpush.msrb.mxu3 %v1194_v29 }
 0x442   : > { %1445 = vmatpush.msra.mxu1 %v1341_v40  ;;  %v1142_v44 = vpop.permute.xlu1 %1141  ;;  %v4634_v2 = vpop.permute.xlu0 %1291  ;;  %1420 = vmatpush.msra.mxu0 %v1191_v35  ;;  %v4668_v40 = vperm.slane %v4531_v26, 1  ;;  %v1146_v35 = vsel %vm1143_vm6, %v4513_v15, %v4505_v11 }
 0x443   : > { %1507 = vmatpush.msrb.mxu3 %v1192_v46  ;;  %v1297_v7 = vsel %vm1293_vm5, %v4612_v36, %v4634_v2  ;;  %v1095_v19 = vpop.permute.xlu2 %1094  ;;  %v1150_v46 = vsel %vm1143_vm6, %v4505_v11, %v4513_v15  ;;  %v1149_v11 = vsel %vm1143_vm6, %v4483_v1, %v4455_v57 }
 0x444   : > { %1446 = vmatpush.msra.mxu1 %v1339_v41  ;;  %1421 = vmatpush.msra.mxu0 %v1189_v34  ;;  %v1310_v8 = vmul.f32 %v4639_v3, %v1297_v7  ;;  %v1145_v7 = vsel %vm1143_vm6, %v4455_v57, %v4483_v1  ;;  %v1158_v15 = vmul.f32 %v4665_v0, %v1150_v46 }
 0x445   : > { %1508 = vmatpush.msrb.mxu3 %v1190_v45  ;;  %v1156_v57 = vmul.f32 %v4665_v0, %v1149_v11  ;;  %v1157_v1 = vmul.f32 %v4668_v40, %v1145_v7  ;;  %v4735_v11 = vperm.slane %v4526_v25, 0 }
 0x446   : > { %1447 = vmatpush.msra.mxu1 %v1310_v8  ;;  %v1144_v8 = vsel %vm1143_vm6, %v4441_v53, %v4439_v52  ;;  %v4712_v52 = vperm.slane %v4526_v25, 5  ;;  %v1261_v53 = vsel %vm1258_vm7, %v4517_v18, %v4511_v14 }
 0x448   : > { %1448 = vmatpush.msra.mxu1 %v1308_v9 }
 0x44a   : > { %v4660_v59 = vpop.permute.xlu1 %1092  ;;  %v1134_v29 = vpop.permute.xlu0 %1133  ;;  %1449 = vmatpush.msra.mxu1 %v1306_v27 }
 0x44b   : > { %v1147_v41 = vsel %vm1143_vm6, %v1134_v29, %v1142_v44  ;;  %v1151_v34 = vsel %vm1143_vm6, %v1142_v44, %v1134_v29  ;;  %v1159_v44 = vmul.f32 %v4668_v40, %v1146_v35  ;;  %v1105_v9 = vpop.permute.xlu2 %1104  ;;  %v1154_v29 = vmul.f32 %v4665_v0, %v1148_v10 }
 0x44c   : > { %1450 = vmatpush.msra.mxu1 %v1304_v51  ;;  %v1160_v45 = vmul.f32 %v4665_v0, %v1151_v34  ;;  %v1161_v63 = vmul.f32 %v4668_v40, %v1147_v41  ;;  %v1155_v51 = vmul.f32 %v4668_v40, %v1144_v8  ;;  %v1260_v41 = vsel %vm1258_vm7, %v4463_v60, %v4495_v5 }
 0x44d   : > { %v1273_v34 = vmul.f32 %v4712_v52, %v1261_v53 }
 0x44e   : > { %1422 = vmatpush.msra.mxu0 %v1160_v45  ;;  %1509 = vmatpush.msrb.mxu3 %v1161_v63  ;;  %v1259_v45 = vsel %vm1258_vm7, %v4453_v56, %v4451_v55  ;;  %v1271_v63 = vmul.f32 %v4712_v52, %v1260_v41 }
 0x450   : > { %1423 = vmatpush.msra.mxu0 %v1158_v15  ;;  %1510 = vmatpush.msrb.mxu3 %v1159_v44  ;;  %v4738_v15 = vperm.slane %v4531_v26, 0 }
 0x452   : > { %v4704_v16 = vpop.permute.xlu1 %1256  ;;  %v4707_v27 = vpop.permute.xlu0 %1248  ;;  %1424 = vmatpush.msra.mxu0 %v1156_v57  ;;  %1511 = vmatpush.msrb.mxu3 %v1157_v1  ;;  %v1269_v57 = vmul.f32 %v4712_v52, %v1259_v45  ;;  %v4746_v1 = vperm.slane %v4526_v25, 4 }
 0x453   : > { %v1262_v35 = vsel %vm1258_vm7, %v4707_v27, %v4704_v16 }
 0x454   : > { %1425 = vmatpush.msra.mxu0 %v1154_v29  ;;  %1512 = vmatpush.msrb.mxu3 %v1155_v51  ;;  %v1275_v46 = vmul.f32 %v4712_v52, %v1262_v35  ;;  %7257 = vst [vmem:[#allocation19_spill] sm:$0xff] %v4746_v1  ;;  %v1101_v29 = vpop.permute.xlu2 %1100  ;;  %v1240_v41 = vmul.f32 %v4746_v1, %v4391_v37 }
 0x455   : > { %v1114_v25 = vsel %vm1108_vm8, %v1101_v29, %v4660_v59  ;;  %v1238_v45 = vmul.f32 %v4746_v1, %v4357_v28 }
 0x456   : > { %1451 = vmatpush.msra.mxu1 %v1275_v46 }
 0x458   : > { %1452 = vmatpush.msra.mxu1 %v1273_v34 }
 0x45a   : > { %v1097_v7 = vpop.permute.xlu1 %1096  ;;  %v1103_v44 = vpop.permute.xlu0 %1102  ;;  %1453 = vmatpush.msra.mxu1 %v1271_v63  ;;  %v1121_v63 = vmul.f32 %v4735_v11, %v1114_v25  ;;  %v1074_v25 = vld [vmem:[#allocation2] sm:$0xff] }
 0x45b   : > { %v1112_v8 = vsel %vm1108_vm8, %v1097_v7, %v1105_v9  ;;  %v1116_v10 = vsel %vm1108_vm8, %v1105_v9, %v1097_v7  ;;  %v1111_v51 = vsel %vm1108_vm8, %v1095_v19, %v1103_v44  ;;  %v1115_v53 = vsel %vm1108_vm8, %v1103_v44, %v1095_v19 }
 0x45c   : > { %v1125_v35 = vmul.f32 %v4735_v11, %v1116_v10  ;;  %v1126_v46 = vmul.f32 %v4738_v15, %v1112_v8  ;;  %v1110_v9 = vsel %vm1108_vm8, %v4660_v59, %v1101_v29  ;;  %1454 = vmatpush.msra.mxu1 %v1269_v57  ;;  %v1123_v19 = vmul.f32 %v4735_v11, %v1115_v53  ;;  %v4772_v57 = vld [vmem:[#allocation2 + $0x8] sm:$0xff] }
 0x45d   : > { %v1124_v34 = vmul.f32 %v4738_v15, %v1111_v51  ;;  %v1122_v59 = vmul.f32 %v4738_v15, %v1110_v9  ;;  %v1236_v7 = vmul.f32 %v4746_v1, %v4327_v31  ;;  %v1234_v10 = vmul.f32 %v4746_v1, %v4294_v21 }
 0x45e   : > { %1426 = vmatpush.msra.mxu0 %v1125_v35  ;;  %1513 = vmatpush.msrb.mxu3 %v1126_v46  ;;  %v1336_v29 = vsel %vm1328_vm4, %v4515_v17, %v4574_v43  ;;  %v4783_v35 = vperm.slane %v4531_v26, 7  ;;  %v1335_v17 = vsel %vm1328_vm4, %v4509_v13, %v4497_v6  ;;  %v1333_v6 = vsel %vm1328_vm4, %v4399_v38, %v4427_v49 }
 0x45f   : > { %1455 = vmatpush.msra.mxu1 %v1240_v41  ;;  %v1360_v41 = vpop.permute.xlu2 %1359  ;;  %v1300_v38 = vsel %vm1293_vm5, %v4507_v12, %v4519_v20  ;;  %v4832_v20 = vld [vmem:[%s7142_s6 + $0x10] ss:$0 sm:$0xff] }
 0x460   : > { %1427 = vmatpush.msra.mxu0 %v1123_v19  ;;  %1514 = vmatpush.msrb.mxu3 %v1124_v34  ;;  %7258 = vst [vmem:[#allocation20_spill] sm:$0xff] %v4783_v35  ;;  %v1346_v43 = vmul.f32 %v4783_v35, %v1336_v29  ;;  %v1334_v19 = vsel %vm1328_vm4, %v4471_v61, %v4473_v62 }
 0x461   : > { %1456 = vmatpush.msra.mxu1 %v1238_v45  ;;  %v1344_v34 = vmul.f32 %v4783_v35, %v1335_v17  ;;  %v1301_v61 = vsel %vm1293_vm5, %v4634_v2, %v4612_v36  ;;  %v1340_v62 = vmul.f32 %v4783_v35, %v1333_v6  ;;  %v1299_v36 = vsel %vm1293_vm5, %v4443_v54, %v4493_v4  ;;  %v4837_v54 = vld [vmem:[%s7142_s6 + $0x18] ss:$0 sm:$0xff] }
 0x462   : > { %1428 = vmatpush.msra.mxu0 %v1121_v63  ;;  %1515 = vmatpush.msrb.mxu3 %v1122_v59  ;;  %v1099_v44 = vpop.permute.xlu1 %1098  ;;  %v1091_v8 = vpop.permute.xlu0 %1090  ;;  %v1342_v63 = vmul.f32 %v4783_v35, %v1334_v19  ;;  %v4803_v59 = vld [vmem:[#allocation2 + $0x20] sm:$0xff]  ;;  %v1298_v2 = vsel %vm1293_vm5, %v4429_v50, %v4419_v48  ;;  %7260 = vst [vmem:[#allocation22_spill] sm:$0xff] %v4832_v20  ;;  %v4841_v50 = vperm.slane %v4531_v26, 5 }
 0x463   : > { %1457 = vmatpush.msra.mxu1 %v1236_v7  ;;  %v1109_v51 = vsel %vm1108_vm8, %v1091_v8, %v1099_v44  ;;  %v1113_v53 = vsel %vm1108_vm8, %v1099_v44, %v1091_v8  ;;  %v1077_v7 = vld [vmem:[#allocation2 + $0x18] sm:$0xff]  ;;  %v4811_v44 = vperm.slane %v4531_v26, 6  ;;  %7261 = vst [vmem:[#allocation23_spill] sm:$0xff] %v4837_v54  ;;  %v1266_v29 = vsel %vm1258_vm7, %v4704_v16, %v4707_v27  ;;  %v1080_v16 = vld [vmem:[#allocation2 + $0x30] sm:$0xff] }
 0x464   : > { %v1119_v46 = vmul.f32 %v4735_v11, %v1113_v53  ;;  %v1120_v9 = vmul.f32 %v4738_v15, %v1109_v51  ;;  %7262 = vst [vmem:[#allocation24_spill] sm:$0xff] %v4841_v50  ;;  %v1265_v27 = vsel %vm1258_vm7, %v4511_v14, %v4517_v18 }
 0x465   : > { %1458 = vmatpush.msra.mxu1 %v1234_v10  ;;  %7259 = vst [vmem:[#allocation21_spill] sm:$0xff] %v4811_v44  ;;  %v1311_v49 = vmul.f32 %v4811_v44, %v1301_v61  ;;  %v1309_v12 = vmul.f32 %v4811_v44, %v1300_v38  ;;  %v1307_v48 = vmul.f32 %v4811_v44, %v1299_v36  ;;  %v4843_v10 = vld [vmem:[#allocation2 + $0x38] sm:$0xff]  ;;  %v1084_v38 = vld [vmem:[#allocation2 + $0x50] sm:$0xff] }
 0x466   : > { %1459 = vmatmul.f32.vlgmr.msra.gmra.mxu1 %v4772_v57  ;;  %1429 = vmatpush.msra.mxu0 %v1119_v46 }
 0x467   : > { %1516 = vmatpush.msrb.mxu3 %v1120_v9  ;;  %1430 = vmatmul.f32.vlgmr.msra.gmra.mxu0 %v1074_v25  ;;  %v1354_v8 = vpop.permute.xlu2 %1353  ;;  %v1305_v9 = vmul.f32 %v4811_v44, %v1298_v2 }
 0x468   : > { %1517 = vmatmul.f32.vlgmr.msrb.gmra.mxu3 %v1074_v25  ;;  %1530 = vmatpush.msrb.mxu0 %v1346_v43 }
 0x46a   : > { %v1352_v13 = vpop.permute.xlu1 %1351  ;;  %1531 = vmatpush.msrb.mxu0 %v1344_v34  ;;  %v1350_v45 = vpop.permute.xlu0 %1349 }
 0x46b   : > { %v1366_v25 = vsel %vm1363_vm9, %v1352_v13, %v1360_v41  ;;  %v1370_v17 = vsel %vm1363_vm9, %v1360_v41, %v1352_v13  ;;  %v1276_v41 = vmul.f32 %v4841_v50, %v1266_v29  ;;  %v1264_v13 = vsel %vm1258_vm7, %v4495_v5, %v4463_v60 }
 0x46c   : > { %1532 = vmatpush.msrb.mxu0 %v1342_v63  ;;  %v1378_v14 = vmul.f32 %v4832_v20, %v1366_v25  ;;  %v1379_v18 = vmul.f32 %v4837_v54, %v1370_v17  ;;  %v1274_v63 = vmul.f32 %v4841_v50, %v1265_v27 }
 0x46e   : > { %1462 = vmatmul.f32.gmra.mxu1 %v4803_v59  ;;  %1533 = vmatpush.msrb.mxu0 %v1340_v62 }
 0x46f   : > { %1433 = vmatmul.f32.gmra.mxu0 %v1077_v7  ;;  %v1348_v5 = vpop.permute.xlu2 %1347 }
 0x470   : > { %1520 = vmatmul.f32.gmra.mxu3 %v1077_v7  ;;  %1534 = vmatpush.msrb.mxu0 %v1311_v49  ;;  %v1272_v7 = vmul.f32 %v4841_v50, %v1264_v13 }
 0x472   : > { %1535 = vmatpush.msrb.mxu0 %v1309_v12  ;;  %v1362_v4 = vpop.permute.xlu0 %1361  ;;  %v1358_v46 = vpop.permute.xlu1 %1357  ;;  %v1076_v12 = vld [vmem:[#allocation2 + $0x10] sm:$0xff] }
 0x473   : > { %v1367_v51 = vsel %vm1363_vm9, %v1354_v8, %v1362_v4  ;;  %v1371_v53 = vsel %vm1363_vm9, %v1362_v4, %v1354_v8  ;;  %v1365_v34 = vsel %vm1363_vm9, %v1350_v45, %v1358_v46  ;;  %v1369_v6 = vsel %vm1363_vm9, %v1358_v46, %v1350_v45  ;;  %v1083_v8 = vld [vmem:[#allocation2 + $0x48] sm:$0xff]  ;;  %v1082_v46 = vld [vmem:[#allocation2 + $0x40] sm:$0xff] }
 0x474   : > { %v1380_v43 = vmul.f32 %v4832_v20, %v1367_v51  ;;  %v1381_v19 = vmul.f32 %v4837_v54, %v1371_v53  ;;  %1536 = vmatpush.msrb.mxu0 %v1307_v48  ;;  %v1263_v45 = vsel %vm1258_vm7, %v4451_v55, %v4453_v56  ;;  %v1376_v61 = vmul.f32 %v4832_v20, %v1365_v34  ;;  %v1079_v53 = vld [vmem:[#allocation2 + $0x28] sm:$0xff] }
 0x475   : > { %v1377_v60 = vmul.f32 %v4837_v54, %v1369_v6  ;;  %v1270_v55 = vmul.f32 %v4841_v50, %v1263_v45  ;;  %v4892_v4 = vperm.slane %v4531_v26, 4 }
 0x476   : > { %1465 = vmatmul.f32.gmra.mxu1 %v4843_v10  ;;  %1537 = vmatpush.msrb.mxu0 %v1305_v9  ;;  %v1085_v9 = vld [vmem:[#allocation2 + $0x58] sm:$0xff] }
 0x477   : > { %1484 = vmatpush.msrb.mxu2 %v1380_v43  ;;  %1571 = vmatpush.msrb.mxu1 %v1381_v19  ;;  %7263 = vst [vmem:[#allocation25_spill] sm:$0xff] %v4892_v4  ;;  %v1241_v48 = vmul.f32 %v4892_v4, %v4388_v42  ;;  %v1239_v29 = vmul.f32 %v4892_v4, %v4354_v24  ;;  %v3688_v42 = vld [vmem:[%s7144_s8 + $0x28] sm:$0xff]  ;;  %v3687_v24 = vld [vmem:[%s7144_s8 + $0x20] sm:$0xff] }
 0x478   : > { %1436 = vmatmul.f32.gmra.mxu0 %v1080_v16  ;;  %1523 = vmatmul.f32.gmra.mxu3 %v1080_v16  ;;  %v1237_v26 = vmul.f32 %v4892_v4, %v4324_v30  ;;  %v1235_v51 = vmul.f32 %v4892_v4, %v4297_v22 }
 0x479   : > { %1538 = vmatpush.msrb.mxu0 %v1276_v41  ;;  %1485 = vmatpush.msrb.mxu2 %v1378_v14 }
 0x47a   : > { %1572 = vmatpush.msrb.mxu1 %v1379_v18  ;;  %v1356_v62 = vpop.permute.xlu0 %1355  ;;  %v4913_v25 = vpop.permute.xlu1 %1399 }
 0x47b   : > { %1539 = vmatpush.msrb.mxu0 %v1274_v63  ;;  %v1364_v49 = vsel %vm1363_vm9, %v1348_v5, %v1356_v62  ;;  %v1368_v36 = vsel %vm1363_vm9, %v1356_v62, %v1348_v5  ;;  %1486 = vmatpush.msrb.mxu2 %v1376_v61 }
 0x47c   : > { %1573 = vmatpush.msrb.mxu1 %v1377_v60  ;;  %v1374_v56 = vmul.f32 %v4832_v20, %v1364_v49  ;;  %v1375_v2 = vmul.f32 %v4837_v54, %v1368_v36  ;;  %v1395_v60 = vpop.permute.xlu2 %1394 }
 0x47d   : > { %1540 = vmatpush.msrb.mxu0 %v1272_v7 }
 0x47e   : > { %1468 = vmatmul.f32.gmra.mxu1 %v1084_v38  ;;  %1487 = vmatpush.msrb.mxu2 %v1374_v56 }
 0x47f   : > { %1541 = vmatpush.msrb.mxu0 %v1270_v55  ;;  %1574 = vmatpush.msrb.mxu1 %v1375_v2 }
 0x480   : > { %1439 = vmatmul.f32.gmra.mxu0 %v1083_v8  ;;  %3679 = vmatmul.msk.f32.vlgmr.msrb.gmra.mxu2 %vm667_vm1, %v1076_v12 }
 0x481   : > { %1526 = vmatmul.f32.gmra.mxu3 %v1083_v8  ;;  %1542 = vmatpush.msrb.mxu0 %v1241_v48 }
 0x482   : > { %v1385_v17 = vpop.permute.xlu1 %1384  ;;  %v1390_v6 = vpop.permute.xlu0 %1389 }
 0x483   : > { %1543 = vmatpush.msrb.mxu0 %v1239_v29 }
 0x485   : > { %1544 = vmatpush.msrb.mxu0 %v1237_v26 }
 0x486   : > { %3683 = vmatmul.msk.f32.vlgmr.msrb.gmra.mxu1 %vm667_vm1, %v1076_v12 }
 0x487   : > { %1545 = vmatpush.msrb.mxu0 %v1235_v51 }
 0x488   : > { %3680 = vmatmul.msk.f32.gmra.mxu2 %vm667_vm1, %v1079_v53  ;;  %1546 = vmatmul.f32.vlgmr.msrb.gmra.mxu0 %v4772_v57 }
 0x48e   : > { %3684 = vmatmul.msk.f32.gmra.mxu1 %vm667_vm1, %v1079_v53 }
 0x490   : > { %3681 = vmatmul.msk.f32.gmra.mxu2 %vm667_vm1, %v1082_v46  ;;  %1549 = vmatmul.f32.gmra.mxu0 %v4803_v59 }
 0x496   : > { %3685 = vmatmul.msk.f32.gmra.mxu1 %vm667_vm1, %v1082_v46 }
 0x498   : > { %3682 = vmatmul.msk.f32.gmra.mxu2 %vm667_vm1, %v1085_v9  ;;  %1552 = vmatmul.f32.gmra.mxu0 %v4843_v10 }
 0x49e   : > { %3686 = vmatmul.msk.f32.gmra.mxu1 %vm667_vm1, %v1085_v9 }
 0x4a0   : > { %1555 = vmatmul.f32.gmra.mxu0 %v1084_v38 }
 0x4e3   : > { %v1460_v43 = vpop.f32.mrf.mxu1 }
 0x4e4   : > { %v1431_v57 = vpop.f32.mrf.mxu0 }
 0x4e5   : > { %v1432_v19 = vadd.f32 %v1431_v57, %v1385_v17 }
 0x4e7   : > { %v1461_v16 = vadd.f32 %v1460_v43, %v1432_v19 }
 0x4eb   : > { %v1463_v14 = vpop.f32.mrf.mxu1  ;;  %v1518_v26 = vpop.f32.mrf.mxu3 }
 0x4ec   : > { %v1434_v27 = vpop.f32.mrf.mxu0  ;;  %v1519_v53 = vadd.f32 %v1518_v26, %v1385_v17 }
 0x4ed   : > { %v1435_v41 = vadd.f32 %v1434_v27, %v1390_v6 }
 0x4ef   : > { %v1464_v10 = vadd.f32 %v1463_v14, %v1435_v41 }
 0x4f3   : > { %v1466_v62 = vpop.f32.mrf.mxu1  ;;  %v1521_v57 = vpop.f32.mrf.mxu3 }
 0x4f5   : > { %v1437_v61 = vpop.f32.mrf.mxu0 }
 0x4f6   : > { %v1438_v5 = vadd.f32 %v1437_v61, %v1395_v60 }
 0x4f8   : > { %v1467_v38 = vadd.f32 %v1466_v62, %v1438_v5 }
 0x4fb   : > { %v1469_v2 = vpop.f32.mrf.mxu1 }
 0x4fd   : > { %v1440_v55 = vpop.f32.mrf.mxu0 }
 0x4fe   : > { %v1441_v56 = vadd.f32 %v1440_v55, %v4913_v25 }
 0x500   : > { %v1470_v12 = vadd.f32 %v1469_v2, %v1441_v56 }
 0x503   : > { %v1489_v34 = vpop.f32.mrf.mxu2  ;;  %v1576_v9 = vpop.f32.mrf.mxu1 }
 0x504   : > { %v1490_v59 = vadd.f32 %v1489_v34, %v1461_v16  ;;  %v1522_v16 = vadd.f32 %v1521_v57, %v1390_v6  ;;  %v1524_v6 = vpop.f32.mrf.mxu3 }
 0x505   : > { %v1547_v51 = vpop.f32.mrf.mxu0 }
 0x506   : > { %v4915_v13 = vmax.f32 %v1490_v59, 0.0  ;;  %v1548_v46 = vadd.f32 %v1547_v51, %v1519_v53 }
 0x508   : > { %7264 = vst [vmem:[#allocation26_spill] sm:$0xff] %v4915_v13  ;;  %1646 = vrot.lane.b32.xlu2 %v4915_v13, %s7187_s14  ;;  %1678 = vrot.lane.b32.xlu1 %v4915_v13, %s7158_s22  ;;  %v1577_v43 = vadd.f32 %v1576_v9, %v1548_v46 }
 0x509   : > { %1710 = vrot.lane.b32.xlu0 %v4915_v13, %s7156_s30 }
 0x50a   : > { %v4966_v27 = vmax.f32 %v1577_v43, 0.0 }
 0x50b   : > { %v1492_v18 = vpop.f32.mrf.mxu2  ;;  %v1579_v59 = vpop.f32.mrf.mxu1 }
 0x50c   : > { %v1493_v63 = vadd.f32 %v1492_v18, %v1464_v10  ;;  %7269 = vst [vmem:[#allocation29_spill] sm:$0xff] %v4966_v27  ;;  %v1525_v10 = vadd.f32 %v1524_v6, %v1395_v60  ;;  %v1527_v60 = vpop.f32.mrf.mxu3 }
 0x50d   : > { %v1550_v19 = vpop.f32.mrf.mxu0 }
 0x50e   : > { %v4923_v45 = vmax.f32 %v1493_v63, 0.0  ;;  %v1551_v34 = vadd.f32 %v1550_v19, %v1522_v16 }
 0x510   : > { %7265 = vst [vmem:[#allocation27_spill] sm:$0xff] %v4923_v45  ;;  %1712 = vrot.lane.b32.xlu2 %v4923_v45, %s7156_s30  ;;  %1782 = vrot.lane.b32.xlu1 %v4915_v13, %s7154_s13  ;;  %v1580_v17 = vadd.f32 %v1579_v59, %v1551_v34 }
 0x511   : > { %1814 = vrot.lane.b32.xlu0 %v4915_v13, %s7266_s16 }
 0x512   : > { %v4974_v41 = vmax.f32 %v1580_v17, 0.0 }
 0x513   : > { %v1495_v7 = vpop.f32.mrf.mxu2  ;;  %v1582_v63 = vpop.f32.mrf.mxu1 }
 0x514   : > { %v1496_v49 = vadd.f32 %v1495_v7, %v1467_v38  ;;  %7270 = vst [vmem:[#allocation30_spill] sm:$0xff] %v4974_v41  ;;  %v1528_v7 = vadd.f32 %v1527_v60, %v4913_v25 }
 0x515   : > { %v1553_v14 = vpop.f32.mrf.mxu0 }
 0x516   : > { %v4937_v36 = vmax.f32 %v1496_v49, 0.0  ;;  %v1554_v18 = vadd.f32 %v1553_v14, %v1525_v10 }
 0x518   : > { %1816 = vrot.lane.b32.xlu2 %v4923_v45, %s7266_s16  ;;  %1648 = vrot.lane.b32.xlu1 %v4923_v45, %s7187_s14  ;;  %7267 = vst [vmem:[#allocation28_spill] sm:$0xff] %v4937_v36  ;;  %v1583_v61 = vadd.f32 %v1582_v63, %v1554_v18 }
 0x519   : > { %1680 = vrot.lane.b32.xlu0 %v4923_v45, %s7158_s22 }
 0x51a   : > { %v4988_v5 = vmax.f32 %v1583_v61, 0.0 }
 0x51b   : > { %v1498_v8 = vpop.f32.mrf.mxu2  ;;  %v1585_v49 = vpop.f32.mrf.mxu1 }
 0x51c   : > { %v1499_v48 = vadd.f32 %v1498_v8, %v1470_v12  ;;  %7271 = vst [vmem:[#allocation31_spill] sm:$0xff] %v4988_v5 }
 0x51d   : > { %v1556_v62 = vpop.f32.mrf.mxu0 }
 0x51e   : > { %v4952_v29 = vmax.f32 %v1499_v48, 0.0  ;;  %v1557_v38 = vadd.f32 %v1556_v62, %v1528_v7  ;;  %v3689_v62 = vld [vmem:[%s7144_s8 + $0x30] sm:$0xff]  ;;  %v3690_v7 = vld [vmem:[%s7144_s8 + $0x38] sm:$0xff] }
 0x520   : > { %1682 = vrot.lane.b32.xlu2 %v4937_v36, %s7158_s22  ;;  %1714 = vrot.lane.b32.xlu1 %v4937_v36, %s7156_s30  ;;  %v1586_v56 = vadd.f32 %v1585_v49, %v1557_v38 }
 0x521   : > { %1784 = vrot.lane.b32.xlu0 %v4923_v45, %s7154_s13 }
 0x522   : > { %v5005_v2 = vmax.f32 %v1586_v56, 0.0 }
 0x524   : > { %7272 = vst [vmem:[#allocation32_spill] sm:$0xff] %v5005_v2 }
 0x528   : > { %1786 = vrot.lane.b32.xlu2 %v4937_v36, %s7154_s13  ;;  %1818 = vrot.lane.b32.xlu1 %v4937_v36, %s7266_s16 }
 0x529   : > { %1650 = vrot.lane.b32.xlu0 %v4937_v36, %s7187_s14 }
 0x530   : > { %1716 = vrot.lane.b32.xlu2 %v4952_v29, %s7156_s30  ;;  %1684 = vrot.lane.b32.xlu1 %v4952_v29, %s7158_s22 }
 0x531   : > { %1754 = vrot.lane.b32.xlu0 %v4937_v36, %s7268_s7 }
 0x538   : > { %1652 = vrot.lane.b32.xlu2 %v4952_v29, %s7187_s14  ;;  %1788 = vrot.lane.b32.xlu1 %v4952_v29, %s7154_s13 }
 0x539   : > { %1820 = vrot.lane.b32.xlu0 %v4952_v29, %s7266_s16 }
 0x540   : > { %1756 = vrot.lane.b32.xlu2 %v4952_v29, %s7268_s7  ;;  %1718 = vrot.lane.b32.xlu1 %v4966_v27, %s7156_s30 }
 0x541   : > { %1654 = vrot.lane.b32.xlu0 %v4966_v27, %s7187_s14 }
 0x548   : > { %1686 = vrot.lane.b32.xlu2 %v4966_v27, %s7158_s22  ;;  %1822 = vrot.lane.b32.xlu1 %v4966_v27, %s7266_s16 }
 0x549   : > { %1720 = vrot.lane.b32.xlu0 %v4974_v41, %s7156_s30 }
 0x550   : > { %1790 = vrot.lane.b32.xlu2 %v4966_v27, %s7154_s13  ;;  %1688 = vrot.lane.b32.xlu1 %v4974_v41, %s7158_s22 }
 0x551   : > { %1824 = vrot.lane.b32.xlu0 %v4974_v41, %s7266_s16 }
 0x558   : > { %1656 = vrot.lane.b32.xlu2 %v4974_v41, %s7187_s14  ;;  %1792 = vrot.lane.b32.xlu1 %v4974_v41, %s7154_s13 }
 0x559   : > { %1690 = vrot.lane.b32.xlu0 %v4988_v5, %s7158_s22 }
 0x560   : > { %1722 = vrot.lane.b32.xlu2 %v4988_v5, %s7156_s30  ;;  %1658 = vrot.lane.b32.xlu1 %v4988_v5, %s7187_s14 }
 0x561   : > { %1794 = vrot.lane.b32.xlu0 %v4988_v5, %s7154_s13 }
 0x562   : > { %v5003_v55 = vpop.permute.xlu2 %1646 }
 0x568   : > { %1826 = vrot.lane.b32.xlu2 %v4988_v5, %s7266_s16  ;;  %1762 = vrot.lane.b32.xlu1 %v4988_v5, %s7268_s7 }
 0x569   : > { %1724 = vrot.lane.b32.xlu0 %v5005_v2, %s7156_s30  ;;  %s7289_s30 = smov 15  }
 0x56a   : > { %v5013_v25 = vpop.permute.xlu2 %1712 }
 0x570   : > { %1760 = vrot.lane.b32.xlu2 %v4974_v41, %s7268_s7  ;;  %1828 = vrot.lane.b32.xlu1 %v5005_v2, %s7266_s16 }
 0x571   : > { %1620 = vrot.lane.b32.xlu0 %v4952_v29, %s7273_s29 }
 0x572   : > { %v5021_v8 = vpop.permute.xlu2 %1816 }
 0x578   : > { %1692 = vrot.lane.b32.xlu2 %v5005_v2, %s7158_s22  ;;  %1752 = vrot.lane.b32.xlu1 %v4923_v45, %s7268_s7  ;;  %s7290_s22 = smov 1  }
 0x579   : > { %1758 = vrot.lane.b32.xlu0 %v4966_v27, %s7268_s7 }
 0x57a   : > { %v5029_v12 = vpop.permute.xlu2 %1682  ;;  %v5031_v48 = vpop.permute.xlu1 %1678 }
 0x57b   : > { %v5033_v26 = vpop.permute.xlu0 %1710 }
 0x580   : > { %1796 = vrot.lane.b32.xlu2 %v5005_v2, %s7154_s13  ;;  %1618 = vrot.lane.b32.xlu1 %v4937_v36, %s7273_s29  ;;  %s7293_s13 = smov 113  }
 0x581   : > { %1660 = vrot.lane.b32.xlu0 %v5005_v2, %s7187_s14 }
 0x582   : > { %v5041_v51 = vpop.permute.xlu2 %1786  ;;  %v5043_v53 = vpop.permute.xlu1 %1782 }
 0x583   : > { %v5045_v46 = vpop.permute.xlu0 %1814 }
 0x588   : > { %1750 = vrot.lane.b32.xlu2 %v4915_v13, %s7268_s7  ;;  %1628 = vrot.lane.b32.xlu1 %v5005_v2, %s7273_s29 }
 0x589   : > { %1764 = vrot.lane.b32.xlu0 %v5005_v2, %s7268_s7 }
 0x58a   : > { %v1717_v9 = vpop.permute.xlu2 %1716  ;;  %v5053_v57 = vpop.permute.xlu1 %1648 }
 0x58b   : > { %v5055_v43 = vpop.permute.xlu0 %1680 }
 0x590   : > { %1626 = vrot.lane.b32.xlu2 %v4988_v5, %s7273_s29  ;;  %1624 = vrot.lane.b32.xlu1 %v4974_v41, %s7273_s29 }
 0x591   : > { %1616 = vrot.lane.b32.xlu0 %v4923_v45, %s7273_s29 }
 0x592   : > { %v5063_v19 = vpop.permute.xlu2 %1652  ;;  %v1715_v16 = vpop.permute.xlu1 %1714 }
 0x593   : > { %v5065_v34 = vpop.permute.xlu0 %1784 }
 0x598   : > { %1614 = vrot.lane.b32.xlu2 %v4915_v13, %s7273_s29  ;;  %1852 = vrot.lane.b32.xlu1 %v4952_v29, %s3913_s25 }
 0x599   : > { %1622 = vrot.lane.b32.xlu0 %v4966_v27, %s7273_s29 }
 0x59a   : > { %v5073_v59 = vpop.permute.xlu2 %1756  ;;  %v5075_v17 = vpop.permute.xlu1 %1818 }
 0x59b   : > { %v5077_v6 = vpop.permute.xlu0 %1650 }
 0x5a0   : > { %1848 = vrot.lane.b32.xlu2 %v4923_v45, %s3913_s25  ;;  %1858 = vrot.lane.b32.xlu1 %v4988_v5, %s3913_s25 }
 0x5a1   : > { %1850 = vrot.lane.b32.xlu0 %v4937_v36, %s3913_s25 }
 0x5a2   : > { %v5085_v14 = vpop.permute.xlu2 %1686  ;;  %v1685_v10 = vpop.permute.xlu1 %1684 }
 0x5a3   : > { %v5087_v18 = vpop.permute.xlu0 %1754 }
 0x5a8   : > { %1860 = vrot.lane.b32.xlu2 %v5005_v2, %s3913_s25  ;;  %1846 = vrot.lane.b32.xlu1 %v4915_v13, %s3913_s25 }
 0x5a9   : > { %1856 = vrot.lane.b32.xlu0 %v4974_v41, %s3913_s25 }
 0x5aa   : > { %v5095_v63 = vpop.permute.xlu2 %1790  ;;  %v5097_v61 = vpop.permute.xlu1 %1788 }
 0x5ab   : > { %v5099_v60 = vpop.permute.xlu0 %1820 }
 0x5b0   : > { %1854 = vrot.lane.b32.xlu2 %v4966_v27, %s3913_s25  ;;  %1890 = vperm.xlu1 %3796, %v3689_v62  }
 0x5b1   : > { %1895 = vperm.xlu0 %3795, %v3690_v7  }
 0x5b2   : > { %v5109_v38 = vpop.permute.xlu2 %1656  ;;  %v1719_v49 = vpop.permute.xlu1 %1718 }
 0x5b3   : > { %v5111_v56 = vpop.permute.xlu0 %1654 }
 0x5b8   : > { %1885 = vperm.xlu2 %3797, %v3688_v42  }
 0x5b9   : > { %1880 = vperm.xlu0 %3795, %v3687_v24  }
 0x5ba   : > { %v1723_v30 = vpop.permute.xlu2 %1722  ;;  %v5119_v22 = vpop.permute.xlu1 %1822 }
 0x5bb   : > { %v1721_v62 = vpop.permute.xlu0 %1720  ;;  %v1728_v50 = vsel %vm1213_vm2, %v1715_v16, %v1723_v30  ;;  %v1732_v44 = vsel %vm1213_vm2, %v1723_v30, %v1715_v16  ;;  %v1730_v30 = vsel %vm1213_vm2, %v1719_v49, %v5033_v26 }
 0x5bc   : > { %v1727_v45 = vsel %vm1213_vm2, %v5013_v25, %v1721_v62  ;;  %v1731_v36 = vsel %vm1213_vm2, %v1721_v62, %v5013_v25 }
 0x5bd   : > { %v1737_v25 = vmul.f32 %v1727_v45, %v4538_v39 }
 0x5c2   : > { %v5121_v7 = vpop.permute.xlu2 %1826  ;;  %v1689_v37 = vpop.permute.xlu1 %1688 }
 0x5c3   : > { %v5123_v28 = vpop.permute.xlu0 %1824 }
 0x5ca   : > { %v5125_v31 = vpop.permute.xlu2 %1760  ;;  %v5127_v21 = vpop.permute.xlu1 %1792 }
 0x5cb   : > { %v1691_v27 = vpop.permute.xlu0 %1690 }
 0x5d2   : > { %v1693_v41 = vpop.permute.xlu2 %1692  ;;  %v5129_v5 = vpop.permute.xlu1 %1658 }
 0x5d3   : > { %v5131_v2 = vpop.permute.xlu0 %1794  ;;  %v1697_v16 = vsel %vm1178_vm3, %v1685_v10, %v1693_v41 }
 0x5da   : > { %v5133_v24 = vpop.permute.xlu2 %1796  ;;  %v5135_v42 = vpop.permute.xlu1 %1762 }
 0x5db   : > { %v1725_v4 = vpop.permute.xlu0 %1724 }
 0x5dc   : > { %v1729_v35 = vsel %vm1213_vm2, %v1717_v9, %v1725_v4  ;;  %v1733_v54 = vsel %vm1213_vm2, %v1725_v4, %v1717_v9  ;;  %v1738_v4 = vmul.f32 %v1732_v44, %v4535_v33  ;;  %v1736_v9 = vmul.f32 %v1731_v36, %v4535_v33 }
 0x5dd   : > { %v1740_v20 = vmul.f32 %v1733_v54, %v4535_v33  ;;  %v1741_v13 = vmul.f32 %v1729_v35, %v4538_v39  ;;  %v1739_v54 = vmul.f32 %v1728_v50, %v4538_v39  ;;  %v1726_v35 = vsel %vm1213_vm2, %v5033_v26, %v1719_v49 }
 0x5de   : > { %v1734_v50 = vmul.f32 %v1730_v30, %v4535_v33  ;;  %v1832_v26 = vsel %vm1328_vm4, %v5075_v17, %v5121_v7  ;;  %v1700_v49 = vsel %vm1178_vm3, %v1691_v27, %v5029_v12  ;;  %v1831_v30 = vsel %vm1328_vm4, %v5021_v8, %v5123_v28 }
 0x5df   : > { %1910 = vmatpush.msra.mxu2 %v1740_v20  ;;  %1997 = vmatpush.msra.mxu1 %v1741_v13  ;;  %v1701_v20 = vsel %vm1178_vm3, %v1693_v41, %v1685_v10  ;;  %v1735_v41 = vmul.f32 %v1726_v35, %v4538_v39  ;;  %v1696_v10 = vsel %vm1178_vm3, %v5029_v12, %v1691_v27 }
 0x5e0   : > { %v1695_v35 = vsel %vm1178_vm3, %v5055_v43, %v1689_v37  ;;  %v1699_v27 = vsel %vm1178_vm3, %v1689_v37, %v5055_v43  ;;  %v1842_v12 = vmul.f32 %v1832_v26, %v4572_v47  ;;  %v1698_v37 = vsel %vm1178_vm3, %v5085_v14, %v5031_v48 }
 0x5e1   : > { %1911 = vmatpush.msra.mxu2 %v1738_v4  ;;  %1998 = vmatpush.msra.mxu1 %v1739_v54  ;;  %v1708_v4 = vmul.f32 %v1701_v20, %v4568_v58  ;;  %v1709_v54 = vmul.f32 %v1697_v16, %v4589_v32  ;;  %v1707_v16 = vmul.f32 %v1696_v10, %v4589_v32 }
 0x5e2   : > { %v5167_v13 = vpop.permute.xlu2 %1750  ;;  %v5169_v44 = vpop.permute.xlu1 %1828  ;;  %v1694_v20 = vsel %vm1178_vm3, %v5031_v48, %v5085_v14  ;;  %v1840_v43 = vmul.f32 %v1831_v30, %v4572_v47  ;;  %v1704_v26 = vmul.f32 %v1699_v27, %v4568_v58  ;;  %v1800_v48 = vsel %vm1293_vm5, %v5041_v51, %v5131_v2 }
 0x5e3   : > { %v1833_v45 = vsel %vm1328_vm4, %v5099_v60, %v5169_v44  ;;  %1912 = vmatpush.msra.mxu2 %v1736_v9  ;;  %1999 = vmatpush.msra.mxu1 %v1737_v25  ;;  %v5180_v36 = vpop.permute.xlu0 %1620  ;;  %v1830_v9 = vsel %vm1328_vm4, %v5045_v46, %v5119_v22  ;;  %v1706_v25 = vmul.f32 %v1700_v49, %v4568_v58 }
 0x5e4   : > { %v1844_v62 = vmul.f32 %v1833_v45, %v4572_v47  ;;  %v1705_v45 = vmul.f32 %v1695_v35, %v4589_v32  ;;  %v1838_v10 = vmul.f32 %v1830_v9, %v4572_v47  ;;  %v1702_v49 = vmul.f32 %v1698_v37, %v4568_v58 }
 0x5e5   : > { %1913 = vmatpush.msra.mxu2 %v1734_v50  ;;  %2000 = vmatpush.msra.mxu1 %v1735_v41  ;;  %v1801_v50 = vsel %vm1293_vm5, %v5097_v61, %v5133_v24  ;;  %v1810_v35 = vmul.f32 %v1800_v48, %v4639_v3  ;;  %v1798_v27 = vsel %vm1293_vm5, %v5043_v53, %v5095_v63 }
 0x5e6   : > { %1939 = vmatpush.msra.mxu3 %v1844_v62  ;;  %v1703_v62 = vmul.f32 %v1694_v20, %v4589_v32  ;;  %v1664_v20 = vsel %vm1143_vm6, %v5077_v6, %v5129_v5  ;;  %v1668_v37 = vsel %vm1143_vm6, %v5129_v5, %v5077_v6  ;;  %v1667_v5 = vsel %vm1143_vm6, %v5109_v38, %v5053_v57 }
 0x5e7   : > { %1914 = vmatpush.msra.mxu2 %v1708_v4  ;;  %2001 = vmatpush.msra.mxu1 %v1709_v54  ;;  %v1812_v4 = vmul.f32 %v1801_v50, %v4639_v3  ;;  %v1799_v54 = vsel %vm1293_vm5, %v5065_v34, %v5127_v21  ;;  %v1666_v48 = vsel %vm1143_vm6, %v5111_v56, %v5003_v55 }
 0x5e8   : > { %1940 = vmatpush.msra.mxu3 %v1842_v12  ;;  %v1808_v12 = vmul.f32 %v1799_v54, %v4639_v3  ;;  %v1670_v54 = vmul.f32 %v1666_v48, %v4665_v0 }
 0x5e9   : > { %1915 = vmatpush.msra.mxu2 %v1706_v25  ;;  %2002 = vmatpush.msra.mxu1 %v1707_v16  ;;  %v1806_v25 = vmul.f32 %v1798_v27, %v4639_v3 }
 0x5ea   : > { %v5224_v41 = vpop.permute.xlu1 %1752  ;;  %1941 = vmatpush.msra.mxu3 %v1840_v43  ;;  %v1627_v30 = vpop.permute.xlu2 %1626 }
 0x5eb   : > { %1916 = vmatpush.msra.mxu2 %v1704_v26  ;;  %2003 = vmatpush.msra.mxu1 %v1705_v45  ;;  %v5231_v14 = vpop.permute.xlu0 %1758 }
 0x5ec   : > { %1942 = vmatpush.msra.mxu3 %v1838_v10  ;;  %v1663_v10 = vsel %vm1143_vm6, %v5053_v57, %v5109_v38  ;;  %v1672_v57 = vmul.f32 %v1667_v5, %v4665_v0 }
 0x5ed   : > { %1917 = vmatpush.msra.mxu2 %v1702_v49  ;;  %2004 = vmatpush.msra.mxu1 %v1703_v62  ;;  %v1674_v49 = vmul.f32 %v1668_v37, %v4665_v0  ;;  %v1675_v62 = vmul.f32 %v1664_v20, %v4668_v40  ;;  %v1673_v38 = vmul.f32 %v1663_v10, %v4668_v40 }
 0x5ee   : > { %1943 = vmatpush.msra.mxu3 %v1812_v4 }
 0x5f0   : > { %1944 = vmatpush.msra.mxu3 %v1810_v35 }
 0x5f2   : > { %v1619_v9 = vpop.permute.xlu1 %1618  ;;  %1945 = vmatpush.msra.mxu3 %v1808_v12  ;;  %v5275_v6 = vpop.permute.xlu2 %1614 }
 0x5f3   : > { %v1661_v16 = vpop.permute.xlu0 %1660 }
 0x5f4   : > { %v1665_v43 = vsel %vm1143_vm6, %v5063_v19, %v1661_v16  ;;  %v1669_v50 = vsel %vm1143_vm6, %v1661_v16, %v5063_v19  ;;  %1946 = vmatpush.msra.mxu3 %v1806_v25  ;;  %v1662_v19 = vsel %vm1143_vm6, %v5003_v55, %v5111_v56  ;;  %v1768_v55 = vsel %vm1258_vm7, %v5087_v18, %v5135_v42 }
 0x5f5   : > { %v1676_v26 = vmul.f32 %v1669_v50, %v4665_v0  ;;  %v1677_v45 = vmul.f32 %v1665_v43, %v4668_v40  ;;  %v1671_v35 = vmul.f32 %v1662_v19, %v4668_v40  ;;  %v1636_v25 = vsel %vm1108_vm8, %v1627_v30, %v1619_v9 }
 0x5f6   : > { %v1632_v43 = vsel %vm1108_vm8, %v1619_v9, %v1627_v30  ;;  %v1767_v50 = vsel %vm1258_vm7, %v5224_v41, %v5125_v31  ;;  %v1766_v30 = vsel %vm1258_vm7, %v5167_v13, %v5231_v14 }
 0x5f7   : > { %1918 = vmatpush.msra.mxu2 %v1676_v26  ;;  %2005 = vmatpush.msra.mxu1 %v1677_v45  ;;  %v1642_v26 = vmul.f32 %v1636_v25, %v4735_v11  ;;  %v1778_v45 = vmul.f32 %v1768_v55, %v4712_v52  ;;  %v1643_v10 = vmul.f32 %v1632_v43, %v4738_v15 }
 0x5f8   : > { %v1776_v5 = vmul.f32 %v1767_v50, %v4712_v52 }
 0x5f9   : > { %1919 = vmatpush.msra.mxu2 %v1674_v49  ;;  %2006 = vmatpush.msra.mxu1 %v1675_v62  ;;  %v1774_v49 = vmul.f32 %v1766_v30, %v4712_v52  ;;  %v7278_v30 = vld [vmem:[#allocation23_spill] sm:$0xff] }
 0x5fa   : > { %v1629_v4 = vpop.permute.xlu1 %1628  ;;  %v5320_v9 = vpop.permute.xlu2 %1848 }
 0x5fb   : > { %v1633_v56 = vsel %vm1108_vm8, %v5180_v36, %v1629_v4  ;;  %v1637_v27 = vsel %vm1108_vm8, %v1629_v4, %v5180_v36  ;;  %1920 = vmatpush.msra.mxu2 %v1672_v57  ;;  %2007 = vmatpush.msra.mxu1 %v1673_v38  ;;  %v5297_v12 = vpop.permute.xlu0 %1764  ;;  %v1748_v4 = vmul.f32 %v4952_v29, %v4746_v1 }
 0x5fc   : > { %v1769_v16 = vsel %vm1258_vm7, %v5073_v59, %v5297_v12  ;;  %v1644_v20 = vmul.f32 %v1637_v27, %v4735_v11  ;;  %v1645_v37 = vmul.f32 %v1633_v56, %v4738_v15  ;;  %v7275_v56 = vld [vmem:[#allocation27_spill] sm:$0xff] }
 0x5fd   : > { %1921 = vmatpush.msra.mxu2 %v1670_v54  ;;  %2008 = vmatpush.msra.mxu1 %v1671_v35  ;;  %v1780_v36 = vmul.f32 %v1769_v16, %v4712_v52  ;;  %v7274_v35 = vld [vmem:[#allocation28_spill] sm:$0xff]  ;;  %v1744_v27 = vmul.f32 %v7275_v56, %v4746_v1 }
 0x5fe   : > { %v1746_v55 = vmul.f32 %v7274_v35, %v4746_v1 }
 0x5ff   : > { %1922 = vmatpush.msra.mxu2 %v1644_v20  ;;  %1947 = vmatpush.msra.mxu3 %v1780_v36  ;;  %v1837_v20 = vsel %vm1328_vm4, %v5169_v44, %v5099_v60  ;;  %v7276_v36 = vld [vmem:[#allocation26_spill] sm:$0xff] }
 0x600   : > { %2009 = vmatpush.msra.mxu1 %v1645_v37  ;;  %v1742_v50 = vmul.f32 %v7276_v36, %v4746_v1 }
 0x601   : > { %1923 = vmatpush.msra.mxu2 %v1642_v26  ;;  %1948 = vmatpush.msra.mxu3 %v1778_v45  ;;  %v7277_v26 = vld [vmem:[#allocation22_spill] sm:$0xff] }
 0x602   : > { %2010 = vmatpush.msra.mxu1 %v1643_v10  ;;  %v1625_v19 = vpop.permute.xlu1 %1624  ;;  %v1861_v25 = vpop.permute.xlu2 %1860 }
 0x603   : > { %1949 = vmatpush.msra.mxu3 %v1776_v5  ;;  %v1617_v48 = vpop.permute.xlu0 %1616 }
 0x604   : > { %v1631_v62 = vsel %vm1108_vm8, %v1617_v48, %v1625_v19  ;;  %v1635_v57 = vsel %vm1108_vm8, %v1625_v19, %v1617_v48  ;;  %v1597_v48 = vld [vmem:[#allocation2 + $0x60] sm:$0xff] }
 0x605   : > { %1950 = vmatpush.msra.mxu3 %v1774_v49  ;;  %v1640_v38 = vmul.f32 %v1635_v57, %v4735_v11  ;;  %v1641_v54 = vmul.f32 %v1631_v62, %v4738_v15  ;;  %v1836_v49 = vsel %vm1328_vm4, %v5121_v7, %v5075_v17  ;;  %v5361_v62 = vld [vmem:[#allocation2 + $0x68] sm:$0xff]  ;;  %v7279_v57 = vld [vmem:[#allocation20_spill] sm:$0xff]  ;;  %v1834_v7 = vsel %vm1328_vm4, %v5119_v22, %v5045_v46 }
 0x606   : > { %v1843_v17 = vmul.f32 %v1836_v49, %v7279_v57  ;;  %v1839_v56 = vmul.f32 %v1834_v7, %v7279_v57  ;;  %v1599_v49 = vld [vmem:[#allocation2 + $0x70] sm:$0xff] }
 0x607   : > { %1924 = vmatpush.msra.mxu2 %v1640_v38  ;;  %1951 = vmatpush.msra.mxu3 %v1748_v4  ;;  %v1845_v38 = vmul.f32 %v1837_v20, %v7279_v57  ;;  %v1803_v20 = vsel %vm1293_vm5, %v5127_v21, %v5065_v34  ;;  %v1773_v21 = vsel %vm1258_vm7, %v5297_v12, %v5073_v59  ;;  %v1607_v7 = vld [vmem:[#allocation2 + $0xb0] sm:$0xff] }
 0x608   : > { %2011 = vmatpush.msra.mxu1 %v1641_v54 }
 0x609   : > { %1952 = vmatpush.msra.mxu3 %v1746_v55 }
 0x60a   : > { %v1853_v16 = vpop.permute.xlu1 %1852  ;;  %v1855_v34 = vpop.permute.xlu2 %1854 }
 0x60b   : > { %v1865_v29 = vsel %vm1363_vm9, %v1853_v16, %v1861_v25  ;;  %v1869_v37 = vsel %vm1363_vm9, %v1861_v25, %v1853_v16  ;;  %1953 = vmatpush.msra.mxu3 %v1744_v27  ;;  %v1623_v43 = vpop.permute.xlu0 %1622  ;;  %v1600_v27 = vld [vmem:[#allocation2 + $0x78] sm:$0xff]  ;;  %v1804_v25 = vsel %vm1293_vm5, %v5131_v2, %v5041_v51  ;;  %v5391_v16 = vld [vmem:[#allocation2 + $0x80] sm:$0xff] }
 0x60c   : > { %v1876_v45 = vmul.f32 %v7277_v26, %v1865_v29  ;;  %v1877_v10 = vmul.f32 %v7278_v30, %v1869_v37  ;;  %v1630_v5 = vsel %vm1108_vm8, %v5275_v6, %v1623_v43  ;;  %v1634_v60 = vsel %vm1108_vm8, %v1623_v43, %v5275_v6 }
 0x60d   : > { %1954 = vmatpush.msra.mxu3 %v1742_v50  ;;  %v1638_v44 = vmul.f32 %v1634_v60, %v4735_v11  ;;  %v1639_v19 = vmul.f32 %v1630_v5, %v4738_v15  ;;  %v1835_v6 = vsel %vm1328_vm4, %v5123_v28, %v5021_v8  ;;  %v1805_v28 = vsel %vm1293_vm5, %v5133_v24, %v5097_v61  ;;  %v7280_v61 = vld [vmem:[#allocation21_spill] sm:$0xff] }
 0x60e   : > { %1980 = vmatpush.msra.mxu0 %v1876_v45  ;;  %1955 = vmatmul.f32.vlgmr.msra.gmra.mxu3 %v5361_v62  ;;  %v1841_v35 = vmul.f32 %v1835_v6, %v7279_v57  ;;  %v1813_v24 = vmul.f32 %v1805_v28, %v7280_v61  ;;  %v1802_v29 = vsel %vm1293_vm5, %v5095_v63, %v5043_v53  ;;  %v7283_v6 = vld [vmem:[#allocation32_spill] sm:$0xff]  ;;  %v7286_v28 = vld [vmem:[#allocation29_spill] sm:$0xff] }
 0x60f   : > { %2067 = vmatpush.msrb.mxu3 %v1877_v10  ;;  %1925 = vmatpush.msra.mxu2 %v1638_v44  ;;  %v1811_v2 = vmul.f32 %v1804_v25, %v7280_v61  ;;  %v1809_v43 = vmul.f32 %v1803_v20, %v7280_v61  ;;  %v1807_v36 = vmul.f32 %v1802_v29, %v7280_v61  ;;  %v1603_v10 = vld [vmem:[#allocation2 + $0x90] sm:$0xff] }
 0x610   : > { %2012 = vmatpush.msra.mxu1 %v1639_v19  ;;  %1926 = vmatmul.f32.vlgmr.msra.gmra.mxu2 %v1597_v48  ;;  %v1772_v5 = vsel %vm1258_vm7, %v5135_v42, %v5087_v18  ;;  %v1770_v42 = vsel %vm1258_vm7, %v5231_v14, %v5167_v13  ;;  %v7284_v13 = vld [vmem:[#allocation31_spill] sm:$0xff] }
 0x611   : > { %2013 = vmatmul.f32.vlgmr.msra.gmra.mxu1 %v1597_v48  ;;  %2026 = vmatpush.msrb.mxu2 %v1845_v38  ;;  %v1604_v48 = vld [vmem:[#allocation2 + $0x98] sm:$0xff]  ;;  %v1771_v38 = vsel %vm1258_vm7, %v5125_v31, %v5224_v41  ;;  %v1606_v41 = vld [vmem:[#allocation2 + $0xa8] sm:$0xff] }
 0x612   : > { %v1859_v4 = vpop.permute.xlu1 %1858 }
 0x613   : > { %2027 = vmatpush.msrb.mxu2 %v1843_v17  ;;  %v1851_v54 = vpop.permute.xlu0 %1850 }
 0x614   : > { %v1864_v8 = vsel %vm1363_vm9, %v1851_v54, %v1859_v4  ;;  %v1868_v55 = vsel %vm1363_vm9, %v1859_v4, %v1851_v54  ;;  %v1602_v4 = vld [vmem:[#allocation2 + $0x88] sm:$0xff]  ;;  %v7285_v54 = vld [vmem:[#allocation30_spill] sm:$0xff] }
 0x615   : > { %2028 = vmatpush.msrb.mxu2 %v1841_v35  ;;  %v1874_v22 = vmul.f32 %v7277_v26, %v1864_v8  ;;  %v1875_v46 = vmul.f32 %v7278_v30, %v1868_v55  ;;  %v1605_v55 = vld [vmem:[#allocation2 + $0xa0] sm:$0xff] }
 0x616   : > { %1958 = vmatmul.f32.gmra.mxu3 %v5391_v16 }
 0x617   : > { %2029 = vmatpush.msrb.mxu2 %v1839_v56  ;;  %1981 = vmatpush.msra.mxu0 %v1874_v22  ;;  %v1608_v56 = vld [vmem:[#allocation2 + $0xb8] sm:$0xff] }
 0x618   : > { %2068 = vmatpush.msrb.mxu3 %v1875_v46  ;;  %1929 = vmatmul.f32.gmra.mxu2 %v1600_v27 }
 0x619   : > { %2016 = vmatmul.f32.gmra.mxu1 %v1600_v27  ;;  %2030 = vmatpush.msrb.mxu2 %v1813_v24 }
 0x61a   : > { %v1847_v51 = vpop.permute.xlu1 %1846 }
 0x61b   : > { %2031 = vmatpush.msrb.mxu2 %v1811_v2  ;;  %v1857_v37 = vpop.permute.xlu0 %1856  ;;  %v1862_v50 = vsel %vm1363_vm9, %v1847_v51, %v1855_v34  ;;  %v1866_v45 = vsel %vm1363_vm9, %v1855_v34, %v1847_v51  ;;  %v1886_v2 = vpop.permute.xlu2 %1885 }
 0x61c   : > { %v1863_v53 = vsel %vm1363_vm9, %v5320_v9, %v1857_v37  ;;  %v1867_v63 = vsel %vm1363_vm9, %v1857_v37, %v5320_v9  ;;  %v7281_v9 = vld [vmem:[#allocation24_spill] sm:$0xff]  ;;  %v1870_v44 = vmul.f32 %v7277_v26, %v1862_v50  ;;  %v1871_v19 = vmul.f32 %v7278_v30, %v1866_v45 }
 0x61d   : > { %2032 = vmatpush.msrb.mxu2 %v1809_v43  ;;  %v1872_v59 = vmul.f32 %v7277_v26, %v1863_v53  ;;  %v1873_v12 = vmul.f32 %v7278_v30, %v1867_v63  ;;  %v1781_v60 = vmul.f32 %v1773_v21, %v7281_v9  ;;  %v1779_v18 = vmul.f32 %v1772_v5, %v7281_v9  ;;  %v7282_v30 = vld [vmem:[#allocation25_spill] sm:$0xff]  ;;  %v7287_v37 = vld [vmem:[#allocation8_spill] sm:$0xff] }
 0x61e   : > { %1961 = vmatmul.f32.gmra.mxu3 %v1604_v48  ;;  %v1777_v26 = vmul.f32 %v1771_v38, %v7281_v9  ;;  %v1775_v31 = vmul.f32 %v1770_v42, %v7281_v9  ;;  %v1749_v17 = vmul.f32 %v7283_v6, %v7282_v30  ;;  %v1747_v14 = vmul.f32 %v7284_v13, %v7282_v30 }
 0x61f   : > { %2033 = vmatpush.msrb.mxu2 %v1807_v36  ;;  %1982 = vmatpush.msra.mxu0 %v1872_v59  ;;  %v1745_v35 = vmul.f32 %v7285_v54, %v7282_v30  ;;  %v1743_v8 = vmul.f32 %v7286_v28, %v7282_v30  ;;  %v7291_v36 = vld [vmem:[#allocation11_spill] sm:$0xff] }
 0x620   : > { %2069 = vmatpush.msrb.mxu3 %v1873_v12  ;;  %1932 = vmatmul.f32.gmra.mxu2 %v1603_v10 }
 0x621   : > { %2019 = vmatmul.f32.gmra.mxu1 %v1603_v10  ;;  %2034 = vmatpush.msrb.mxu2 %v1781_v60 }
 0x622   : > { %1983 = vmatpush.msra.mxu0 %v1870_v44  ;;  %2070 = vmatpush.msrb.mxu3 %v1871_v19  ;;  %v1891_v59 = vpop.permute.xlu1 %1890  ;;  %v7294_v19 = vld [vmem:[#allocation13_spill] sm:$0xff] }
 0x623   : > { %3691 = vmatmul.msk.f32.vlgmr.msra.gmra.mxu0 %vm667_vm1, %v1599_v49  ;;  %2035 = vmatpush.msrb.mxu2 %v1779_v18  ;;  %v5457_v22 = vpop.permute.xlu0 %1895 }
 0x625   : > { %2036 = vmatpush.msrb.mxu2 %v1777_v26 }
 0x626   : > { %1964 = vmatmul.f32.gmra.mxu3 %v1607_v7 }
 0x627   : > { %2037 = vmatpush.msrb.mxu2 %v1775_v31 }
 0x628   : > { %1935 = vmatmul.f32.gmra.mxu2 %v1606_v41 }
 0x629   : > { %2022 = vmatmul.f32.gmra.mxu1 %v1606_v41  ;;  %2038 = vmatpush.msrb.mxu2 %v1749_v17  ;;  %v7296_v41 = vld [vmem:[#allocation15_spill] sm:$0xff] }
 0x62b   : > { %3692 = vmatmul.msk.f32.gmra.mxu0 %vm667_vm1, %v1602_v4  ;;  %2039 = vmatpush.msrb.mxu2 %v1747_v14  ;;  %v1881_v46 = vpop.permute.xlu0 %1880 }
 0x62d   : > { %2040 = vmatpush.msrb.mxu2 %v1745_v35 }
 0x62e   : > { %3695 = vmatmul.msk.f32.vlgmr.msrb.gmra.mxu3 %vm667_vm1, %v1599_v49 }
 0x62f   : > { %2041 = vmatpush.msrb.mxu2 %v1743_v8 }
 0x630   : > { %2042 = vmatmul.f32.vlgmr.msrb.gmra.mxu2 %v5361_v62 }
 0x633   : > { %3693 = vmatmul.msk.f32.gmra.mxu0 %vm667_vm1, %v1605_v55 }
 0x636   : > { %3696 = vmatmul.msk.f32.gmra.mxu3 %vm667_vm1, %v1602_v4 }
 0x638   : > { %2045 = vmatmul.f32.gmra.mxu2 %v5391_v16 }
 0x63b   : > { %3694 = vmatmul.msk.f32.gmra.mxu0 %vm667_vm1, %v1608_v56 }
 0x63e   : > { %3697 = vmatmul.msk.f32.gmra.mxu3 %vm667_vm1, %v1605_v55  ;;  %v7298_v55 = vld [vmem:[#allocation9_spill] sm:$0xff] }
 0x640   : > { %2048 = vmatmul.f32.gmra.mxu2 %v1604_v48 }
 0x646   : > { %3698 = vmatmul.msk.f32.gmra.mxu3 %vm667_vm1, %v1608_v56 }
 0x648   : > { %2051 = vmatmul.f32.gmra.mxu2 %v1607_v7 }
 0x68e   : > { %v2014_v17 = vpop.f32.mrf.mxu1 }
 0x68f   : > { %v2015_v4 = vadd.f32 %v2014_v17, %v1881_v46 }
 0x691   : > { %v1956_v27 = vpop.f32.mrf.mxu3 }
 0x693   : > { %v1927_v62 = vpop.f32.mrf.mxu2 }
 0x694   : > { %v1928_v25 = vadd.f32 %v1927_v62, %v1881_v46 }
 0x696   : > { %v1957_v24 = vadd.f32 %v1956_v27, %v1928_v25  ;;  %v2017_v54 = vpop.f32.mrf.mxu1  ;;  %v7300_v25 = vld [vmem:[#allocation10_spill] sm:$0xff] }
 0x697   : > { %v2018_v8 = vadd.f32 %v2017_v54, %v1886_v2 }
 0x699   : > { %v1959_v21 = vpop.f32.mrf.mxu3 }
 0x69b   : > { %v1930_v20 = vpop.f32.mrf.mxu2 }
 0x69c   : > { %v1931_v51 = vadd.f32 %v1930_v20, %v1886_v2 }
 0x69e   : > { %v1960_v34 = vadd.f32 %v1959_v21, %v1931_v51  ;;  %v2020_v20 = vpop.f32.mrf.mxu1  ;;  %v7302_v21 = vld [vmem:[#allocation12_spill] sm:$0xff] }
 0x6a0   : > { %v1985_v29 = vpop.f32.mrf.mxu0 }
 0x6a1   : > { %v1986_v16 = vadd.f32 %v1985_v29, %v1957_v24  ;;  %v1962_v10 = vpop.f32.mrf.mxu3 }
 0x6a3   : > { %v5460_v43 = vadd.f32 %v1986_v16, %v7287_v37  ;;  %v1933_v45 = vpop.f32.mrf.mxu2  ;;  %v2021_v16 = vadd.f32 %v2020_v20, %v1891_v59  ;;  %v3702_v20 = vld [vmem:[%s7144_s8 + $0x58] sm:$0xff] }
 0x6a4   : > { %v1934_v12 = vadd.f32 %v1933_v45, %v1891_v59 }
 0x6a5   : > { %7288 = vst [vmem:[#allocation28_spill] sm:$0xff] %v5460_v43  ;;  %2142 = vrot.lane.b32.xlu1 %v5460_v43, %s7187_s14  ;;  %2174 = vrot.lane.b32.xlu0 %v5460_v43, %s7289_s30 }
 0x6a6   : > { %2206 = vrot.lane.b32.xlu2 %v5460_v43, %s7290_s22  ;;  %v1963_v60 = vadd.f32 %v1962_v10, %v1934_v12 }
 0x6a8   : > { %v1988_v53 = vpop.f32.mrf.mxu0 }
 0x6a9   : > { %v1989_v63 = vadd.f32 %v1988_v53, %v1960_v34  ;;  %v1965_v18 = vpop.f32.mrf.mxu3  ;;  %v2023_v53 = vpop.f32.mrf.mxu1 }
 0x6ab   : > { %v5469_v50 = vadd.f32 %v1989_v63, %v7291_v36  ;;  %v1936_v49 = vpop.f32.mrf.mxu2  ;;  %v2024_v36 = vadd.f32 %v2023_v53, %v5457_v22 }
 0x6ac   : > { %v1937_v38 = vadd.f32 %v1936_v49, %v5457_v22 }
 0x6ad   : > { %7292 = vst [vmem:[#allocation27_spill] sm:$0xff] %v5469_v50  ;;  %2208 = vrot.lane.b32.xlu1 %v5469_v50, %s7290_s22  ;;  %2278 = vrot.lane.b32.xlu0 %v5460_v43, %s7293_s13 }
 0x6ae   : > { %2310 = vrot.lane.b32.xlu2 %v5460_v43, %s7266_s16  ;;  %v1966_v26 = vadd.f32 %v1965_v18, %v1937_v38 }
 0x6b0   : > { %v1991_v5 = vpop.f32.mrf.mxu0 }
 0x6b1   : > { %v1992_v44 = vadd.f32 %v1991_v5, %v1963_v60  ;;  %v2072_v14 = vpop.f32.mrf.mxu3  ;;  %v7304_v5 = vld [vmem:[#allocation14_spill] sm:$0xff] }
 0x6b3   : > { %v5484_v48 = vadd.f32 %v1992_v44, %v7294_v19  ;;  %v2043_v7 = vpop.f32.mrf.mxu2 }
 0x6b4   : > { %v2044_v13 = vadd.f32 %v2043_v7, %v2015_v4 }
 0x6b5   : > { %2312 = vrot.lane.b32.xlu1 %v5469_v50, %s7266_s16  ;;  %2144 = vrot.lane.b32.xlu0 %v5469_v50, %s7187_s14  ;;  %7295 = vst [vmem:[#allocation26_spill] sm:$0xff] %v5484_v48 }
 0x6b6   : > { %2176 = vrot.lane.b32.xlu2 %v5469_v50, %s7289_s30  ;;  %v2073_v35 = vadd.f32 %v2072_v14, %v2044_v13 }
 0x6b8   : > { %v1994_v42 = vpop.f32.mrf.mxu0  ;;  %v5515_v56 = vadd.f32 %v2073_v35, %v7298_v55 }
 0x6b9   : > { %v1995_v31 = vadd.f32 %v1994_v42, %v1966_v26  ;;  %v2075_v46 = vpop.f32.mrf.mxu3 }
 0x6ba   : > { %7299 = vst [vmem:[#allocation23_spill] sm:$0xff] %v5515_v56 }
 0x6bb   : > { %v5500_v6 = vadd.f32 %v1995_v31, %v7296_v41  ;;  %v2046_v28 = vpop.f32.mrf.mxu2 }
 0x6bc   : > { %v2047_v62 = vadd.f32 %v2046_v28, %v2018_v8 }
 0x6bd   : > { %2178 = vrot.lane.b32.xlu1 %v5484_v48, %s7289_s30  ;;  %2210 = vrot.lane.b32.xlu0 %v5484_v48, %s7290_s22  ;;  %7297 = vst [vmem:[#allocation22_spill] sm:$0xff] %v5500_v6 }
 0x6be   : > { %2280 = vrot.lane.b32.xlu2 %v5469_v50, %s7293_s13  ;;  %v2076_v27 = vadd.f32 %v2075_v46, %v2047_v62 }
 0x6c0   : > { %v5524_v24 = vadd.f32 %v2076_v27, %v7300_v25  ;;  %v3701_v25 = vld [vmem:[%s7144_s8 + $0x50] sm:$0xff] }
 0x6c1   : > { %v2078_v51 = vpop.f32.mrf.mxu3 }
 0x6c2   : > { %7301 = vst [vmem:[#allocation20_spill] sm:$0xff] %v5524_v24 }
 0x6c3   : > { %v2049_v29 = vpop.f32.mrf.mxu2 }
 0x6c4   : > { %v2050_v2 = vadd.f32 %v2049_v29, %v2021_v16 }
 0x6c5   : > { %2282 = vrot.lane.b32.xlu1 %v5484_v48, %s7293_s13  ;;  %2314 = vrot.lane.b32.xlu0 %v5484_v48, %s7266_s16 }
 0x6c6   : > { %2146 = vrot.lane.b32.xlu2 %v5484_v48, %s7187_s14  ;;  %v2079_v37 = vadd.f32 %v2078_v51, %v2050_v2  ;;  %v3700_v51 = vld [vmem:[%s7144_s8 + $0x48] sm:$0xff] }
 0x6c8   : > { %v5539_v34 = vadd.f32 %v2079_v37, %v7302_v21  ;;  %v3699_v37 = vld [vmem:[%s7144_s8 + $0x40] sm:$0xff] }
 0x6c9   : > { %v2081_v59 = vpop.f32.mrf.mxu3 }
 0x6ca   : > { %7303 = vst [vmem:[#allocation32_spill] sm:$0xff] %v5539_v34 }
 0x6cb   : > { %v2052_v63 = vpop.f32.mrf.mxu2 }
 0x6cc   : > { %v2053_v45 = vadd.f32 %v2052_v63, %v2024_v36 }
 0x6cd   : > { %2212 = vrot.lane.b32.xlu1 %v5500_v6, %s7290_s22  ;;  %2180 = vrot.lane.b32.xlu0 %v5500_v6, %s7289_s30 }
 0x6ce   : > { %2250 = vrot.lane.b32.xlu2 %v5484_v48, %s7268_s7  ;;  %v2082_v12 = vadd.f32 %v2081_v59, %v2053_v45 }
 0x6d0   : > { %v5557_v60 = vadd.f32 %v2082_v12, %v7304_v5 }
 0x6d2   : > { %7305 = vst [vmem:[#allocation31_spill] sm:$0xff] %v5557_v60 }
 0x6d5   : > { %2148 = vrot.lane.b32.xlu1 %v5500_v6, %s7187_s14  ;;  %2284 = vrot.lane.b32.xlu0 %v5500_v6, %s7293_s13 }
 0x6d6   : > { %2316 = vrot.lane.b32.xlu2 %v5500_v6, %s7266_s16 }
 0x6dd   : > { %2252 = vrot.lane.b32.xlu1 %v5500_v6, %s7268_s7  ;;  %2214 = vrot.lane.b32.xlu0 %v5515_v56, %s7290_s22 }
 0x6de   : > { %2150 = vrot.lane.b32.xlu2 %v5515_v56, %s7187_s14 }
 0x6e5   : > { %2182 = vrot.lane.b32.xlu1 %v5515_v56, %s7289_s30  ;;  %2318 = vrot.lane.b32.xlu0 %v5515_v56, %s7266_s16 }
 0x6e6   : > { %2216 = vrot.lane.b32.xlu2 %v5524_v24, %s7290_s22 }
 0x6ed   : > { %2286 = vrot.lane.b32.xlu1 %v5515_v56, %s7293_s13  ;;  %2184 = vrot.lane.b32.xlu0 %v5524_v24, %s7289_s30 }
 0x6ee   : > { %2320 = vrot.lane.b32.xlu2 %v5524_v24, %s7266_s16 }
 0x6f5   : > { %2152 = vrot.lane.b32.xlu1 %v5524_v24, %s7187_s14  ;;  %2288 = vrot.lane.b32.xlu0 %v5524_v24, %s7293_s13 }
 0x6f6   : > { %2186 = vrot.lane.b32.xlu2 %v5539_v34, %s7289_s30 }
 0x6fd   : > { %2218 = vrot.lane.b32.xlu1 %v5539_v34, %s7290_s22  ;;  %2154 = vrot.lane.b32.xlu0 %v5539_v34, %s7187_s14 }
 0x6fe   : > { %2290 = vrot.lane.b32.xlu2 %v5539_v34, %s7293_s13 }
 0x700   : > { %v5554_v10 = vpop.permute.xlu2 %2206 }
 0x705   : > { %2322 = vrot.lane.b32.xlu1 %v5539_v34, %s7266_s16  ;;  %2258 = vrot.lane.b32.xlu0 %v5539_v34, %s7268_s7 }
 0x706   : > { %2220 = vrot.lane.b32.xlu2 %v5557_v60, %s7290_s22 }
 0x708   : > { %v5565_v22 = vpop.permute.xlu2 %2310 }
 0x70d   : > { %2256 = vrot.lane.b32.xlu1 %v5524_v24, %s7268_s7  ;;  %2324 = vrot.lane.b32.xlu0 %v5557_v60, %s7266_s16 }
 0x70e   : > { %2116 = vrot.lane.b32.xlu2 %v5500_v6, %s7273_s29 }
 0x710   : > { %v5573_v44 = vpop.permute.xlu2 %2176 }
 0x715   : > { %2188 = vrot.lane.b32.xlu1 %v5557_v60, %s7289_s30  ;;  %2248 = vrot.lane.b32.xlu0 %v5469_v50, %s7268_s7 }
 0x716   : > { %2254 = vrot.lane.b32.xlu2 %v5515_v56, %s7268_s7 }
 0x717   : > { %v5581_v19 = vpop.permute.xlu1 %2142  ;;  %v5583_v49 = vpop.permute.xlu0 %2174 }
 0x718   : > { %v5585_v38 = vpop.permute.xlu2 %2280 }
 0x71d   : > { %2292 = vrot.lane.b32.xlu1 %v5557_v60, %s7293_s13  ;;  %2114 = vrot.lane.b32.xlu0 %v5484_v48, %s7273_s29 }
 0x71e   : > { %2156 = vrot.lane.b32.xlu2 %v5557_v60, %s7187_s14  ;;  %s3854_s14 = scalar_lea.hbm %s7147_s11, 32 }
 0x71f   : > { %v5593_v18 = vpop.permute.xlu1 %2208  ;;  %v5595_v42 = vpop.permute.xlu0 %2278 }
 0x720   : > { %v5597_v26 = vpop.permute.xlu2 %2146 }
 0x725   : > { %2246 = vrot.lane.b32.xlu1 %v5460_v43, %s7268_s7  ;;  %2124 = vrot.lane.b32.xlu0 %v5557_v60, %s7273_s29 }
 0x726   : > { %2260 = vrot.lane.b32.xlu2 %v5557_v60, %s7268_s7 }
 0x727   : > { %v5605_v31 = vpop.permute.xlu1 %2312  ;;  %v5607_v41 = vpop.permute.xlu0 %2144 }
 0x728   : > { %v5609_v17 = vpop.permute.xlu2 %2250 }
 0x72d   : > { %2122 = vrot.lane.b32.xlu1 %v5539_v34, %s7273_s29  ;;  %2120 = vrot.lane.b32.xlu0 %v5524_v24, %s7273_s29 }
 0x72e   : > { %2112 = vrot.lane.b32.xlu2 %v5469_v50, %s7273_s29 }
 0x72f   : > { %v5617_v7 = vpop.permute.xlu1 %2178  ;;  %v2211_v4 = vpop.permute.xlu0 %2210 }
 0x730   : > { %v5619_v13 = vpop.permute.xlu2 %2316 }
 0x735   : > { %2110 = vrot.lane.b32.xlu1 %v5460_v43, %s7273_s29  ;;  %2348 = vrot.lane.b32.xlu0 %v5500_v6, %s3913_s25 }
 0x736   : > { %2118 = vrot.lane.b32.xlu2 %v5515_v56, %s7273_s29 }
 0x737   : > { %v5627_v14 = vpop.permute.xlu1 %2282  ;;  %v5629_v54 = vpop.permute.xlu0 %2314 }
 0x738   : > { %v5631_v35 = vpop.permute.xlu2 %2150 }
 0x73d   : > { %2344 = vrot.lane.b32.xlu1 %v5469_v50, %s3913_s25  ;;  %2354 = vrot.lane.b32.xlu0 %v5539_v34, %s3913_s25 }
 0x73e   : > { %2346 = vrot.lane.b32.xlu2 %v5484_v48, %s3913_s25 }
 0x73f   : > { %v2213_v28 = vpop.permute.xlu1 %2212  ;;  %v5639_v8 = vpop.permute.xlu0 %2180 }
 0x740   : > { %v2217_v55 = vpop.permute.xlu2 %2216 }
 0x741   : > { %v2223_v34 = vsel %vm1213_vm2, %v5593_v18, %v2217_v55 }
 0x745   : > { %2356 = vrot.lane.b32.xlu1 %v5557_v60, %s3913_s25  ;;  %2342 = vrot.lane.b32.xlu0 %v5460_v43, %s3913_s25 }
 0x746   : > { %2352 = vrot.lane.b32.xlu2 %v5524_v24, %s3913_s25 }
 0x747   : > { %v5647_v62 = vpop.permute.xlu1 %2148  ;;  %v5649_v46 = vpop.permute.xlu0 %2284 }
 0x748   : > { %v5651_v27 = vpop.permute.xlu2 %2320 }
 0x74d   : > { %2350 = vrot.lane.b32.xlu1 %v5515_v56, %s3913_s25  ;;  %2386 = vperm.xlu0 %3795, %v3701_v25  }
 0x74e   : > { %2391 = vperm.xlu2 %3797, %v3702_v20  }
 0x74f   : > { %v5661_v29 = vpop.permute.xlu1 %2252  ;;  %v2215_v16 = vpop.permute.xlu0 %2214 }
 0x750   : > { %v2187_v2 = vpop.permute.xlu2 %2186  ;;  %v2226_v60 = vsel %vm1213_vm2, %v2215_v16, %v5554_v10 }
 0x755   : > { %2381 = vperm.xlu1 %3796, %v3700_v51  }
 0x756   : > { %2376 = vperm.xlu2 %3797, %v3699_v37  }
 0x757   : > { %v5669_v21 = vpop.permute.xlu1 %2182  ;;  %v5671_v53 = vpop.permute.xlu0 %2318 }
 0x758   : > { %v5673_v63 = vpop.permute.xlu2 %2290 }
 0x75f   : > { %v5675_v36 = vpop.permute.xlu1 %2286  ;;  %v2185_v45 = vpop.permute.xlu0 %2184 }
 0x760   : > { %v2221_v59 = vpop.permute.xlu2 %2220 }
 0x761   : > { %v2225_v12 = vsel %vm1213_vm2, %v2213_v28, %v2221_v59  ;;  %v2229_v5 = vsel %vm1213_vm2, %v2221_v59, %v2213_v28  ;;  %v2227_v28 = vsel %vm1213_vm2, %v2217_v55, %v5593_v18  ;;  %v2233_v55 = vmul.f32 %v2223_v34, %v4538_v39 }
 0x762   : > { %v2236_v25 = vmul.f32 %v2229_v5, %v4535_v33  ;;  %v2237_v20 = vmul.f32 %v2225_v12, %v4538_v39  ;;  %v2232_v18 = vmul.f32 %v2227_v28, %v4535_v33 }
 0x764   : > { %2406 = vmatpush.msrb.mxu0 %v2236_v25  ;;  %2493 = vmatpush.msra.mxu3 %v2237_v20  ;;  %v2222_v20 = vsel %vm1213_vm2, %v5554_v10, %v2215_v16 }
 0x767   : > { %v5683_v51 = vpop.permute.xlu1 %2152  ;;  %v5685_v37 = vpop.permute.xlu0 %2288 }
 0x768   : > { %v5709_v30 = vpop.permute.xlu2 %2116 }
 0x76f   : > { %v2219_v56 = vpop.permute.xlu1 %2218  ;;  %v5687_v24 = vpop.permute.xlu0 %2154 }
 0x770   : > { %v2224_v59 = vsel %vm1213_vm2, %v2211_v4, %v2219_v56  ;;  %v2228_v12 = vsel %vm1213_vm2, %v2219_v56, %v2211_v4  ;;  %v2230_v56 = vmul.f32 %v2226_v60, %v4535_v33  ;;  %v2231_v4 = vmul.f32 %v2222_v20, %v4538_v39  ;;  %v5717_v10 = vpop.permute.xlu2 %2254 }
 0x771   : > { %v2234_v5 = vmul.f32 %v2228_v12, %v4535_v33  ;;  %v2235_v25 = vmul.f32 %v2224_v59, %v4538_v39  ;;  %v2191_v33 = vsel %vm1178_vm3, %v5573_v44, %v2185_v45 }
 0x773   : > { %2407 = vmatpush.msrb.mxu0 %v2234_v5  ;;  %2494 = vmatpush.msra.mxu3 %v2235_v25  ;;  %v2327_v25 = vsel %vm1328_vm4, %v5605_v31, %v5651_v27 }
 0x775   : > { %2408 = vmatpush.msrb.mxu0 %v2232_v18  ;;  %2495 = vmatpush.msra.mxu3 %v2233_v55  ;;  %v2326_v18 = vsel %vm1328_vm4, %v5565_v22, %v5671_v53  ;;  %v2336_v55 = vmul.f32 %v2327_v25, %v4572_v47 }
 0x777   : > { %v5713_v59 = vpop.permute.xlu1 %2322  ;;  %v5715_v12 = vpop.permute.xlu0 %2258  ;;  %2409 = vmatpush.msrb.mxu0 %v2230_v56  ;;  %2496 = vmatpush.msra.mxu3 %v2231_v4 }
 0x778   : > { %v2328_v34 = vsel %vm1328_vm4, %v5629_v54, %v5713_v59  ;;  %v2157_v39 = vpop.permute.xlu2 %2156 }
 0x779   : > { %v2338_v20 = vmul.f32 %v2328_v34, %v4572_v47  ;;  %v2196_v34 = vsel %vm1178_vm3, %v2187_v2, %v5617_v7 }
 0x77f   : > { %v5719_v16 = vpop.permute.xlu1 %2256  ;;  %v5721_v28 = vpop.permute.xlu0 %2324 }
 0x780   : > { %v2329_v60 = vsel %vm1328_vm4, %v5619_v13, %v5721_v28 }
 0x781   : > { %v2340_v5 = vmul.f32 %v2329_v60, %v4572_v47  ;;  %v2334_v60 = vmul.f32 %v2326_v18, %v4572_v47 }
 0x783   : > { %2435 = vmatpush.msrb.mxu1 %v2340_v5  ;;  %v2192_v5 = vsel %vm1178_vm3, %v5617_v7, %v2187_v2  ;;  %v2195_v7 = vsel %vm1178_vm3, %v2185_v45, %v5573_v44  ;;  %v2202_v2 = vmul.f32 %v2196_v34, %v4568_v58  ;;  %v2201_v45 = vmul.f32 %v2191_v33, %v4589_v32 }
 0x784   : > { %v2203_v47 = vmul.f32 %v2192_v5, %v4589_v32  ;;  %v2200_v44 = vmul.f32 %v2195_v7, %v4568_v58  ;;  %v2161_v5 = vsel %vm1143_vm6, %v5647_v62, %v2157_v39  ;;  %v2296_v33 = vsel %vm1293_vm5, %v5627_v14, %v5673_v63 }
 0x785   : > { %2436 = vmatpush.msrb.mxu1 %v2338_v20  ;;  %v2295_v7 = vsel %vm1293_vm5, %v5585_v38, %v5685_v37 }
 0x787   : > { %v2189_v56 = vpop.permute.xlu1 %2188  ;;  %v5742_v4 = vpop.permute.xlu0 %2248  ;;  %2437 = vmatpush.msrb.mxu1 %v2336_v55 }
 0x788   : > { %v2193_v20 = vsel %vm1178_vm3, %v5639_v8, %v2189_v56  ;;  %v2197_v25 = vsel %vm1178_vm3, %v2189_v56, %v5639_v8  ;;  %v2190_v8 = vsel %vm1178_vm3, %v5583_v49, %v5669_v21  ;;  %v2194_v56 = vsel %vm1178_vm3, %v5669_v21, %v5583_v49 }
 0x789   : > { %2438 = vmatpush.msrb.mxu1 %v2334_v60  ;;  %v2204_v18 = vmul.f32 %v2197_v25, %v4568_v58  ;;  %v2205_v55 = vmul.f32 %v2193_v20, %v4589_v32  ;;  %v2165_v60 = vsel %vm1143_vm6, %v2157_v39, %v5647_v62  ;;  %v2199_v49 = vmul.f32 %v2190_v8, %v4589_v32 }
 0x78a   : > { %v2164_v39 = vsel %vm1143_vm6, %v5687_v24, %v5597_v26  ;;  %v2160_v21 = vsel %vm1143_vm6, %v5597_v26, %v5687_v24  ;;  %v2172_v25 = vmul.f32 %v2165_v60, %v4665_v0  ;;  %v2173_v24 = vmul.f32 %v2161_v5, %v4668_v40 }
 0x78b   : > { %2410 = vmatpush.msrb.mxu0 %v2204_v18  ;;  %2497 = vmatpush.msra.mxu3 %v2205_v55  ;;  %v2163_v55 = vsel %vm1143_vm6, %v5683_v51, %v5607_v41  ;;  %v2159_v26 = vsel %vm1143_vm6, %v5607_v41, %v5683_v51  ;;  %v2170_v8 = vmul.f32 %v2164_v39, %v4665_v0 }
 0x78c   : > { %v2171_v60 = vmul.f32 %v2160_v21, %v4668_v40  ;;  %v2158_v41 = vsel %vm1143_vm6, %v5581_v19, %v5631_v35  ;;  %v2168_v51 = vmul.f32 %v2163_v55, %v4665_v0  ;;  %v2304_v5 = vmul.f32 %v2295_v7, %v4639_v3 }
 0x78d   : > { %2411 = vmatpush.msrb.mxu0 %v2202_v2  ;;  %2498 = vmatpush.msra.mxu3 %v2203_v47  ;;  %v2198_v47 = vmul.f32 %v2194_v56, %v4568_v58  ;;  %v5815_v2 = vpop.permute.xlu2 %2260  ;;  %v2306_v56 = vmul.f32 %v2296_v33, %v4639_v3 }
 0x78f   : > { %v5783_v34 = vpop.permute.xlu1 %2292  ;;  %v5785_v20 = vpop.permute.xlu0 %2114  ;;  %2412 = vmatpush.msrb.mxu0 %v2200_v44  ;;  %2499 = vmatpush.msra.mxu3 %v2201_v45  ;;  %v2162_v44 = vsel %vm1143_vm6, %v5631_v35, %v5581_v19  ;;  %v2294_v45 = vsel %vm1293_vm5, %v5595_v42, %v5675_v36 }
 0x790   : > { %v2297_v62 = vsel %vm1293_vm5, %v5649_v46, %v5783_v34  ;;  %v2166_v19 = vmul.f32 %v2162_v44, %v4665_v0  ;;  %v2302_v35 = vmul.f32 %v2294_v45, %v4639_v3 }
 0x791   : > { %2413 = vmatpush.msrb.mxu0 %v2198_v47  ;;  %2500 = vmatpush.msra.mxu3 %v2199_v49  ;;  %v2308_v18 = vmul.f32 %v2297_v62, %v4639_v3  ;;  %v2265_v47 = vsel %vm1258_vm7, %v5661_v29, %v5815_v2  ;;  %v2169_v49 = vmul.f32 %v2159_v26, %v4668_v40 }
 0x792   : > { %v2264_v62 = vsel %vm1258_vm7, %v5609_v17, %v5715_v12  ;;  %v2276_v7 = vmul.f32 %v2265_v47, %v4712_v52  ;;  %v2263_v26 = vsel %vm1258_vm7, %v5742_v4, %v5719_v16 }
 0x793   : > { %2414 = vmatpush.msrb.mxu0 %v2172_v25  ;;  %2439 = vmatpush.msrb.mxu1 %v2308_v18  ;;  %v2167_v18 = vmul.f32 %v2158_v41, %v4668_v40  ;;  %v2272_v44 = vmul.f32 %v2263_v26, %v4712_v52  ;;  %v2333_v26 = vsel %vm1328_vm4, %v5721_v28, %v5619_v13 }
 0x794   : > { %2501 = vmatpush.msra.mxu3 %v2173_v24  ;;  %v2341_v13 = vmul.f32 %v2333_v26, %v7279_v57 }
 0x795   : > { %2415 = vmatpush.msrb.mxu0 %v2170_v8  ;;  %2440 = vmatpush.msrb.mxu1 %v2306_v56  ;;  %v2113_v8 = vpop.permute.xlu2 %2112 }
 0x796   : > { %2502 = vmatpush.msra.mxu3 %v2171_v60 }
 0x797   : > { %v5844_v33 = vpop.permute.xlu1 %2246  ;;  %v2125_v39 = vpop.permute.xlu0 %2124  ;;  %2416 = vmatpush.msrb.mxu0 %v2168_v51  ;;  %2441 = vmatpush.msrb.mxu1 %v2304_v5 }
 0x798   : > { %v2129_v21 = vsel %vm1108_vm8, %v5709_v30, %v2125_v39  ;;  %v2133_v25 = vsel %vm1108_vm8, %v2125_v39, %v5709_v30  ;;  %2503 = vmatpush.msra.mxu3 %v2169_v49  ;;  %v2274_v30 = vmul.f32 %v2264_v62, %v4712_v52  ;;  %v2262_v56 = vsel %vm1258_vm7, %v5844_v33, %v5717_v10 }
 0x799   : > { %2417 = vmatpush.msrb.mxu0 %v2166_v19  ;;  %2442 = vmatpush.msrb.mxu1 %v2302_v35  ;;  %v2140_v55 = vmul.f32 %v2133_v25, %v4735_v11  ;;  %v2141_v24 = vmul.f32 %v2129_v21, %v4738_v15  ;;  %v2270_v41 = vmul.f32 %v2262_v56, %v4712_v52 }
 0x79a   : > { %2504 = vmatpush.msra.mxu3 %v2167_v18  ;;  %v2244_v19 = vmul.f32 %v5500_v6, %v4746_v1  ;;  %v2240_v25 = vmul.f32 %v5469_v50, %v4746_v1 }
 0x79b   : > { %2418 = vmatpush.msrb.mxu0 %v2140_v55  ;;  %2443 = vmatpush.msrb.mxu1 %v2276_v7  ;;  %v2238_v7 = vmul.f32 %v5460_v43, %v4746_v1 }
 0x79c   : > { %2505 = vmatpush.msra.mxu3 %v2141_v24  ;;  %v5895_v24 = vld [vmem:[#allocation2 + $0xc8] sm:$0xff] }
 0x79d   : > { %2444 = vmatpush.msrb.mxu1 %v2274_v30  ;;  %v2119_v18 = vpop.permute.xlu2 %2118 }
 0x79f   : > { %v2123_v45 = vpop.permute.xlu1 %2122  ;;  %v2121_v60 = vpop.permute.xlu0 %2120  ;;  %2445 = vmatpush.msrb.mxu1 %v2272_v44 }
 0x7a0   : > { %v2128_v51 = vsel %vm1108_vm8, %v5785_v20, %v2123_v45  ;;  %v2132_v5 = vsel %vm1108_vm8, %v2123_v45, %v5785_v20  ;;  %v2131_v47 = vsel %vm1108_vm8, %v2121_v60, %v2113_v8  ;;  %v2127_v49 = vsel %vm1108_vm8, %v2113_v8, %v2121_v60  ;;  %v2093_v45 = vld [vmem:[#allocation2 + $0xc0] sm:$0xff] }
 0x7a1   : > { %2446 = vmatpush.msrb.mxu1 %v2270_v41  ;;  %v2138_v39 = vmul.f32 %v2132_v5, %v4735_v11  ;;  %v2139_v35 = vmul.f32 %v2128_v51, %v4738_v15  ;;  %v2136_v62 = vmul.f32 %v2131_v47, %v4735_v11  ;;  %v2242_v20 = vmul.f32 %v5484_v48, %v4746_v1  ;;  %v5923_v47 = vld [vmem:[#allocation2 + $0xe0] sm:$0xff] }
 0x7a2   : > { %v2137_v21 = vmul.f32 %v2127_v49, %v4738_v15  ;;  %v2332_v60 = vsel %vm1328_vm4, %v5713_v59, %v5629_v54  ;;  %v2331_v41 = vsel %vm1328_vm4, %v5651_v27, %v5605_v31  ;;  %v2330_v54 = vsel %vm1328_vm4, %v5671_v53, %v5565_v22 }
 0x7a3   : > { %2419 = vmatpush.msrb.mxu0 %v2138_v39  ;;  %2447 = vmatpush.msrb.mxu1 %v2244_v19  ;;  %v2339_v51 = vmul.f32 %v2332_v60, %v7279_v57  ;;  %v2337_v5 = vmul.f32 %v2331_v41, %v7279_v57  ;;  %v2301_v31 = vsel %vm1293_vm5, %v5783_v34, %v5649_v46  ;;  %v2096_v39 = vld [vmem:[#allocation2 + $0xd8] sm:$0xff] }
 0x7a4   : > { %2506 = vmatpush.msra.mxu3 %v2139_v35  ;;  %v2335_v49 = vmul.f32 %v2330_v54, %v7279_v57  ;;  %v2300_v22 = vsel %vm1293_vm5, %v5673_v63, %v5627_v14  ;;  %v2309_v53 = vmul.f32 %v2301_v31, %v7280_v61  ;;  %v2299_v46 = vsel %vm1293_vm5, %v5685_v37, %v5585_v38  ;;  %v2102_v31 = vld [vmem:[#allocation2 + $0x108] sm:$0xff] }
 0x7a5   : > { %2420 = vmatpush.msrb.mxu0 %v2136_v62  ;;  %2448 = vmatpush.msrb.mxu1 %v2242_v20  ;;  %v2347_v27 = vpop.permute.xlu2 %2346  ;;  %v2298_v34 = vsel %vm1293_vm5, %v5675_v36, %v5595_v42  ;;  %v2307_v14 = vmul.f32 %v2300_v22, %v7280_v61  ;;  %v2305_v35 = vmul.f32 %v2299_v46, %v7280_v61  ;;  %v5946_v62 = vld [vmem:[#allocation2 + $0xf8] sm:$0xff] }
 0x7a6   : > { %2507 = vmatpush.msra.mxu3 %v2137_v21  ;;  %v2269_v38 = vsel %vm1258_vm7, %v5815_v2, %v5661_v29  ;;  %v2303_v36 = vmul.f32 %v2298_v34, %v7280_v61  ;;  %v5970_v2 = vld [vmem:[%s7142_s6 + $0x18] ss:$0 sm:$0xff]  ;;  %v2266_v60 = vsel %vm1258_vm7, %v5717_v10, %v5844_v33  ;;  %v7311_v34 = vld [vmem:[#allocation20_spill] sm:$0xff] }
 0x7a7   : > { %v2111_v55 = vpop.permute.xlu1 %2110  ;;  %2449 = vmatpush.msrb.mxu1 %v2240_v25  ;;  %v2349_v28 = vpop.permute.xlu0 %2348  ;;  %v5964_v25 = vld [vmem:[%s7142_s6 + $0x10] ss:$0 sm:$0xff]  ;;  %7307 = vst [vmem:[#allocation29_spill] sm:$0xff] %v5970_v2 }
 0x7a8   : > { %v2126_v30 = vsel %vm1108_vm8, %v2111_v55, %v2119_v18  ;;  %v2130_v8 = vsel %vm1108_vm8, %v2119_v18, %v2111_v55  ;;  %7306 = vst [vmem:[#allocation30_spill] sm:$0xff] %v5964_v25  ;;  %v2099_v55 = vld [vmem:[#allocation2 + $0xf0] sm:$0xff] }
 0x7a9   : > { %v2134_v56 = vmul.f32 %v2130_v8, %v4735_v11  ;;  %v2135_v44 = vmul.f32 %v2126_v30, %v4738_v15  ;;  %2450 = vmatpush.msrb.mxu1 %v2238_v7  ;;  %v2268_v7 = vsel %vm1258_vm7, %v5715_v12, %v5609_v17 }
 0x7aa   : > { %2451 = vmatmul.f32.vlgmr.msrb.gmra.mxu1 %v5895_v24 }
 0x7ab   : > { %2421 = vmatpush.msrb.mxu0 %v2134_v56  ;;  %2508 = vmatpush.msra.mxu3 %v2135_v44  ;;  %v2277_v56 = vmul.f32 %v2269_v38, %v7281_v9  ;;  %v2267_v44 = vsel %vm1258_vm7, %v5719_v16, %v5742_v4  ;;  %v2101_v38 = vld [vmem:[#allocation2 + $0x100] sm:$0xff] }
 0x7ac   : > { %2422 = vmatmul.f32.vlgmr.msrb.gmra.mxu0 %v2093_v45  ;;  %2509 = vmatmul.f32.vlgmr.msra.gmra.mxu3 %v2093_v45  ;;  %v2275_v45 = vmul.f32 %v2268_v7, %v7281_v9  ;;  %v2273_v41 = vmul.f32 %v2267_v44, %v7281_v9 }
 0x7ad   : > { %2522 = vmatpush.msra.mxu0 %v2341_v13  ;;  %v2353_v26 = vpop.permute.xlu2 %2352 }
 0x7af   : > { %2523 = vmatpush.msra.mxu0 %v2339_v51  ;;  %v2345_v59 = vpop.permute.xlu1 %2344  ;;  %v2355_v19 = vpop.permute.xlu0 %2354  ;;  %v2103_v51 = vld [vmem:[#allocation2 + $0x110] sm:$0xff] }
 0x7b0   : > { %v2360_v20 = vsel %vm1363_vm9, %v2347_v27, %v2355_v19  ;;  %v2364_v21 = vsel %vm1363_vm9, %v2355_v19, %v2347_v27  ;;  %v2359_v30 = vsel %vm1363_vm9, %v2345_v59, %v2353_v26  ;;  %v2363_v8 = vsel %vm1363_vm9, %v2353_v26, %v2345_v59  ;;  %v2095_v27 = vld [vmem:[#allocation2 + $0xd0] sm:$0xff] }
 0x7b1   : > { %2524 = vmatpush.msra.mxu0 %v2337_v5  ;;  %v2370_v17 = vmul.f32 %v5964_v25, %v2360_v20  ;;  %v2371_v12 = vmul.f32 %v5970_v2, %v2364_v21  ;;  %v2368_v13 = vmul.f32 %v5964_v25, %v2359_v30  ;;  %v2271_v5 = vmul.f32 %v2266_v60, %v7281_v9 }
 0x7b2   : > { %2454 = vmatmul.f32.gmra.mxu1 %v5923_v47 }
 0x7b3   : > { %2525 = vmatpush.msra.mxu0 %v2335_v49  ;;  %v7308_v49 = vld [vmem:[#allocation25_spill] sm:$0xff] }
 0x7b4   : > { %2425 = vmatmul.f32.gmra.mxu0 %v2096_v39  ;;  %2512 = vmatmul.f32.gmra.mxu3 %v2096_v39  ;;  %v7309_v39 = vld [vmem:[#allocation31_spill] sm:$0xff]  ;;  %v2241_v19 = vmul.f32 %v7311_v34, %v7308_v49 }
 0x7b5   : > { %2526 = vmatpush.msra.mxu0 %v2309_v53  ;;  %v2245_v22 = vmul.f32 %v7309_v39, %v7308_v49  ;;  %v7310_v53 = vld [vmem:[#allocation32_spill] sm:$0xff] }
 0x7b6   : > { %v2243_v46 = vmul.f32 %v7310_v53, %v7308_v49  ;;  %v3711_v53 = vld [vmem:[%s7144_s8 + $0x60] sm:$0xff] }
 0x7b7   : > { %2527 = vmatpush.msra.mxu0 %v2307_v14  ;;  %v2357_v63 = vpop.permute.xlu1 %2356  ;;  %v2343_v16 = vpop.permute.xlu0 %2342  ;;  %v7312_v14 = vld [vmem:[#allocation23_spill] sm:$0xff] }
 0x7b8   : > { %v2361_v37 = vsel %vm1363_vm9, %v2349_v28, %v2357_v63  ;;  %v2365_v42 = vsel %vm1363_vm9, %v2357_v63, %v2349_v28  ;;  %v2369_v28 = vmul.f32 %v5970_v2, %v2363_v8  ;;  %v2239_v63 = vmul.f32 %v7312_v14, %v7308_v49 }
 0x7b9   : > { %v2372_v29 = vmul.f32 %v5964_v25, %v2361_v37  ;;  %v2373_v18 = vmul.f32 %v5970_v2, %v2365_v42  ;;  %2528 = vmatpush.msra.mxu0 %v2305_v35  ;;  %v2098_v35 = vld [vmem:[#allocation2 + $0xe8] sm:$0xff]  ;;  %v2104_v37 = vld [vmem:[#allocation2 + $0x118] sm:$0xff]  ;;  %v6023_v42 = vpop.permute.xlu2 %2391 }
 0x7ba   : > { %2457 = vmatmul.f32.gmra.mxu1 %v5946_v62 }
 0x7bb   : > { %2529 = vmatpush.msra.mxu0 %v2303_v36  ;;  %2476 = vmatpush.msra.mxu2 %v2372_v29 }
 0x7bc   : > { %2563 = vmatpush.msra.mxu1 %v2373_v18  ;;  %2428 = vmatmul.f32.gmra.mxu0 %v2099_v55 }
 0x7bd   : > { %2515 = vmatmul.f32.gmra.mxu3 %v2099_v55  ;;  %2530 = vmatpush.msra.mxu0 %v2277_v56 }
 0x7be   : > { %2477 = vmatpush.msra.mxu2 %v2370_v17  ;;  %2564 = vmatpush.msra.mxu1 %v2371_v12 }
 0x7bf   : > { %2531 = vmatpush.msra.mxu0 %v2275_v45  ;;  %v2351_v4 = vpop.permute.xlu1 %2350  ;;  %v2387_v45 = vpop.permute.xlu0 %2386 }
 0x7c0   : > { %v2358_v54 = vsel %vm1363_vm9, %v2343_v16, %v2351_v4  ;;  %v2362_v59 = vsel %vm1363_vm9, %v2351_v4, %v2343_v16  ;;  %2478 = vmatpush.msra.mxu2 %v2368_v13  ;;  %2565 = vmatpush.msra.mxu1 %v2369_v28 }
 0x7c1   : > { %v2366_v10 = vmul.f32 %v5964_v25, %v2358_v54  ;;  %v2367_v33 = vmul.f32 %v5970_v2, %v2362_v59  ;;  %2532 = vmatpush.msra.mxu0 %v2273_v41  ;;  %v2377_v36 = vpop.permute.xlu2 %2376 }
 0x7c2   : > { %2460 = vmatmul.f32.gmra.mxu1 %v2103_v51 }
 0x7c3   : > { %2533 = vmatpush.msra.mxu0 %v2271_v5  ;;  %2479 = vmatpush.msra.mxu2 %v2366_v10 }
 0x7c4   : > { %2566 = vmatpush.msra.mxu1 %v2367_v33  ;;  %2431 = vmatmul.f32.gmra.mxu0 %v2102_v31 }
 0x7c5   : > { %3703 = vmatmul.msk.f32.vlgmr.msra.gmra.mxu2 %vm667_vm1, %v2095_v27  ;;  %2518 = vmatmul.f32.gmra.mxu3 %v2102_v31 }
 0x7c6   : > { %2534 = vmatpush.msra.mxu0 %v2245_v22 }
 0x7c7   : > { %v2382_v7 = vpop.permute.xlu1 %2381 }
 0x7c8   : > { %2535 = vmatpush.msra.mxu0 %v2243_v46 }
 0x7ca   : > { %2536 = vmatpush.msra.mxu0 %v2241_v19  ;;  %3707 = vmatmul.msk.f32.vlgmr.msra.gmra.mxu1 %vm667_vm1, %v2095_v27 }
 0x7cc   : > { %2537 = vmatpush.msra.mxu0 %v2239_v63 }
 0x7cd   : > { %3704 = vmatmul.msk.f32.gmra.mxu2 %vm667_vm1, %v2098_v35  ;;  %2538 = vmatmul.f32.vlgmr.msra.gmra.mxu0 %v5895_v24 }
 0x7d2   : > { %3708 = vmatmul.msk.f32.gmra.mxu1 %vm667_vm1, %v2098_v35 }
 0x7d5   : > { %3705 = vmatmul.msk.f32.gmra.mxu2 %vm667_vm1, %v2101_v38  ;;  %2541 = vmatmul.f32.gmra.mxu0 %v5923_v47 }
 0x7da   : > { %3709 = vmatmul.msk.f32.gmra.mxu1 %vm667_vm1, %v2101_v38 }
 0x7dd   : > { %3706 = vmatmul.msk.f32.gmra.mxu2 %vm667_vm1, %v2104_v37  ;;  %2544 = vmatmul.f32.gmra.mxu0 %v5946_v62 }
 0x7e2   : > { %3710 = vmatmul.msk.f32.gmra.mxu1 %vm667_vm1, %v2104_v37 }
 0x7e5   : > { %2547 = vmatmul.f32.gmra.mxu0 %v2103_v51 }
 0x827   : > { %v2452_v20 = vpop.f32.mrf.mxu1 }
 0x829   : > { %v2423_v24 = vpop.f32.mrf.mxu0 }
 0x82a   : > { %v2424_v21 = vadd.f32 %v2423_v24, %v2377_v36 }
 0x82c   : > { %v2453_v29 = vadd.f32 %v2452_v20, %v2424_v21 }
 0x82f   : > { %v2455_v8 = vpop.f32.mrf.mxu1  ;;  %v2510_v27 = vpop.f32.mrf.mxu3 }
 0x830   : > { %v2511_v46 = vadd.f32 %v2510_v27, %v2377_v36 }
 0x831   : > { %v2426_v18 = vpop.f32.mrf.mxu0 }
 0x832   : > { %v2427_v26 = vadd.f32 %v2426_v18, %v2382_v7 }
 0x834   : > { %v2456_v62 = vadd.f32 %v2455_v8, %v2427_v26 }
 0x837   : > { %v2458_v13 = vpop.f32.mrf.mxu1  ;;  %v2513_v35 = vpop.f32.mrf.mxu3 }
 0x838   : > { %v2514_v24 = vadd.f32 %v2513_v35, %v2382_v7 }
 0x839   : > { %v2429_v12 = vpop.f32.mrf.mxu0 }
 0x83a   : > { %v2430_v60 = vadd.f32 %v2429_v12, %v2387_v45 }
 0x83c   : > { %v2459_v16 = vadd.f32 %v2458_v13, %v2430_v60 }
 0x83f   : > { %v2461_v59 = vpop.f32.mrf.mxu1 }
 0x841   : > { %v2432_v51 = vpop.f32.mrf.mxu0 }
 0x842   : > { %v2433_v54 = vadd.f32 %v2432_v51, %v6023_v42 }
 0x844   : > { %v2462_v33 = vadd.f32 %v2461_v59, %v2433_v54 }
 0x847   : > { %v2568_v63 = vpop.f32.mrf.mxu1 }
 0x848   : > { %v2481_v55 = vpop.f32.mrf.mxu2 }
 0x849   : > { %v2482_v47 = vadd.f32 %v2481_v55, %v2453_v29  ;;  %v2516_v55 = vpop.f32.mrf.mxu3 }
 0x84a   : > { %v2539_v22 = vpop.f32.mrf.mxu0  ;;  %v2517_v7 = vadd.f32 %v2516_v55, %v2387_v45 }
 0x84b   : > { %v6025_v30 = vmax.f32 %v2482_v47, 0.0  ;;  %v2540_v19 = vadd.f32 %v2539_v22, %v2511_v46 }
 0x84d   : > { %2638 = vrot.lane.b32.xlu0 %v6025_v30, %s7313_s12  ;;  %2670 = vrot.lane.b32.xlu2 %v6025_v30, %s7289_s30  ;;  %v2569_v38 = vadd.f32 %v2568_v63, %v2540_v19 }
 0x84e   : > { %2702 = vrot.lane.b32.xlu1 %v6025_v30, %s7290_s22 }
 0x84f   : > { %v6076_v20 = vmax.f32 %v2569_v38, 0.0  ;;  %v2571_v29 = vpop.f32.mrf.mxu1 }
 0x850   : > { %v2484_v56 = vpop.f32.mrf.mxu2 }
 0x851   : > { %v2485_v44 = vadd.f32 %v2484_v56, %v2456_v62  ;;  %7314 = vst [vmem:[#allocation8_spill] sm:$0xff] %v6076_v20 }
 0x852   : > { %v2542_v37 = vpop.f32.mrf.mxu0 }
 0x853   : > { %v6033_v17 = vmax.f32 %v2485_v44, 0.0  ;;  %v2543_v21 = vadd.f32 %v2542_v37, %v2514_v24  ;;  %v2519_v44 = vpop.f32.mrf.mxu3 }
 0x854   : > { %v2520_v45 = vadd.f32 %v2519_v44, %v6023_v42 }
 0x855   : > { %2704 = vrot.lane.b32.xlu0 %v6033_v17, %s7290_s22  ;;  %2774 = vrot.lane.b32.xlu2 %v6025_v30, %s7293_s13  ;;  %v2572_v36 = vadd.f32 %v2571_v29, %v2543_v21 }
 0x856   : > { %2806 = vrot.lane.b32.xlu1 %v6025_v30, %s7266_s16 }
 0x857   : > { %v6084_v18 = vmax.f32 %v2572_v36, 0.0  ;;  %v2574_v8 = vpop.f32.mrf.mxu1 }
 0x858   : > { %v2487_v28 = vpop.f32.mrf.mxu2 }
 0x859   : > { %v2488_v4 = vadd.f32 %v2487_v28, %v2459_v16  ;;  %7315 = vst [vmem:[#allocation11_spill] sm:$0xff] %v6084_v18 }
 0x85a   : > { %v2545_v47 = vpop.f32.mrf.mxu0 }
 0x85b   : > { %v6047_v41 = vmax.f32 %v2488_v4, 0.0  ;;  %v2546_v26 = vadd.f32 %v2545_v47, %v2517_v7 }
 0x85d   : > { %2808 = vrot.lane.b32.xlu0 %v6033_v17, %s7266_s16  ;;  %2640 = vrot.lane.b32.xlu2 %v6033_v17, %s7313_s12  ;;  %v2575_v62 = vadd.f32 %v2574_v8, %v2546_v26 }
 0x85e   : > { %2672 = vrot.lane.b32.xlu1 %v6033_v17, %s7289_s30 }
 0x85f   : > { %v6098_v56 = vmax.f32 %v2575_v62, 0.0  ;;  %v2577_v13 = vpop.f32.mrf.mxu1 }
 0x860   : > { %v2490_v10 = vpop.f32.mrf.mxu2 }
 0x861   : > { %v2491_v5 = vadd.f32 %v2490_v10, %v2462_v33  ;;  %7316 = vst [vmem:[#allocation13_spill] sm:$0xff] %v6098_v56 }
 0x862   : > { %v2548_v12 = vpop.f32.mrf.mxu0 }
 0x863   : > { %v6062_v31 = vmax.f32 %v2491_v5, 0.0  ;;  %v2549_v60 = vadd.f32 %v2548_v12, %v2520_v45 }
 0x865   : > { %2674 = vrot.lane.b32.xlu0 %v6047_v41, %s7289_s30  ;;  %2706 = vrot.lane.b32.xlu2 %v6047_v41, %s7290_s22  ;;  %v2578_v16 = vadd.f32 %v2577_v13, %v2549_v60  ;;  %v3713_v60 = vld [vmem:[%s7144_s8 + $0x70] sm:$0xff]  ;;  %v3714_v13 = vld [vmem:[%s7144_s8 + $0x78] sm:$0xff] }
 0x866   : > { %2776 = vrot.lane.b32.xlu1 %v6033_v17, %s7293_s13 }
 0x867   : > { %v6115_v4 = vmax.f32 %v2578_v16, 0.0 }
 0x869   : > { %7317 = vst [vmem:[#allocation15_spill] sm:$0xff] %v6115_v4 }
 0x86d   : > { %2778 = vrot.lane.b32.xlu0 %v6047_v41, %s7293_s13  ;;  %2810 = vrot.lane.b32.xlu2 %v6047_v41, %s7266_s16 }
 0x86e   : > { %2642 = vrot.lane.b32.xlu1 %v6047_v41, %s7313_s12 }
 0x875   : > { %2708 = vrot.lane.b32.xlu0 %v6062_v31, %s7290_s22  ;;  %2676 = vrot.lane.b32.xlu2 %v6062_v31, %s7289_s30 }
 0x876   : > { %2746 = vrot.lane.b32.xlu1 %v6047_v41, %s7268_s7 }
 0x87d   : > { %2644 = vrot.lane.b32.xlu0 %v6062_v31, %s7313_s12  ;;  %2780 = vrot.lane.b32.xlu2 %v6062_v31, %s7293_s13 }
 0x87e   : > { %2812 = vrot.lane.b32.xlu1 %v6062_v31, %s7266_s16 }
 0x885   : > { %2748 = vrot.lane.b32.xlu0 %v6062_v31, %s7268_s7  ;;  %2710 = vrot.lane.b32.xlu2 %v6076_v20, %s7290_s22 }
 0x886   : > { %2646 = vrot.lane.b32.xlu1 %v6076_v20, %s7313_s12 }
 0x88d   : > { %2678 = vrot.lane.b32.xlu0 %v6076_v20, %s7289_s30  ;;  %2814 = vrot.lane.b32.xlu2 %v6076_v20, %s7266_s16 }
 0x88e   : > { %2712 = vrot.lane.b32.xlu1 %v6084_v18, %s7290_s22 }
 0x895   : > { %2782 = vrot.lane.b32.xlu0 %v6076_v20, %s7293_s13  ;;  %2680 = vrot.lane.b32.xlu2 %v6084_v18, %s7289_s30 }
 0x896   : > { %2816 = vrot.lane.b32.xlu1 %v6084_v18, %s7266_s16 }
 0x89d   : > { %2648 = vrot.lane.b32.xlu0 %v6084_v18, %s7313_s12  ;;  %2784 = vrot.lane.b32.xlu2 %v6084_v18, %s7293_s13 }
 0x89e   : > { %2682 = vrot.lane.b32.xlu1 %v6098_v56, %s7289_s30 }
 0x8a5   : > { %2714 = vrot.lane.b32.xlu0 %v6098_v56, %s7290_s22  ;;  %2650 = vrot.lane.b32.xlu2 %v6098_v56, %s7313_s12 }
 0x8a6   : > { %2786 = vrot.lane.b32.xlu1 %v6098_v56, %s7293_s13 }
 0x8a7   : > { %v6113_v28 = vpop.permute.xlu2 %2670 }
 0x8ad   : > { %2818 = vrot.lane.b32.xlu0 %v6098_v56, %s7266_s16  ;;  %2754 = vrot.lane.b32.xlu2 %v6098_v56, %s7268_s7 }
 0x8ae   : > { %2716 = vrot.lane.b32.xlu1 %v6115_v4, %s7290_s22 }
 0x8af   : > { %v6123_v42 = vpop.permute.xlu2 %2774 }
 0x8b5   : > { %2752 = vrot.lane.b32.xlu0 %v6084_v18, %s7268_s7  ;;  %2820 = vrot.lane.b32.xlu2 %v6115_v4, %s7266_s16 }
 0x8b6   : > { %2612 = vrot.lane.b32.xlu1 %v6062_v31, %s7273_s29 }
 0x8b7   : > { %v6131_v51 = vpop.permute.xlu2 %2640 }
 0x8bd   : > { %2684 = vrot.lane.b32.xlu0 %v6115_v4, %s7289_s30  ;;  %2744 = vrot.lane.b32.xlu2 %v6033_v17, %s7268_s7 }
 0x8be   : > { %2750 = vrot.lane.b32.xlu1 %v6076_v20, %s7268_s7 }
 0x8bf   : > { %v2639_v54 = vpop.permute.xlu0 %2638  ;;  %v6139_v59 = vpop.permute.xlu2 %2706 }
 0x8c0   : > { %v2703_v10 = vpop.permute.xlu1 %2702 }
 0x8c5   : > { %2788 = vrot.lane.b32.xlu0 %v6115_v4, %s7293_s13  ;;  %2610 = vrot.lane.b32.xlu2 %v6047_v41, %s7273_s29 }
 0x8c6   : > { %2652 = vrot.lane.b32.xlu1 %v6115_v4, %s7313_s12 }
 0x8c7   : > { %v6147_v33 = vpop.permute.xlu0 %2704  ;;  %v6149_v5 = vpop.permute.xlu2 %2810 }
 0x8c8   : > { %v6151_v27 = vpop.permute.xlu1 %2806 }
 0x8cd   : > { %2742 = vrot.lane.b32.xlu0 %v6025_v30, %s7268_s7  ;;  %2620 = vrot.lane.b32.xlu2 %v6115_v4, %s7273_s29 }
 0x8ce   : > { %2756 = vrot.lane.b32.xlu1 %v6115_v4, %s7268_s7 }
 0x8cf   : > { %v6159_v22 = vpop.permute.xlu0 %2808  ;;  %v6161_v46 = vpop.permute.xlu2 %2676 }
 0x8d0   : > { %v2673_v19 = vpop.permute.xlu1 %2672 }
 0x8d5   : > { %2618 = vrot.lane.b32.xlu0 %v6098_v56, %s7273_s29  ;;  %2616 = vrot.lane.b32.xlu2 %v6084_v18, %s7273_s29 }
 0x8d6   : > { %2608 = vrot.lane.b32.xlu1 %v6033_v17, %s7273_s29 }
 0x8d7   : > { %v6169_v63 = vpop.permute.xlu0 %2674  ;;  %v6171_v35 = vpop.permute.xlu2 %2780 }
 0x8d8   : > { %v2777_v38 = vpop.permute.xlu1 %2776 }
 0x8dd   : > { %2606 = vrot.lane.b32.xlu0 %v6025_v30, %s7273_s29  ;;  %2844 = vrot.lane.b32.xlu2 %v6062_v31, %s3913_s25 }
 0x8de   : > { %2614 = vrot.lane.b32.xlu1 %v6076_v20, %s7273_s29 }
 0x8df   : > { %v6179_v37 = vpop.permute.xlu0 %2778  ;;  %v2711_v24 = vpop.permute.xlu2 %2710 }
 0x8e0   : > { %v6183_v21 = vsel %vm1213_vm2, %v2703_v10, %v2711_v24  ;;  %v6187_v29 = vsel %vm1213_vm2, %v2711_v24, %v2703_v10  ;;  %v6189_v36 = vpop.permute.xlu1 %2642 }
 0x8e5   : > { %2840 = vrot.lane.b32.xlu0 %v6033_v17, %s3913_s25  ;;  %2850 = vrot.lane.b32.xlu2 %v6098_v56, %s3913_s25 }
 0x8e6   : > { %2842 = vrot.lane.b32.xlu1 %v6047_v41, %s3913_s25 }
 0x8e7   : > { %v2709_v55 = vpop.permute.xlu0 %2708  ;;  %v2815_v47 = vpop.permute.xlu2 %2814 }
 0x8e8   : > { %v6200_v7 = vsel %vm1328_vm4, %v2815_v47, %v6151_v27  ;;  %v6202_v26 = vpop.permute.xlu1 %2746 }
 0x8e9   : > { %7318 = vst [vmem:[#allocation9_spill] sm:$0xff] %v6200_v7  ;;  %v7325_v7 = vld [vmem:[#allocation17_spill] sm:$0xff] }
 0x8ed   : > { %2852 = vrot.lane.b32.xlu0 %v6115_v4, %s3913_s25  ;;  %2838 = vrot.lane.b32.xlu2 %v6025_v30, %s3913_s25 }
 0x8ee   : > { %2848 = vrot.lane.b32.xlu1 %v6084_v18, %s3913_s25  ;;  %v7322_v18 = vld [vmem:[#allocation18_spill] sm:$0xff] }
 0x8ef   : > { %v6210_v8 = vpop.permute.xlu0 %2644  ;;  %v2681_v62 = vpop.permute.xlu2 %2680 }
 0x8f0   : > { %v6214_v44 = vsel %vm1178_vm3, %v2673_v19, %v2681_v62  ;;  %v6218_v12 = vsel %vm1178_vm3, %v2681_v62, %v2673_v19  ;;  %v2813_v45 = vpop.permute.xlu1 %2812 }
 0x8f5   : > { %2846 = vrot.lane.b32.xlu0 %v6076_v20, %s3913_s25  ;;  %2882 = vperm.xlu2 %3797, %v3713_v60  }
 0x8f6   : > { %2887 = vperm.xlu1 %3796, %v3714_v13   ;;  %v3712_v13 = vld [vmem:[%s7144_s8 + $0x68] sm:$0xff] }
 0x8f7   : > { %v6228_v16 = vpop.permute.xlu0 %2748  ;;  %v2785_v10 = vpop.permute.xlu2 %2784 }
 0x8f8   : > { %v6232_v19 = vsel %vm1293_vm5, %v2777_v38, %v2785_v10  ;;  %v6236_v24 = vsel %vm1293_vm5, %v2785_v10, %v2777_v38  ;;  %v2647_v62 = vpop.permute.xlu1 %2646 }
 0x8f9   : > { %7319 = vst [vmem:[#allocation10_spill] sm:$0xff] %v6236_v24  ;;  %v6240_v39 = vsel %vm1143_vm6, %v2639_v54, %v2647_v62  ;;  %v6244_v60 = vsel %vm1143_vm6, %v2647_v62, %v2639_v54 }
 0x8fd   : > { %2877 = vperm.xlu0 %3795, %v3712_v13  }
 0x8fe   : > { %2872 = vperm.xlu1 %3796, %v3711_v53  }
 0x8ff   : > { %v6252_v38 = vpop.permute.xlu0 %2678  ;;  %v6254_v10 = vpop.permute.xlu2 %2650 }
 0x900   : > { %v2713_v34 = vpop.permute.xlu1 %2712 }
 0x907   : > { %v6256_v14 = vpop.permute.xlu0 %2782  ;;  %v6258_v6 = vpop.permute.xlu2 %2754 }
 0x908   : > { %v6264_v54 = vsel %vm1258_vm7, %v6258_v6, %v6202_v26  ;;  %v2817_v62 = vpop.permute.xlu1 %2816 }
 0x909   : > { %7320 = vst [vmem:[#allocation12_spill] sm:$0xff] %v6264_v54  ;;  %v6269_v53 = vsel %vm1328_vm4, %v2817_v62, %v6159_v22 }
 0x90a   : > { %7321 = vst [vmem:[#allocation14_spill] sm:$0xff] %v6269_v53 }
 0x90f   : > { %v6271_v13 = vpop.permute.xlu0 %2648  ;;  %v2821_v48 = vpop.permute.xlu2 %2820 }
 0x910   : > { %v2825_v50 = vsel %vm1328_vm4, %v2813_v45, %v2821_v48  ;;  %v6277_v43 = vsel %vm1328_vm4, %v2821_v48, %v2813_v45  ;;  %v2683_v20 = vpop.permute.xlu1 %2682  ;;  %v2823_v48 = vsel %vm1328_vm4, %v6159_v22, %v2817_v62  ;;  %v2822_v62 = vsel %vm1328_vm4, %v6151_v27, %v2815_v47 }
 0x911   : > { %v2836_v56 = vmul.f32 %v2825_v50, %v7322_v18  ;;  %v2830_v27 = vmul.f32 %v2822_v62, %v7322_v18 }
 0x913   : > { %2931 = vmatpush.msrb.mxu3 %v2836_v56 }
 0x917   : > { %v2715_v4 = vpop.permute.xlu0 %2714 }
 0x918   : > { %v6280_v49 = vpop.permute.xlu1 %2786  ;;  %v2720_v50 = vsel %vm1213_vm2, %v6139_v59, %v2715_v4  ;;  %v2724_v2 = vsel %vm1213_vm2, %v2715_v4, %v6139_v59  ;;  %v2719_v4 = vsel %vm1213_vm2, %v6147_v33, %v2713_v34  ;;  %v2723_v59 = vsel %vm1213_vm2, %v2713_v34, %v6147_v33 }
 0x919   : > { %v6286_v54 = vsel %vm1293_vm5, %v6280_v49, %v6179_v37 }
 0x91a   : > { %7323 = vst [vmem:[#allocation18_spill] sm:$0xff] %v6286_v54  ;;  %v7324_v54 = vld [vmem:[#allocation16_spill] sm:$0xff] }
 0x91b   : > { %v2728_v47 = vmul.f32 %v2723_v59, %v7324_v54 }
 0x91f   : > { %v6288_v9 = vpop.permute.xlu0 %2818 }
 0x920   : > { %v2824_v56 = vsel %vm1328_vm4, %v6149_v5, %v6288_v9  ;;  %v2717_v45 = vpop.permute.xlu1 %2716 }
 0x921   : > { %v2834_v25 = vmul.f32 %v2824_v56, %v7322_v18  ;;  %v2721_v24 = vsel %vm1213_vm2, %v2709_v55, %v2717_v45  ;;  %v2725_v22 = vsel %vm1213_vm2, %v2717_v45, %v2709_v55  ;;  %v2832_v56 = vmul.f32 %v2823_v48, %v7322_v18 }
 0x922   : > { %v2732_v61 = vmul.f32 %v2725_v22, %v7324_v54  ;;  %v2733_v53 = vmul.f32 %v2721_v24, %v7325_v7  ;;  %v2730_v55 = vmul.f32 %v2724_v2, %v7324_v54  ;;  %v2731_v45 = vmul.f32 %v2720_v50, %v7325_v7 }
 0x923   : > { %2932 = vmatpush.msrb.mxu3 %v2834_v25  ;;  %v2729_v24 = vmul.f32 %v2719_v4, %v7325_v7  ;;  %v2726_v25 = vmul.f32 %v6187_v29, %v7324_v54  ;;  %v2727_v2 = vmul.f32 %v6183_v21, %v7325_v7  ;;  %v2692_v48 = vsel %vm1178_vm3, %v2683_v20, %v6169_v63 }
 0x924   : > { %2902 = vmatpush.msrb.mxu2 %v2732_v61  ;;  %2989 = vmatpush.msrb.mxu1 %v2733_v53  ;;  %v6331_v61 = vpop.permute.xlu2 %2744  ;;  %v2688_v53 = vsel %vm1178_vm3, %v6169_v63, %v2683_v20  ;;  %v2690_v63 = vsel %vm1178_vm3, %v6252_v38, %v6113_v28 }
 0x925   : > { %2933 = vmatpush.msrb.mxu3 %v2832_v56  ;;  %v2698_v56 = vmul.f32 %v2692_v48, %v4568_v58  ;;  %v2699_v20 = vmul.f32 %v2688_v53, %v4589_v32 }
 0x926   : > { %2903 = vmatpush.msrb.mxu2 %v2730_v55  ;;  %2990 = vmatpush.msrb.mxu1 %v2731_v45  ;;  %v2697_v55 = vmul.f32 %v6214_v44, %v4589_v32  ;;  %v2686_v45 = vsel %vm1178_vm3, %v6113_v28, %v6252_v38  ;;  %v2656_v44 = vsel %vm1143_vm6, %v6189_v36, %v6254_v10 }
 0x927   : > { %v6325_v22 = vpop.permute.xlu0 %2752  ;;  %2934 = vmatpush.msrb.mxu3 %v2830_v27  ;;  %v2694_v27 = vmul.f32 %v2690_v63, %v4568_v58  ;;  %v2792_v28 = vsel %vm1293_vm5, %v6179_v37, %v6280_v49 }
 0x928   : > { %2904 = vmatpush.msrb.mxu2 %v2728_v47  ;;  %2991 = vmatpush.msrb.mxu1 %v2729_v24  ;;  %v2613_v34 = vpop.permute.xlu1 %2612  ;;  %v2695_v24 = vmul.f32 %v2686_v45, %v4589_v32  ;;  %v2802_v48 = vmul.f32 %v2792_v28, %v4639_v3 }
 0x92a   : > { %2905 = vmatpush.msrb.mxu2 %v2726_v25  ;;  %2992 = vmatpush.msrb.mxu1 %v2727_v2  ;;  %v2660_v25 = vsel %vm1143_vm6, %v6254_v10, %v6189_v36  ;;  %v2655_v36 = vsel %vm1143_vm6, %v6131_v51, %v6271_v13  ;;  %v2659_v10 = vsel %vm1143_vm6, %v6271_v13, %v6131_v51 }
 0x92b   : > { %v2664_v51 = vmul.f32 %v2659_v10, %v4665_v0  ;;  %v2665_v13 = vmul.f32 %v2655_v36, %v4668_v40 }
 0x92c   : > { %v6349_v59 = vpop.permute.xlu2 %2610 }
 0x92f   : > { %v2685_v33 = vpop.permute.xlu0 %2684 }
 0x930   : > { %v2689_v21 = vsel %vm1178_vm3, %v6161_v46, %v2685_v33  ;;  %v2693_v29 = vsel %vm1178_vm3, %v2685_v33, %v6161_v46  ;;  %v6345_v50 = vpop.permute.xlu1 %2750  ;;  %v2696_v46 = vmul.f32 %v6218_v12, %v4568_v58 }
 0x931   : > { %v2700_v62 = vmul.f32 %v2693_v29, %v4568_v58  ;;  %v2701_v4 = vmul.f32 %v2689_v21, %v4589_v32  ;;  %v2667_v21 = vmul.f32 %v2656_v44, %v4668_v40  ;;  %v2790_v29 = vsel %vm1293_vm5, %v6123_v42, %v6256_v14 }
 0x933   : > { %2906 = vmatpush.msrb.mxu2 %v2700_v62  ;;  %2993 = vmatpush.msrb.mxu1 %v2701_v4  ;;  %v2800_v4 = vmul.f32 %v6232_v19, %v4639_v3  ;;  %v2663_v19 = vmul.f32 %v6240_v39, %v4668_v40 }
 0x934   : > { %v2621_v62 = vpop.permute.xlu2 %2620 }
 0x935   : > { %2907 = vmatpush.msrb.mxu2 %v2698_v56  ;;  %2994 = vmatpush.msrb.mxu1 %v2699_v20  ;;  %v2798_v56 = vmul.f32 %v2790_v29, %v4639_v3  ;;  %v2629_v20 = vsel %vm1108_vm8, %v2621_v62, %v2613_v34  ;;  %v2736_v29 = vmul.f32 %v6033_v17, %v4746_v1  ;;  %v2589_v17 = vld [vmem:[#allocation2 + $0x120] sm:$0xff] }
 0x936   : > { %v2636_v39 = vmul.f32 %v2629_v20, %v4735_v11 }
 0x937   : > { %v6366_v47 = vpop.permute.xlu0 %2788  ;;  %2908 = vmatpush.msrb.mxu2 %v2696_v46  ;;  %2995 = vmatpush.msrb.mxu1 %v2697_v55  ;;  %v2662_v46 = vmul.f32 %v6244_v60, %v4665_v0  ;;  %v2625_v55 = vsel %vm1108_vm8, %v2613_v34, %v2621_v62  ;;  %v2759_v34 = vsel %vm1258_vm7, %v6331_v61, %v6325_v22 }
 0x938   : > { %v2793_v12 = vsel %vm1293_vm5, %v6171_v35, %v6366_v47  ;;  %v2653_v38 = vpop.permute.xlu1 %2652  ;;  %v2637_v44 = vmul.f32 %v2625_v55, %v4738_v15  ;;  %v2768_v28 = vmul.f32 %v2759_v34, %v4712_v52 }
 0x939   : > { %v2804_v2 = vmul.f32 %v2793_v12, %v4639_v3  ;;  %v2657_v33 = vsel %vm1143_vm6, %v6210_v8, %v2653_v38  ;;  %v2661_v49 = vsel %vm1143_vm6, %v2653_v38, %v6210_v8  ;;  %2909 = vmatpush.msrb.mxu2 %v2694_v27  ;;  %2996 = vmatpush.msrb.mxu1 %v2695_v24 }
 0x93a   : > { %v2668_v37 = vmul.f32 %v2661_v49, %v4665_v0  ;;  %v2669_v53 = vmul.f32 %v2657_v33, %v4668_v40  ;;  %v2666_v8 = vmul.f32 %v2660_v25, %v4665_v0  ;;  %v2760_v27 = vsel %vm1258_vm7, %v6202_v26, %v6258_v6 }
 0x93b   : > { %2935 = vmatpush.msrb.mxu3 %v2804_v2  ;;  %v2770_v6 = vmul.f32 %v2760_v27, %v4712_v52 }
 0x93c   : > { %2910 = vmatpush.msrb.mxu2 %v2668_v37  ;;  %2997 = vmatpush.msrb.mxu1 %v2669_v53  ;;  %v2617_v38 = vpop.permute.xlu2 %2616 }
 0x93d   : > { %2936 = vmatpush.msrb.mxu3 %v2802_v48  ;;  %v2740_v48 = vmul.f32 %v6062_v31, %v4746_v1  ;;  %v2734_v31 = vmul.f32 %v6025_v30, %v4746_v1 }
 0x93e   : > { %2911 = vmatpush.msrb.mxu2 %v2666_v8  ;;  %2998 = vmatpush.msrb.mxu1 %v2667_v21  ;;  %v2738_v21 = vmul.f32 %v6047_v41, %v4746_v1 }
 0x93f   : > { %v6416_v63 = vpop.permute.xlu0 %2742  ;;  %2937 = vmatpush.msrb.mxu3 %v2800_v4 }
 0x940   : > { %2912 = vmatpush.msrb.mxu2 %v2664_v51  ;;  %2999 = vmatpush.msrb.mxu1 %v2665_v13  ;;  %v6424_v45 = vpop.permute.xlu1 %2756  ;;  %v2758_v26 = vsel %vm1258_vm7, %v6416_v63, %v6345_v50  ;;  %v6470_v51 = vld [vmem:[#allocation2 + $0x128] sm:$0xff] }
 0x941   : > { %v2761_v60 = vsel %vm1258_vm7, %v6228_v16, %v6424_v45  ;;  %2938 = vmatpush.msrb.mxu3 %v2798_v56  ;;  %v2766_v25 = vmul.f32 %v2758_v26, %v4712_v52 }
 0x942   : > { %v2772_v24 = vmul.f32 %v2761_v60, %v4712_v52  ;;  %2913 = vmatpush.msrb.mxu2 %v2662_v46  ;;  %3000 = vmatpush.msrb.mxu1 %v2663_v19  ;;  %v2828_v46 = vsel %vm1328_vm4, %v6288_v9, %v6149_v5  ;;  %v2837_v19 = vmul.f32 %v6277_v43, %v7279_v57  ;;  %v7326_v60 = vld [vmem:[#allocation14_spill] sm:$0xff]  ;;  %v6488_v9 = vld [vmem:[#allocation2 + $0x140] sm:$0xff]  ;;  %v7327_v5 = vld [vmem:[#allocation9_spill] sm:$0xff] }
 0x943   : > { %v2835_v55 = vmul.f32 %v2828_v46, %v7279_v57  ;;  %v2797_v43 = vsel %vm1293_vm5, %v6366_v47, %v6171_v35  ;;  %v2831_v34 = vmul.f32 %v7327_v5, %v7279_v57  ;;  %v2794_v35 = vsel %vm1293_vm5, %v6256_v14, %v6123_v42  ;;  %v7331_v42 = vld [vmem:[#allocation30_spill] sm:$0xff]  ;;  %v7335_v5 = vld [vmem:[#allocation25_spill] sm:$0xff] }
 0x944   : > { %2914 = vmatpush.msrb.mxu2 %v2636_v39  ;;  %2939 = vmatpush.msrb.mxu3 %v2772_v24  ;;  %v2845_v30 = vpop.permute.xlu2 %2844  ;;  %v2833_v39 = vmul.f32 %v7326_v60, %v7279_v57  ;;  %v2762_v46 = vsel %vm1258_vm7, %v6345_v50, %v6416_v63  ;;  %v2591_v50 = vld [vmem:[#allocation2 + $0x130] sm:$0xff] }
 0x945   : > { %3001 = vmatpush.msrb.mxu1 %v2637_v44  ;;  %v2592_v44 = vld [vmem:[#allocation2 + $0x138] sm:$0xff] }
 0x946   : > { %2940 = vmatpush.msrb.mxu3 %v2770_v6  ;;  %v7328_v6 = vld [vmem:[#allocation21_spill] sm:$0xff] }
 0x947   : > { %v2619_v12 = vpop.permute.xlu0 %2618  ;;  %v2805_v26 = vmul.f32 %v2797_v43, %v7328_v6  ;;  %v2599_v43 = vld [vmem:[#allocation2 + $0x170] sm:$0xff] }
 0x948   : > { %v2624_v2 = vsel %vm1108_vm8, %v6349_v59, %v2619_v12  ;;  %v2628_v33 = vsel %vm1108_vm8, %v2619_v12, %v6349_v59  ;;  %2941 = vmatpush.msrb.mxu3 %v2768_v28  ;;  %v2609_v49 = vpop.permute.xlu1 %2608  ;;  %v7329_v12 = vld [vmem:[#allocation18_spill] sm:$0xff] }
 0x949   : > { %v2634_v37 = vmul.f32 %v2628_v33, %v4735_v11  ;;  %v2635_v53 = vmul.f32 %v2624_v2, %v4738_v15  ;;  %v2623_v36 = vsel %vm1108_vm8, %v2609_v49, %v2617_v38  ;;  %v2627_v10 = vsel %vm1108_vm8, %v2617_v38, %v2609_v49 }
 0x94a   : > { %2942 = vmatpush.msrb.mxu3 %v2766_v25  ;;  %v2632_v8 = vmul.f32 %v2627_v10, %v4735_v11  ;;  %v2633_v59 = vmul.f32 %v2623_v36, %v4738_v15  ;;  %v2803_v38 = vmul.f32 %v7329_v12, %v7328_v6  ;;  %v7330_v25 = vld [vmem:[#allocation10_spill] sm:$0xff]  ;;  %v7332_v10 = vld [vmem:[#allocation29_spill] sm:$0xff]  ;;  %v7338_v12 = vld [vmem:[#allocation11_spill] sm:$0xff] }
 0x94b   : > { %2915 = vmatpush.msrb.mxu2 %v2634_v37  ;;  %3002 = vmatpush.msrb.mxu1 %v2635_v53  ;;  %v2801_v2 = vmul.f32 %v7330_v25, %v7328_v6  ;;  %v2765_v53 = vsel %vm1258_vm7, %v6424_v45, %v6228_v16  ;;  %v7333_v16 = vld [vmem:[#allocation24_spill] sm:$0xff] }
 0x94c   : > { %2943 = vmatpush.msrb.mxu3 %v2740_v48  ;;  %v2851_v28 = vpop.permute.xlu2 %2850  ;;  %v2773_v45 = vmul.f32 %v2765_v53, %v7333_v16  ;;  %v2767_v63 = vmul.f32 %v2762_v46, %v7333_v16 }
 0x94d   : > { %2916 = vmatpush.msrb.mxu2 %v2632_v8  ;;  %3003 = vmatpush.msrb.mxu1 %v2633_v59  ;;  %v6518_v8 = vld [vmem:[#allocation2 + $0x158] sm:$0xff]  ;;  %v2799_v59 = vmul.f32 %v2794_v35, %v7328_v6  ;;  %v2594_v35 = vld [vmem:[#allocation2 + $0x148] sm:$0xff] }
 0x94e   : > { %2944 = vmatpush.msrb.mxu3 %v2738_v21 }
 0x94f   : > { %v2607_v62 = vpop.permute.xlu0 %2606 }
 0x950   : > { %2945 = vmatpush.msrb.mxu3 %v2736_v29  ;;  %v2615_v4 = vpop.permute.xlu1 %2614  ;;  %v2595_v29 = vld [vmem:[#allocation2 + $0x150] sm:$0xff] }
 0x951   : > { %v2622_v13 = vsel %vm1108_vm8, %v2607_v62, %v2615_v4  ;;  %v2626_v41 = vsel %vm1108_vm8, %v2615_v4, %v2607_v62 }
 0x952   : > { %v2630_v56 = vmul.f32 %v2626_v41, %v4735_v11  ;;  %v2631_v20 = vmul.f32 %v2622_v13, %v4738_v15  ;;  %2946 = vmatpush.msrb.mxu3 %v2734_v31  ;;  %v2763_v13 = vsel %vm1258_vm7, %v6325_v22, %v6331_v61 }
 0x953   : > { %2947 = vmatmul.f32.vlgmr.msrb.gmra.mxu3 %v6470_v51  ;;  %v2769_v61 = vmul.f32 %v2763_v13, %v7333_v16 }
 0x954   : > { %2917 = vmatpush.msrb.mxu2 %v2630_v56  ;;  %3004 = vmatpush.msrb.mxu1 %v2631_v20  ;;  %v7334_v56 = vld [vmem:[#allocation12_spill] sm:$0xff] }
 0x955   : > { %2918 = vmatmul.f32.vlgmr.msrb.gmra.mxu2 %v2589_v17  ;;  %3005 = vmatmul.f32.vlgmr.msrb.gmra.mxu1 %v2589_v17  ;;  %v2771_v20 = vmul.f32 %v7334_v56, %v7333_v16 }
 0x956   : > { %3018 = vmatpush.msra.mxu2 %v2837_v19 }
 0x957   : > { %v2841_v27 = vpop.permute.xlu0 %2840 }
 0x958   : > { %3019 = vmatpush.msra.mxu2 %v2835_v55  ;;  %v2843_v24 = vpop.permute.xlu1 %2842 }
 0x959   : > { %v2856_v14 = vsel %vm1363_vm9, %v2843_v24, %v2851_v28  ;;  %v2860_v21 = vsel %vm1363_vm9, %v2851_v28, %v2843_v24  ;;  %v2598_v24 = vld [vmem:[#allocation2 + $0x168] sm:$0xff] }
 0x95a   : > { %3020 = vmatpush.msra.mxu2 %v2833_v39  ;;  %v2866_v4 = vmul.f32 %v7331_v42, %v2856_v14  ;;  %v2867_v41 = vmul.f32 %v7332_v10, %v2860_v21 }
 0x95b   : > { %2950 = vmatmul.f32.gmra.mxu3 %v6488_v9 }
 0x95c   : > { %3021 = vmatpush.msra.mxu2 %v2831_v34  ;;  %v7336_v34 = vld [vmem:[#allocation15_spill] sm:$0xff] }
 0x95d   : > { %2921 = vmatmul.f32.gmra.mxu2 %v2592_v44  ;;  %3008 = vmatmul.f32.gmra.mxu1 %v2592_v44  ;;  %v2741_v44 = vmul.f32 %v7336_v34, %v7335_v5 }
 0x95e   : > { %3022 = vmatpush.msra.mxu2 %v2805_v26  ;;  %v7337_v26 = vld [vmem:[#allocation13_spill] sm:$0xff] }
 0x95f   : > { %v2853_v47 = vpop.permute.xlu0 %2852  ;;  %v2739_v28 = vmul.f32 %v7337_v26, %v7335_v5 }
 0x960   : > { %3023 = vmatpush.msra.mxu2 %v2803_v38  ;;  %v2857_v33 = vsel %vm1363_vm9, %v2845_v30, %v2853_v47  ;;  %v2861_v49 = vsel %vm1363_vm9, %v2853_v47, %v2845_v30  ;;  %v2849_v37 = vpop.permute.xlu1 %2848  ;;  %v2839_v30 = vpop.permute.xlu2 %2838  ;;  %v2737_v38 = vmul.f32 %v7338_v12, %v7335_v5  ;;  %v7339_v47 = vld [vmem:[#allocation8_spill] sm:$0xff] }
 0x961   : > { %v2868_v36 = vmul.f32 %v7331_v42, %v2857_v33  ;;  %v2869_v48 = vmul.f32 %v7332_v10, %v2861_v49  ;;  %v2855_v62 = vsel %vm1363_vm9, %v2841_v27, %v2849_v37  ;;  %v2859_v31 = vsel %vm1363_vm9, %v2849_v37, %v2841_v27  ;;  %v2600_v33 = vld [vmem:[#allocation2 + $0x178] sm:$0xff] }
 0x962   : > { %3024 = vmatpush.msra.mxu2 %v2801_v2  ;;  %v2864_v17 = vmul.f32 %v7331_v42, %v2855_v62  ;;  %v2865_v19 = vmul.f32 %v7332_v10, %v2859_v31  ;;  %v2735_v25 = vmul.f32 %v7339_v47, %v7335_v5  ;;  %v2597_v2 = vld [vmem:[#allocation2 + $0x160] sm:$0xff]  ;;  %v7342_v31 = vld [vmem:[#allocation27_spill] sm:$0xff] }
 0x963   : > { %2972 = vmatpush.msrb.mxu0 %v2868_v36  ;;  %3059 = vmatpush.msra.mxu3 %v2869_v48 }
 0x964   : > { %3025 = vmatpush.msra.mxu2 %v2799_v59  ;;  %2953 = vmatmul.f32.gmra.mxu3 %v6518_v8 }
 0x965   : > { %2924 = vmatmul.f32.gmra.mxu2 %v2595_v29  ;;  %3011 = vmatmul.f32.gmra.mxu1 %v2595_v29 }
 0x966   : > { %3026 = vmatpush.msra.mxu2 %v2773_v45  ;;  %2973 = vmatpush.msrb.mxu0 %v2866_v4 }
 0x967   : > { %3060 = vmatpush.msra.mxu3 %v2867_v41  ;;  %v2847_v22 = vpop.permute.xlu0 %2846 }
 0x968   : > { %3027 = vmatpush.msra.mxu2 %v2771_v20  ;;  %v2854_v55 = vsel %vm1363_vm9, %v2839_v30, %v2847_v22  ;;  %v2858_v27 = vsel %vm1363_vm9, %v2847_v22, %v2839_v30  ;;  %2974 = vmatpush.msrb.mxu0 %v2864_v17  ;;  %v2883_v56 = vpop.permute.xlu2 %2882  ;;  %v7344_v22 = vld [vmem:[#allocation26_spill] sm:$0xff] }
 0x969   : > { %v2862_v60 = vmul.f32 %v7331_v42, %v2854_v55  ;;  %v2863_v39 = vmul.f32 %v7332_v10, %v2858_v27  ;;  %3061 = vmatpush.msra.mxu3 %v2865_v19  ;;  %v7340_v10 = vld [vmem:[#allocation28_spill] sm:$0xff] }
 0x96a   : > { %3028 = vmatpush.msra.mxu2 %v2769_v61 }
 0x96b   : > { %2975 = vmatpush.msrb.mxu0 %v2862_v60  ;;  %3062 = vmatpush.msra.mxu3 %v2863_v39 }
 0x96c   : > { %3029 = vmatpush.msra.mxu2 %v2767_v63  ;;  %3715 = vmatmul.msk.f32.vlgmr.msrb.gmra.mxu0 %vm667_vm1, %v2591_v50 }
 0x96d   : > { %2927 = vmatmul.f32.gmra.mxu2 %v2598_v24  ;;  %3014 = vmatmul.f32.gmra.mxu1 %v2598_v24  ;;  %v7346_v24 = vld [vmem:[#allocation22_spill] sm:$0xff] }
 0x96e   : > { %3030 = vmatpush.msra.mxu2 %v2741_v44  ;;  %2956 = vmatmul.f32.gmra.mxu3 %v2599_v43 }
 0x96f   : > { %v2878_v59 = vpop.permute.xlu0 %2877 }
 0x970   : > { %3031 = vmatpush.msra.mxu2 %v2739_v28 }
 0x972   : > { %3032 = vmatpush.msra.mxu2 %v2737_v38 }
 0x974   : > { %3033 = vmatpush.msra.mxu2 %v2735_v25  ;;  %3716 = vmatmul.msk.f32.gmra.mxu0 %vm667_vm1, %v2594_v35 }
 0x975   : > { %3034 = vmatmul.f32.vlgmr.msra.gmra.mxu2 %v6470_v51  ;;  %v6570_v51 = vpop.permute.xlu1 %2887 }
 0x976   : > { %3719 = vmatmul.msk.f32.vlgmr.msra.gmra.mxu3 %vm667_vm1, %v2591_v50 }
 0x97c   : > { %3717 = vmatmul.msk.f32.gmra.mxu0 %vm667_vm1, %v2597_v2 }
 0x97d   : > { %3037 = vmatmul.f32.gmra.mxu2 %v6488_v9  ;;  %v2873_v37 = vpop.permute.xlu1 %2872 }
 0x97e   : > { %3720 = vmatmul.msk.f32.gmra.mxu3 %vm667_vm1, %v2594_v35  ;;  %v7348_v35 = vld [vmem:[#allocation23_spill] sm:$0xff] }
 0x984   : > { %3718 = vmatmul.msk.f32.gmra.mxu0 %vm667_vm1, %v2600_v33 }
 0x985   : > { %3040 = vmatmul.f32.gmra.mxu2 %v6518_v8 }
 0x986   : > { %3721 = vmatmul.msk.f32.gmra.mxu3 %vm667_vm1, %v2597_v2 }
 0x98d   : > { %3043 = vmatmul.f32.gmra.mxu2 %v2599_v43 }
 0x98e   : > { %3722 = vmatmul.msk.f32.gmra.mxu3 %vm667_vm1, %v2600_v33 }
 0x9d2   : > { %v3006_v34 = vpop.f32.mrf.mxu1 }
 0x9d3   : > { %v3007_v26 = vadd.f32 %v3006_v34, %v2873_v37 }
 0x9d6   : > { %v2948_v14 = vpop.f32.mrf.mxu3 }
 0x9d8   : > { %v2919_v49 = vpop.f32.mrf.mxu2 }
 0x9d9   : > { %v2920_v53 = vadd.f32 %v2919_v49, %v2873_v37 }
 0x9da   : > { %v3009_v25 = vpop.f32.mrf.mxu1 }
 0x9db   : > { %v2949_v42 = vadd.f32 %v2948_v14, %v2920_v53  ;;  %v3010_v33 = vadd.f32 %v3009_v25, %v2878_v59  ;;  %v7350_v14 = vld [vmem:[#allocation20_spill] sm:$0xff] }
 0x9de   : > { %v2951_v29 = vpop.f32.mrf.mxu3 }
 0x9e0   : > { %v2922_v8 = vpop.f32.mrf.mxu2 }
 0x9e1   : > { %v2923_v21 = vadd.f32 %v2922_v8, %v2878_v59 }
 0x9e3   : > { %v2952_v45 = vadd.f32 %v2951_v29, %v2923_v21 }
 0x9e7   : > { %v2954_v17 = vpop.f32.mrf.mxu3 }
 0x9e8   : > { %v2925_v41 = vpop.f32.mrf.mxu2 }
 0x9e9   : > { %v2977_v9 = vpop.f32.mrf.mxu0  ;;  %v2926_v20 = vadd.f32 %v2925_v41, %v2883_v56 }
 0x9ea   : > { %v2978_v36 = vadd.f32 %v2977_v9, %v2949_v42  ;;  %v3012_v9 = vpop.f32.mrf.mxu1 }
 0x9eb   : > { %v2955_v30 = vadd.f32 %v2954_v17, %v2926_v20  ;;  %v3013_v8 = vadd.f32 %v3012_v9, %v2883_v56 }
 0x9ec   : > { %v6573_v48 = vadd.f32 %v2978_v36, %v7340_v10 }
 0x9ee   : > { %7341 = vst [vmem:[#allocation16_spill] sm:$0xff] %v6573_v48  ;;  %3152 = vrot.lane.b32.xlu0 %v6573_v48, %s7289_s30  ;;  %3288 = vrot.lane.b32.xlu1 %v6573_v48, %s7266_s16 }
 0x9ef   : > { %3184 = vrot.lane.b32.xlu2 %v6573_v48, %s7290_s22 }
 0x9f0   : > { %v2928_v55 = vpop.f32.mrf.mxu2 }
 0x9f1   : > { %v2980_v62 = vpop.f32.mrf.mxu0  ;;  %v2929_v27 = vadd.f32 %v2928_v55, %v6570_v51  ;;  %v2957_v60 = vpop.f32.mrf.mxu3 }
 0x9f2   : > { %v2981_v4 = vadd.f32 %v2980_v62, %v2952_v45  ;;  %v7352_v45 = vld [vmem:[#allocation32_spill] sm:$0xff] }
 0x9f3   : > { %v2958_v50 = vadd.f32 %v2957_v60, %v2929_v27  ;;  %v7355_v27 = vld [vmem:[#allocation31_spill] sm:$0xff] }
 0x9f4   : > { %v6588_v13 = vadd.f32 %v2981_v4, %v7342_v31  ;;  %v3015_v31 = vpop.f32.mrf.mxu1 }
 0x9f5   : > { %v3016_v20 = vadd.f32 %v3015_v31, %v6570_v51 }
 0x9f6   : > { %3224 = vrot.lane.b32.xlu0 %v6573_v48, %s7268_s7  ;;  %3120 = vrot.lane.b32.xlu1 %v6573_v48, %s7313_s12  ;;  %7343 = vst [vmem:[#allocation17_spill] sm:$0xff] %v6588_v13 }
 0x9f7   : > { %3256 = vrot.lane.b32.xlu2 %v6573_v48, %s7293_s13 }
 0x9f8   : > { %v3035_v44 = vpop.f32.mrf.mxu2 }
 0x9f9   : > { %v2983_v46 = vpop.f32.mrf.mxu0  ;;  %v3036_v28 = vadd.f32 %v3035_v44, %v3007_v26  ;;  %v3064_v12 = vpop.f32.mrf.mxu3 }
 0x9fa   : > { %v2984_v19 = vadd.f32 %v2983_v46, %v2955_v30 }
 0x9fb   : > { %v3065_v38 = vadd.f32 %v3064_v12, %v3036_v28 }
 0x9fc   : > { %v6603_v61 = vadd.f32 %v2984_v19, %v7344_v22 }
 0x9fd   : > { %v6640_v47 = vadd.f32 %v3065_v38, %v7348_v35 }
 0x9fe   : > { %3186 = vrot.lane.b32.xlu0 %v6588_v13, %s7290_s22  ;;  %3258 = vrot.lane.b32.xlu1 %v6588_v13, %s7293_s13  ;;  %7345 = vst [vmem:[#allocation14_spill] sm:$0xff] %v6603_v61 }
 0x9ff   : > { %3088 = vrot.lane.b32.xlu2 %v6573_v48, %s7273_s29  ;;  %7349 = vst [vmem:[#allocation21_spill] sm:$0xff] %v6640_v47 }
 0xa00   : > { %v3038_v2 = vpop.f32.mrf.mxu2 }
 0xa01   : > { %v2986_v39 = vpop.f32.mrf.mxu0  ;;  %v3039_v49 = vadd.f32 %v3038_v2, %v3010_v33  ;;  %v3067_v37 = vpop.f32.mrf.mxu3 }
 0xa02   : > { %v2987_v63 = vadd.f32 %v2986_v39, %v2958_v50 }
 0xa03   : > { %v3068_v53 = vadd.f32 %v3067_v37, %v3039_v49 }
 0xa04   : > { %v6625_v43 = vadd.f32 %v2987_v63, %v7346_v24 }
 0xa05   : > { %v6655_v42 = vadd.f32 %v3068_v53, %v7350_v14  ;;  %v3087_v14 = vld [vmem:[%s7146_s10] sm:$0xff] }
 0xa06   : > { %3290 = vrot.lane.b32.xlu0 %v6588_v13, %s7266_s16  ;;  %3090 = vrot.lane.b32.xlu1 %v6588_v13, %s7273_s29  ;;  %7347 = vst [vmem:[#allocation9_spill] sm:$0xff] %v6625_v43 }
 0xa07   : > { %3154 = vrot.lane.b32.xlu2 %v6588_v13, %s7289_s30  ;;  %7351 = vst [vmem:[#allocation18_spill] sm:$0xff] %v6655_v42 }
 0xa08   : > { %v3041_v36 = vpop.f32.mrf.mxu2 }
 0xa09   : > { %v3042_v59 = vadd.f32 %v3041_v36, %v3013_v8  ;;  %v3070_v21 = vpop.f32.mrf.mxu3 }
 0xa0b   : > { %v3071_v29 = vadd.f32 %v3070_v21, %v3042_v59 }
 0xa0d   : > { %v6674_v4 = vadd.f32 %v3071_v29, %v7352_v45 }
 0xa0e   : > { %3122 = vrot.lane.b32.xlu0 %v6588_v13, %s7313_s12  ;;  %3188 = vrot.lane.b32.xlu1 %v6603_v61, %s7290_s22 }
 0xa0f   : > { %3226 = vrot.lane.b32.xlu2 %v6588_v13, %s7268_s7  ;;  %7353 = vst [vmem:[#allocation10_spill] sm:$0xff] %v6674_v4 }
 0xa10   : > { %v3044_v41 = vpop.f32.mrf.mxu2 }
 0xa11   : > { %v3045_v17 = vadd.f32 %v3044_v41, %v3016_v20  ;;  %v3073_v46 = vpop.f32.mrf.mxu3 }
 0xa13   : > { %v3074_v30 = vadd.f32 %v3073_v46, %v3045_v17 }
 0xa15   : > { %v6698_v51 = vadd.f32 %v3074_v30, %v7355_v27 }
 0xa16   : > { %3260 = vrot.lane.b32.xlu0 %v6603_v61, %s7293_s13  ;;  %3156 = vrot.lane.b32.xlu1 %v6603_v61, %s7289_s30 }
 0xa17   : > { %3292 = vrot.lane.b32.xlu2 %v6603_v61, %s7266_s16  ;;  %7356 = vst [vmem:[#allocation29_spill] sm:$0xff] %v6698_v51 }
 0xa1e   : > { %3092 = vrot.lane.b32.xlu0 %v6603_v61, %s7273_s29  ;;  %3228 = vrot.lane.b32.xlu1 %v6603_v61, %s7268_s7 }
 0xa1f   : > { %3124 = vrot.lane.b32.xlu2 %v6603_v61, %s7313_s12 }
 0xa26   : > { %3158 = vrot.lane.b32.xlu0 %v6625_v43, %s7289_s30  ;;  %3294 = vrot.lane.b32.xlu1 %v6625_v43, %s7266_s16 }
 0xa27   : > { %3190 = vrot.lane.b32.xlu2 %v6625_v43, %s7290_s22 }
 0xa2e   : > { %3230 = vrot.lane.b32.xlu0 %v6625_v43, %s7268_s7  ;;  %3126 = vrot.lane.b32.xlu1 %v6625_v43, %s7313_s12 }
 0xa2f   : > { %3262 = vrot.lane.b32.xlu2 %v6625_v43, %s7293_s13 }
 0xa36   : > { %3192 = vrot.lane.b32.xlu0 %v6640_v47, %s7290_s22  ;;  %3160 = vrot.lane.b32.xlu1 %v6640_v47, %s7289_s30 }
 0xa37   : > { %3094 = vrot.lane.b32.xlu2 %v6625_v43, %s7273_s29 }
 0xa3e   : > { %3264 = vrot.lane.b32.xlu0 %v6640_v47, %s7293_s13  ;;  %3232 = vrot.lane.b32.xlu1 %v6640_v47, %s7268_s7 }
 0xa3f   : > { %3296 = vrot.lane.b32.xlu2 %v6640_v47, %s7266_s16 }
 0xa46   : > { %3162 = vrot.lane.b32.xlu0 %v6655_v42, %s7289_s30  ;;  %3194 = vrot.lane.b32.xlu1 %v6655_v42, %s7290_s22 }
 0xa47   : > { %3128 = vrot.lane.b32.xlu2 %v6640_v47, %s7313_s12 }
 0xa49   : > { %v6663_v10 = vpop.permute.xlu2 %3184 }
 0xa4e   : > { %3234 = vrot.lane.b32.xlu0 %v6655_v42, %s7268_s7  ;;  %3298 = vrot.lane.b32.xlu1 %v6655_v42, %s7266_s16 }
 0xa4f   : > { %3266 = vrot.lane.b32.xlu2 %v6655_v42, %s7293_s13 }
 0xa51   : > { %v6671_v62 = vpop.permute.xlu2 %3256 }
 0xa56   : > { %3300 = vrot.lane.b32.xlu0 %v6674_v4, %s7266_s16  ;;  %3130 = vrot.lane.b32.xlu1 %v6655_v42, %s7313_s12 }
 0xa57   : > { %3098 = vrot.lane.b32.xlu2 %v6655_v42, %s7273_s29 }
 0xa59   : > { %v6682_v56 = vpop.permute.xlu2 %3088 }
 0xa5a   : > { %7354 = vst [vmem:[#allocation30_spill] sm:$0xff] %v6682_v56 }
 0xa5e   : > { %3132 = vrot.lane.b32.xlu0 %v6674_v4, %s7313_s12  ;;  %3268 = vrot.lane.b32.xlu1 %v6674_v4, %s7293_s13 }
 0xa5f   : > { %3196 = vrot.lane.b32.xlu2 %v6674_v4, %s7290_s22 }
 0xa60   : > { %v6691_v19 = vpop.permute.xlu0 %3152  ;;  %v6693_v22 = vpop.permute.xlu1 %3288 }
 0xa61   : > { %v6695_v55 = vpop.permute.xlu2 %3154 }
 0xa66   : > { %3198 = vrot.lane.b32.xlu0 %v6698_v51, %s7290_s22  ;;  %3100 = vrot.lane.b32.xlu1 %v6674_v4, %s7273_s29 }
 0xa67   : > { %3164 = vrot.lane.b32.xlu2 %v6674_v4, %s7289_s30 }
 0xa68   : > { %v6706_v60 = vpop.permute.xlu0 %3224  ;;  %v3121_v39 = vpop.permute.xlu1 %3120 }
 0xa69   : > { %7357 = vst [vmem:[#allocation12_spill] sm:$0xff] %v6706_v60  ;;  %v6708_v50 = vpop.permute.xlu2 %3226 }
 0xa6a   : > { %7358 = vst [vmem:[#allocation15_spill] sm:$0xff] %v6708_v50 }
 0xa6e   : > { %3096 = vrot.lane.b32.xlu0 %v6640_v47, %s7273_s29  ;;  %3166 = vrot.lane.b32.xlu1 %v6698_v51, %s7289_s30  ;;  %s426_s30 = scalar_lea.vmem [#allocation5], %s3600_s15 }
 0xa6f   : > { %3236 = vrot.lane.b32.xlu2 %v6674_v4, %s7268_s7  ;;  %s3496_s22 = sshll.u32 %s426_s30, 4  ;;  %s3497_s22 = int_to_ptr.vmem [resolvable:$true] %s3496_s22 }
 0xa70   : > { %v6716_v63 = vpop.permute.xlu0 %3186  ;;  %v3259_v24 = vpop.permute.xlu1 %3258 }
 0xa71   : > { %v3293_v34 = vpop.permute.xlu2 %3292 }
 0xa76   : > { %3270 = vrot.lane.b32.xlu0 %v6698_v51, %s7293_s13  ;;  %3326 = vrot.lane.b32.xlu1 %v6625_v43, %s3913_s25 }
 0xa77   : > { %3302 = vrot.lane.b32.xlu2 %v6698_v51, %s7266_s16  ;;  %s3733_s16 = sshll.u32 %s3995_s21, 4  ;;  %s3483_s21 = scalar_lea.sflag [#allocation4], %s424_s24 }
 0xa78   : > { %v3291_v44 = vpop.permute.xlu0 %3290  ;;  %v3091_v26 = vpop.permute.xlu1 %3090 }
 0xa79   : > { %v6724_v28 = vpop.permute.xlu2 %3124 }
 0xa7e   : > { %3102 = vrot.lane.b32.xlu0 %v6698_v51, %s7273_s29  ;;  %3238 = vrot.lane.b32.xlu1 %v6698_v51, %s7268_s7  ;;  %s3494_s29 = scalar_lea.hbm %s7147_s11, %s3733_s16 }
 0xa7f   : > { %3134 = vrot.lane.b32.xlu2 %v6698_v51, %s7313_s12  ;;  %s3498_s13 = sshll.u32 %s3494_s29, 4  ;;  %s3499_s13 = int_to_ptr.hbm [resolvable:$true] %s3498_s13 }
 0xa80   : > { %v6732_v12 = vpop.permute.xlu0 %3122  ;;  %v6734_v38 = vpop.permute.xlu1 %3188  ;;  %s3848_s12 = sshra.s32 %s3499_s13, 4  ;;  %s3849_s12 = int_to_ptr.hbm [resolvable:$true] %s3848_s12 }
 0xa81   : > { %v6736_v35 = vpop.permute.xlu2 %3190  ;;  %s3850_s0 = scalar_lea.hbm %s3849_s12, 16  ;;  %p3855_p3 = scmp.lt.s32.totalorder %s3849_s12, %s7147_s11 }
 0xa82   : > { %p3851_p0 = scmp.ne.s32.totalorder %s3849_s12, %s3850_s0  ;;  %p3856_p4 = scmp.lt.s32.totalorder %s3854_s14, %s3850_s0 }
 0xa84   : > { %p3852_p1 = pnand %p3851_p0, %p4012_p5  ;;  %p3857_p7 = por %p3856_p4, %p3855_p3 }
 0xa86   : > { %3324 = vrot.lane.b32.xlu0 %v6603_v61, %s3913_s25  ;;  %3332 = vrot.lane.b32.xlu1 %v6674_v4, %s3913_s25  ;;  %p3853_p2 = pneg %p3852_p1 }
 0xa87   : > { %3322 = vrot.lane.b32.xlu2 %v6588_v13, %s3913_s25 }
 0xa88   : > { %v6744_v25 = vpop.permute.xlu0 %3260  ;;  %v6746_v2 = vpop.permute.xlu1 %3156  ;;  %p3858_p8 = pnand %p3857_p7, %p3853_p2 }
 0xa89   : > { %v6748_v33 = vpop.permute.xlu2 %3262 }
 0xa8e   : > { %3330 = vrot.lane.b32.xlu0 %v6655_v42, %s3913_s25  ;;  %3320 = vrot.lane.b32.xlu1 %v6573_v48, %s3913_s25 }
 0xa8f   : > { %3334 = vrot.lane.b32.xlu2 %v6698_v51, %s3913_s25 }
 0xa90   : > { %v6756_v49 = vpop.permute.xlu0 %3092  ;;  %v6758_v37 = vpop.permute.xlu1 %3228 }
 0xa91   : > { %v6760_v53 = vpop.permute.xlu2 %3094 }
 0xa96   : > { %3354 = vperm.xlu0 %3795, %v3087_v14  }
 0xa97   : > { %3328 = vrot.lane.b32.xlu2 %v6640_v47, %s3913_s25 }
 0xa98   : > { %v6767_v9 = vpop.permute.xlu0 %3158  ;;  %v3295_v36 = vpop.permute.xlu1 %3294 }
 0xa99   : > { %v3297_v8 = vpop.permute.xlu2 %3296 }
 0xaa0   : > { %v6769_v59 = vpop.permute.xlu0 %3230  ;;  %v6771_v21 = vpop.permute.xlu1 %3126 }
 0xaa1   : > { %v3129_v29 = vpop.permute.xlu2 %3128 }
 0xaa2   : > { %v6775_v45 = vsel %vm1143_vm6, %v3121_v39, %v3129_v29  ;;  %v6779_v31 = vsel %vm1143_vm6, %v3129_v29, %v3121_v39 }
 0xaa8   : > { %v3193_v41 = vpop.permute.xlu0 %3192  ;;  %v6781_v20 = vpop.permute.xlu1 %3160 }
 0xaa9   : > { %v3267_v17 = vpop.permute.xlu2 %3266 }
 0xaaa   : > { %v6785_v46 = vsel %vm1293_vm5, %v3259_v24, %v3267_v17  ;;  %v6789_v30 = vsel %vm1293_vm5, %v3267_v17, %v3259_v24 }
 0xab0   : > { %v6791_v27 = vpop.permute.xlu0 %3264  ;;  %v6793_v14 = vpop.permute.xlu1 %3232 }
 0xab1   : > { %7359 = vst [vmem:[#allocation13_spill] sm:$0xff] %v6793_v14  ;;  %v3099_v47 = vpop.permute.xlu2 %3098 }
 0xab2   : > { %v6797_v39 = vsel %vm1108_vm8, %v3091_v26, %v3099_v47  ;;  %v6801_v29 = vsel %vm1108_vm8, %v3099_v47, %v3091_v26 }
 0xab3   : > { %7360 = vst [vmem:[#allocation11_spill] sm:$0xff] %v6797_v39 }
 0xab4   : > { %7361 = vst [vmem:[#allocation8_spill] sm:$0xff] %v6801_v29 }
 0xab8   : > { %v6803_v48 = vpop.permute.xlu0 %3162  ;;  %v3195_v42 = vpop.permute.xlu1 %3194 }
 0xab9   : > { %v3197_v13 = vpop.permute.xlu2 %3196 }
 0xac0   : > { %v6805_v4 = vpop.permute.xlu0 %3234  ;;  %v3299_v24 = vpop.permute.xlu1 %3298 }
 0xac1   : > { %7362 = vst [vmem:[#allocation28_spill] sm:$0xff] %v6805_v4  ;;  %v3165_v17 = vpop.permute.xlu2 %3164  ;;  %v3305_v60 = vsel %vm1328_vm4, %v3291_v44, %v3299_v24  ;;  %v3309_v14 = vsel %vm1328_vm4, %v3299_v24, %v3291_v44 }
 0xac8   : > { %v3301_v61 = vpop.permute.xlu0 %3300  ;;  %v6807_v51 = vpop.permute.xlu1 %3130 }
 0xac9   : > { %v6809_v5 = vpop.permute.xlu2 %3236  ;;  %v3306_v47 = vsel %vm1328_vm4, %v3293_v34, %v3301_v61  ;;  %v3310_v26 = vsel %vm1328_vm4, %v3301_v61, %v3293_v34  ;;  %v3304_v34 = vsel %vm1328_vm4, %v6693_v22, %v3297_v8 }
 0xaca   : > { %v3316_v16 = vmul.f32 %v3306_v47, %v7322_v18  ;;  %v3317_v61 = vmul.f32 %v3310_v26, %v7279_v57  ;;  %v3205_v47 = vsel %vm1213_vm2, %v3195_v42, %v6716_v63 }
 0xacb   : > { %v3210_v26 = vmul.f32 %v3205_v47, %v7324_v54 }
 0xad0   : > { %v6811_v43 = vpop.permute.xlu0 %3132  ;;  %v6813_v1 = vpop.permute.xlu1 %3268 }
 0xad1   : > { %v3303_v39 = vpop.permute.xlu2 %3302 }
 0xad2   : > { %v3307_v29 = vsel %vm1328_vm4, %v3295_v36, %v3303_v39  ;;  %v3311_v56 = vsel %vm1328_vm4, %v3303_v39, %v3295_v36  ;;  %v3314_v36 = vmul.f32 %v3305_v60, %v7322_v18  ;;  %v3202_v60 = vsel %vm1213_vm2, %v6734_v38, %v3197_v13 }
 0xad3   : > { %v3318_v50 = vmul.f32 %v3307_v29, %v7322_v18  ;;  %v3319_v4 = vmul.f32 %v3311_v56, %v7279_v57  ;;  %v3308_v56 = vsel %vm1328_vm4, %v3297_v8, %v6693_v22 }
 0xad5   : > { %3380 = vmatpush.msra.mxu1 %v3318_v50  ;;  %3440 = vmatpush.msra.mxu0 %v3319_v4  ;;  %v3206_v50 = vsel %vm1213_vm2, %v3197_v13, %v6734_v38  ;;  %v3315_v4 = vmul.f32 %v3309_v14, %v7279_v57  ;;  %v3313_v14 = vmul.f32 %v3308_v56, %v7279_v57 }
 0xad6   : > { %v3204_v13 = vsel %vm1213_vm2, %v3193_v41, %v6663_v10  ;;  %v3213_v38 = vmul.f32 %v3202_v60, %v7325_v7  ;;  %v3200_v57 = vsel %vm1213_vm2, %v6663_v10, %v3193_v41 }
 0xad7   : > { %3381 = vmatpush.msra.mxu1 %v3316_v16  ;;  %3441 = vmatpush.msra.mxu0 %v3317_v61  ;;  %v3312_v16 = vmul.f32 %v3304_v34, %v7322_v18  ;;  %v3201_v18 = vsel %vm1213_vm2, %v6716_v63, %v3195_v42  ;;  %v3208_v63 = vmul.f32 %v3204_v13, %v7324_v54 }
 0xad8   : > { %v3199_v39 = vpop.permute.xlu0 %3198  ;;  %v6838_v44 = vpop.permute.xlu1 %3100  ;;  %v3211_v42 = vmul.f32 %v3201_v18, %v7325_v7  ;;  %v3209_v56 = vmul.f32 %v3200_v57, %v7325_v7  ;;  %v3278_v18 = vsel %vm1293_vm5, %v6813_v1, %v6744_v25  ;;  %v3144_v13 = vmul.f32 %v6779_v31, %v4665_v0 }
 0xad9   : > { %v3203_v29 = vsel %vm1213_vm2, %v6736_v35, %v3199_v39  ;;  %v3207_v22 = vsel %vm1213_vm2, %v3199_v39, %v6736_v35  ;;  %3382 = vmatpush.msra.mxu1 %v3314_v36  ;;  %3442 = vmatpush.msra.mxu0 %v3315_v4  ;;  %v3212_v35 = vmul.f32 %v3206_v50, %v7324_v54  ;;  %v3135_v39 = vpop.permute.xlu2 %3134 }
 0xada   : > { %v3214_v8 = vmul.f32 %v3207_v22, %v7324_v54  ;;  %v3215_v24 = vmul.f32 %v3203_v29, %v7325_v7  ;;  %v3174_v36 = vsel %vm1178_vm3, %v3165_v17, %v6746_v2  ;;  %v3170_v54 = vsel %vm1178_vm3, %v6746_v2, %v3165_v17 }
 0xadb   : > { %3383 = vmatpush.msra.mxu1 %v3312_v16  ;;  %3443 = vmatpush.msra.mxu0 %v3313_v14  ;;  %v3173_v4 = vsel %vm1178_vm3, %v6803_v48, %v6695_v55  ;;  %v3180_v29 = vmul.f32 %v3174_v36, %v4568_v58  ;;  %v3168_v2 = vsel %vm1178_vm3, %v6691_v19, %v6781_v20 }
 0xadc   : > { %3360 = vmatpush.msrb.mxu2 %v3214_v8  ;;  %3420 = vmatpush.msrb.mxu3 %v3215_v24  ;;  %v3172_v17 = vsel %vm1178_vm3, %v6781_v20, %v6691_v19  ;;  %v3181_v22 = vmul.f32 %v3170_v54, %v4589_v32  ;;  %v3178_v16 = vmul.f32 %v3173_v4, %v4568_v58 }
 0xadd   : > { %v3176_v60 = vmul.f32 %v3172_v17, %v4568_v58  ;;  %v3177_v8 = vmul.f32 %v3168_v2, %v4589_v32  ;;  %v3138_v19 = vsel %vm1143_vm6, %v6724_v28, %v6811_v43  ;;  %v3139_v20 = vsel %vm1143_vm6, %v6771_v21, %v3135_v39 }
 0xade   : > { %3361 = vmatpush.msrb.mxu2 %v3212_v35  ;;  %3421 = vmatpush.msrb.mxu3 %v3213_v38  ;;  %v3137_v38 = vsel %vm1143_vm6, %v6732_v12, %v6807_v51  ;;  %v3283_v36 = vmul.f32 %v6789_v30, %v7328_v6 }
 0xae0   : > { %v6874_v61 = vpop.permute.xlu0 %3096  ;;  %v3167_v34 = vpop.permute.xlu1 %3166  ;;  %3362 = vmatpush.msrb.mxu2 %v3210_v26  ;;  %3422 = vmatpush.msrb.mxu3 %v3211_v42  ;;  %v3276_v42 = vsel %vm1293_vm5, %v6791_v27, %v6671_v62 }
 0xae1   : > { %v3171_v10 = vsel %vm1178_vm3, %v6767_v9, %v3167_v34  ;;  %v3175_v41 = vsel %vm1178_vm3, %v3167_v34, %v6767_v9  ;;  %v3169_v9 = vsel %vm1178_vm3, %v6695_v55, %v6803_v48  ;;  %v3143_v55 = vsel %vm1143_vm6, %v3135_v39, %v6771_v21  ;;  %v6963_v26 = vpop.permute.xlu2 %3322 }
 0xae2   : > { %v3182_v7 = vmul.f32 %v3175_v41, %v4568_v58  ;;  %v3183_v50 = vmul.f32 %v3171_v10, %v4589_v32  ;;  %3363 = vmatpush.msrb.mxu2 %v3208_v63  ;;  %3423 = vmatpush.msrb.mxu3 %v3209_v56  ;;  %v3179_v48 = vmul.f32 %v3169_v9, %v4589_v32  ;;  %v7364_v9 = vld [vmem:[#allocation13_spill] sm:$0xff] }
 0xae3   : > { %v3142_v58 = vsel %vm1143_vm6, %v6811_v43, %v6724_v28  ;;  %v3274_v32 = vsel %vm1293_vm5, %v6744_v25, %v6813_v1  ;;  %v3150_v43 = vmul.f32 %v3143_v55, %v4665_v0  ;;  %v3141_v1 = vsel %vm1143_vm6, %v6807_v51, %v6732_v12 }
 0xae4   : > { %3364 = vmatpush.msrb.mxu2 %v3182_v7  ;;  %3424 = vmatpush.msrb.mxu3 %v3183_v50  ;;  %v3151_v25 = vmul.f32 %v3139_v20, %v4668_v40  ;;  %v3148_v31 = vmul.f32 %v3142_v58, %v4665_v0  ;;  %v3284_v57 = vmul.f32 %v3274_v32, %v4639_v3  ;;  %v7363_v50 = vld [vmem:[#allocation24_spill] sm:$0xff] }
 0xae5   : > { %v3149_v63 = vmul.f32 %v3138_v19, %v4668_v40  ;;  %v3285_v34 = vmul.f32 %v3278_v18, %v7328_v6  ;;  %v3145_v51 = vmul.f32 %v6775_v45, %v4668_v40  ;;  %v3282_v12 = vmul.f32 %v6785_v46, %v4639_v3  ;;  %v7369_v20 = vld [vmem:[#allocation8_spill] sm:$0xff] }
 0xae6   : > { %3365 = vmatpush.msrb.mxu2 %v3180_v29  ;;  %3425 = vmatpush.msrb.mxu3 %v3181_v22  ;;  %v3146_v56 = vmul.f32 %v3141_v1, %v4665_v0  ;;  %v3281_v10 = vmul.f32 %v3276_v42, %v7328_v6  ;;  %v3242_v45 = vsel %vm1258_vm7, %v6758_v37, %v6809_v5  ;;  %v7365_v29 = vld [vmem:[#allocation12_spill] sm:$0xff]  ;;  %v7372_v42 = vld [vmem:[#allocation9_spill] sm:$0xff] }
 0xae7   : > { %v3110_v0 = vsel %vm1108_vm8, %v6838_v44, %v6756_v49  ;;  %v3240_v2 = vsel %vm1258_vm7, %v7365_v29, %v7364_v9  ;;  %v3244_v17 = vsel %vm1258_vm7, %v7364_v9, %v7365_v29  ;;  %v7366_v22 = vld [vmem:[#allocation28_spill] sm:$0xff] }
 0xae8   : > { %v3271_v24 = vpop.permute.xlu0 %3270  ;;  %v6923_v14 = vpop.permute.xlu1 %3326  ;;  %3366 = vmatpush.msrb.mxu2 %v3178_v16  ;;  %3426 = vmatpush.msrb.mxu3 %v3179_v48  ;;  %v7367_v16 = vld [vmem:[#allocation15_spill] sm:$0xff] }
 0xae9   : > { %v3275_v47 = vsel %vm1293_vm5, %v6748_v33, %v3271_v24  ;;  %v3279_v21 = vsel %vm1293_vm5, %v3271_v24, %v6748_v33  ;;  %v3272_v33 = vsel %vm1293_vm5, %v6671_v62, %v6791_v27  ;;  %v3147_v27 = vmul.f32 %v3137_v38, %v4668_v40  ;;  %v3335_v19 = vpop.permute.xlu2 %3334 }
 0xaea   : > { %v3286_v28 = vmul.f32 %v3275_v47, %v4639_v3  ;;  %v3287_v35 = vmul.f32 %v3279_v21, %v7328_v6  ;;  %3367 = vmatpush.msrb.mxu2 %v3176_v60  ;;  %3427 = vmatpush.msrb.mxu3 %v3177_v8  ;;  %v3280_v62 = vmul.f32 %v3272_v33, %v4639_v3  ;;  %v7368_v60 = vld [vmem:[#allocation30_spill] sm:$0xff]  ;;  %v7370_v21 = vld [vmem:[#allocation11_spill] sm:$0xff] }
 0xaeb   : > { %v3108_v8 = vsel %vm1108_vm8, %v6874_v61, %v7368_v60  ;;  %v3114_v24 = vmul.f32 %v7369_v20, %v4735_v11  ;;  %v3104_v32 = vsel %vm1108_vm8, %v7368_v60, %v6874_v61  ;;  %v3248_v47 = vmul.f32 %v3240_v2, %v4712_v52 }
 0xaec   : > { %3368 = vmatpush.msrb.mxu2 %v3150_v43  ;;  %3384 = vmatpush.msra.mxu1 %v3286_v28  ;;  %v3115_v18 = vmul.f32 %v7370_v21, %v4738_v15  ;;  %v3339_v33 = vsel %vm1363_vm9, %v6923_v14, %v3335_v19  ;;  %v3113_v1 = vmul.f32 %v3104_v32, %v4738_v15 }
 0xaed   : > { %3428 = vmatpush.msrb.mxu3 %v3151_v25  ;;  %3444 = vmatpush.msra.mxu0 %v3287_v35  ;;  %v3084_v25 = vld [vmem:[%s7145_s9] sm:$0xff] }
 0xaee   : > { %3369 = vmatpush.msrb.mxu2 %v3148_v31  ;;  %3385 = vmatpush.msra.mxu1 %v3284_v57  ;;  %v7371_v57 = vld [vmem:[#allocation19_spill] sm:$0xff] }
 0xaef   : > { %3429 = vmatpush.msrb.mxu3 %v3149_v63  ;;  %3445 = vmatpush.msra.mxu0 %v3285_v34  ;;  %v3222_v63 = vmul.f32 %v7372_v42, %v7371_v57  ;;  %v7374_v34 = vld [vmem:[#allocation29_spill] sm:$0xff] }
 0xaf0   : > { %v3103_v46 = vpop.permute.xlu0 %3102  ;;  %v3239_v30 = vpop.permute.xlu1 %3238  ;;  %3370 = vmatpush.msrb.mxu2 %v3146_v56  ;;  %3386 = vmatpush.msra.mxu1 %v3282_v12  ;;  %v7375_v12 = vld [vmem:[#allocation14_spill] sm:$0xff] }
 0xaf1   : > { %v3107_v3 = vsel %vm1108_vm8, %v6760_v53, %v3103_v46  ;;  %v3111_v40 = vsel %vm1108_vm8, %v3103_v46, %v6760_v53  ;;  %v3243_v6 = vsel %vm1258_vm7, %v6769_v59, %v3239_v30  ;;  %v3247_v41 = vsel %vm1258_vm7, %v3239_v30, %v6769_v59  ;;  %3430 = vmatpush.msrb.mxu3 %v3147_v27  ;;  %v3329_v30 = vpop.permute.xlu2 %3328 }
 0xaf2   : > { %v3118_v54 = vmul.f32 %v3111_v40, %v4735_v11  ;;  %v3119_v39 = vmul.f32 %v3107_v3, %v4738_v15  ;;  %v3254_v7 = vmul.f32 %v3243_v6, %v4712_v52  ;;  %v3255_v4 = vmul.f32 %v3247_v41, %v7363_v50  ;;  %3446 = vmatpush.msra.mxu0 %v3283_v36  ;;  %v7376_v36 = vld [vmem:[#allocation10_spill] sm:$0xff] }
 0xaf3   : > { %v3246_v53 = vsel %vm1258_vm7, %v6809_v5, %v6758_v37  ;;  %v3106_v59 = vsel %vm1108_vm8, %v6756_v49, %v6838_v44  ;;  %3371 = vmatpush.msrb.mxu2 %v3144_v13  ;;  %3387 = vmatpush.msra.mxu1 %v3280_v62  ;;  %v3241_v5 = vsel %vm1258_vm7, %v7367_v16, %v7366_v22  ;;  %v7378_v40 = vld [vmem:[#allocation18_spill] sm:$0xff] }
 0xaf4   : > { %3431 = vmatpush.msrb.mxu3 %v3145_v51  ;;  %3447 = vmatpush.msra.mxu0 %v3281_v10  ;;  %v3245_v49 = vsel %vm1258_vm7, %v7366_v22, %v7367_v16  ;;  %v3252_v37 = vmul.f32 %v3242_v45, %v4712_v52  ;;  %v3116_v44 = vmul.f32 %v3110_v0, %v4735_v11  ;;  %v7377_v45 = vld [vmem:[#allocation17_spill] sm:$0xff] }
 0xaf5   : > { %3372 = vmatpush.msrb.mxu2 %v3118_v54  ;;  %3388 = vmatpush.msra.mxu1 %v3254_v7  ;;  %v3253_v48 = vmul.f32 %v3246_v53, %v7363_v50  ;;  %v3117_v55 = vmul.f32 %v3106_v59, %v4738_v15  ;;  %v3250_v58 = vmul.f32 %v3241_v5, %v4712_v52  ;;  %v7373_v15 = vld [vmem:[#allocation25_spill] sm:$0xff]  ;;  %v3803_v59 = vld [vmem:[%s7142_s6 + $0x18] ss:$0 sm:$0xff] }
 0xaf6   : > { %3432 = vmatpush.msrb.mxu3 %v3119_v39  ;;  %3448 = vmatpush.msra.mxu0 %v3255_v4  ;;  %v3251_v43 = vmul.f32 %v3245_v49, %v7363_v50  ;;  %v3112_v13 = vmul.f32 %v3108_v8, %v4735_v11  ;;  %v3249_v52 = vmul.f32 %v3244_v17, %v7363_v50  ;;  %v3802_v11 = vld [vmem:[%s7142_s6 + $0x10] ss:$0 sm:$0xff]  ;;  %v7379_v39 = vld [vmem:[#allocation16_spill] sm:$0xff]  ;;  %v7380_v4 = vld [vmem:[#allocation21_spill] sm:$0xff] }
 0xaf7   : > { %3373 = vmatpush.msrb.mxu2 %v3116_v44  ;;  %3389 = vmatpush.msra.mxu1 %v3252_v37  ;;  %v3350_v38 = vmul.f32 %v3802_v11, %v3339_v33  ;;  %v3223_v51 = vmul.f32 %v7374_v34, %v7373_v15  ;;  %v3220_v56 = vmul.f32 %v7375_v12, %v7371_v57  ;;  %v3086_v17 = vld [vmem:[%s7145_s9 + $0x10] sm:$0xff] }
 0xaf8   : > { %3433 = vmatpush.msrb.mxu3 %v3117_v55  ;;  %3449 = vmatpush.msra.mxu0 %v3253_v48  ;;  %v3325_v28 = vpop.permute.xlu0 %3324  ;;  %v3333_v35 = vpop.permute.xlu1 %3332  ;;  %v3221_v62 = vmul.f32 %v7376_v36, %v7373_v15  ;;  %v3218_v0 = vmul.f32 %v7377_v45, %v7371_v57  ;;  %v3343_v46 = vsel %vm1363_vm9, %v3335_v19, %v6923_v14  ;;  %v3085_v14 = vld [vmem:[%s7145_s9 + $0x8] sm:$0xff] }
 0xaf9   : > { %v3338_v61 = vsel %vm1363_vm9, %v3325_v28, %v3333_v35  ;;  %3374 = vmatpush.msrb.mxu2 %v3114_v24  ;;  %3390 = vmatpush.msra.mxu1 %v3250_v58  ;;  %v3219_v6 = vmul.f32 %v7378_v40, %v7373_v15  ;;  %v3216_v7 = vmul.f32 %v7379_v39, %v7371_v57 }
 0xafa   : > { %3434 = vmatpush.msrb.mxu3 %v3115_v18  ;;  %3450 = vmatpush.msra.mxu0 %v3251_v43  ;;  %v3348_v31 = vmul.f32 %v3802_v11, %v3338_v61  ;;  %v3342_v50 = vsel %vm1363_vm9, %v3333_v35, %v3325_v28  ;;  %v3217_v53 = vmul.f32 %v7380_v4, %v7373_v15 }
 0xafb   : > { %3375 = vmatpush.msrb.mxu2 %v3112_v13  ;;  %3391 = vmatpush.msra.mxu1 %v3248_v47  ;;  %v3351_v9 = vmul.f32 %v3803_v59, %v3343_v46  ;;  %v3349_v22 = vmul.f32 %v3803_v59, %v3342_v50 }
 0xafc   : > { %3435 = vmatpush.msrb.mxu3 %v3113_v1  ;;  %3451 = vmatpush.msra.mxu0 %v3249_v52 }
 0xafd   : > { %3376 = vmatmul.f32.vlgmr.msrb.gmra.mxu2 %v3084_v25  ;;  %3436 = vmatmul.f32.vlgmr.msrb.gmra.mxu3 %v3084_v25 }
 0xafe   : > { %3412 = vmatpush.msra.mxu2 %v3350_v38  ;;  %3392 = vmatpush.msra.mxu1 %v3222_v63 }
 0xaff   : > { %3452 = vmatpush.msra.mxu0 %v3223_v51 }
 0xb00   : > { %3413 = vmatpush.msra.mxu2 %v3348_v31  ;;  %3393 = vmatpush.msra.mxu1 %v3220_v56  ;;  %v3331_v27 = vpop.permute.xlu0 %3330  ;;  %v3321_v10 = vpop.permute.xlu1 %3320 }
 0xb01   : > { %3453 = vmatpush.msra.mxu0 %v3221_v62  ;;  %v3337_v3 = vsel %vm1363_vm9, %v6963_v26, %v3331_v27  ;;  %v3336_v54 = vsel %vm1363_vm9, %v3321_v10, %v3329_v30  ;;  %v3341_v29 = vsel %vm1363_vm9, %v3331_v27, %v6963_v26  ;;  %v3340_v16 = vsel %vm1363_vm9, %v3329_v30, %v3321_v10 }
 0xb02   : > { %v3346_v41 = vmul.f32 %v3802_v11, %v3337_v3  ;;  %3394 = vmatpush.msra.mxu1 %v3218_v0  ;;  %v3344_v2 = vmul.f32 %v3802_v11, %v3336_v54  ;;  %v3347_v5 = vmul.f32 %v3803_v59, %v3341_v29  ;;  %v3345_v26 = vmul.f32 %v3803_v59, %v3340_v16 }
 0xb03   : > { %3454 = vmatpush.msra.mxu0 %v3219_v6 }
 0xb04   : > { %3395 = vmatpush.msra.mxu1 %v3216_v7  ;;  %3414 = vmatpush.msra.mxu2 %v3346_v41 }
 0xb05   : > { %3455 = vmatpush.msra.mxu0 %v3217_v53  ;;  %3396 = vmatmul.f32.vlgmr.msra.gmra.mxu1 %v3085_v14 }
 0xb06   : > { %3456 = vmatmul.f32.vlgmr.msra.gmra.mxu0 %v3085_v14  ;;  %3472 = vmatpush.msrb.mxu1 %v3351_v9 }
 0xb07   : > { %3415 = vmatpush.msra.mxu2 %v3344_v2 }
 0xb08   : > { %3473 = vmatpush.msrb.mxu1 %v3349_v22  ;;  %3723 = vmatmul.msk.f32.vlgmr.msra.gmra.mxu2 %vm667_vm1, %v3086_v17  ;;  %v3355_v48 = vpop.permute.xlu0 %3354 }
 0xb0a   : > { %3474 = vmatpush.msrb.mxu1 %v3347_v5 }
 0xb0c   : > { %3475 = vmatpush.msrb.mxu1 %v3345_v26 }
 0xb0d   : > { %3724 = vmatmul.msk.f32.vlgmr.msrb.gmra.mxu1 %vm667_vm1, %v3086_v17 }
 0xb80   : > { %v3437_v49 = vpop.f32.mrf.mxu3  ;;  %v3377_v44 = vpop.f32.mrf.mxu2 }
 0xb81   : > { %v3438_v55 = vadd.f32 %v3437_v49, %v3355_v48  ;;  %v3378_v23 = vadd.f32 %v3377_v44, %v3355_v48 }
 0xb82   : > { %v3397_v37 = vpop.f32.mrf.mxu1 }
 0xb83   : > { %v3457_v60 = vpop.f32.mrf.mxu0  ;;  %v3398_v19 = vadd.f32 %v3397_v37, %v3378_v23 }
 0xb84   : > { %v3458_v8 = vadd.f32 %v3457_v60, %v3438_v55 }
 0xb8a   : > { %v3477_v20 = vpop.f32.mrf.mxu1 }
 0xb8b   : > { %v3478_v24 = vadd.f32 %v3477_v20, %v3458_v8  ;;  %v3417_v58 = vpop.f32.mrf.mxu2 }
 0xb8c   : > { %v3418_v32 = vadd.f32 %v3417_v58, %v3398_v19 }
 0xb8d   : > { %3481 = vst [vmem:[%s426_s30 + $0x8] sm:$0xff] %v3478_v24 }
 0xb8e   : > { %3480 = vst [vmem:[%s426_s30] sm:$0xff] %v3418_v32 }
 0xb8f   : > { %3861 = shalt.err (!%p3858_p8)
}
 0xb90   : > { %3738 = dma.vmem_to_hbm [thread:$0]  (%p4012_p5), %s3497_s22, 256, %s3499_s13, %s3483_s21  }
 0xb91 PF: > { %p3750_p9 = scmp.ge.s32.totalorder %s3900_s20, 2  ;;  %s3510_s24 = sand.u32 1, %s3888_s17  }
 0xb92   : > { %s3511_s7 = scalar_lea.sflag [#allocation4], %s3510_s24 }
 0xb93   : > { %p3745_p10 = pnand %p3750_p9, %p4016_p6 }
 0xb95   : > { %p3746_p11 = pneg %p3745_p10 }
 0xb97   : > { %3883 = dma.done.wait (%p3746_p11), %s3511_s7, 256  }
 0xb98   : > { %3885 = vsyncadd (%p3746_p11), %s3511_s7, 4294967040  ;;  %p22_p12 = scmp.ge.s32.totalorder %s3999_s23, 4   ;;  %s7381_s17 = smov %s3892_s18 }
 0xb99   : > { %s7382_s18 = smov %s3896_s19  ;;  %s7383_s19 = smov %s4010_s26 }
 0xb9a   : > { %s7384_s20 = smov %s3999_s23  ;;  %24 = sbr.rel (!%p22_p12) target bundleno = 9 (0x9), region = 122 }
 0xb9f   :  { %3517 = vsyncpa [#allocation3], 1 }
 0xba0   :  { %3519 = vsyncpa [#allocation3 + $0x1], 1 }
 0xba1   :  { %3520 = vsyncpa [#allocation4], 1 }
 0xba2   :  { %3522 = vsyncpa [#allocation4 + $0x1], 1 }

</bundles_post_ra>
